<compile_context>
chip_gen: v6e
topology: v6e:2x2x1
jax: 0.10.0
libtpu: 0.0.40
codegen_flags: <defaults>
</compile_context>

<pallas_src>
import jax
import jax.numpy as jnp
from jax import lax
from jax.experimental import pallas as pl
from jax.experimental.pallas import tpu as pltpu

# --- tiny config (small shapes consistent with the module) ---
VOCAB = 1024       # vocab_size
EMBED = 64         # embed_size
HEADS = 4          # heads
HEAD_DIM = EMBED // HEADS
NUM_LAYERS = 2     # num_layers
SEQ = 8
BATCH = 2
LN_EPS = 1e-5      # nn.LayerNorm default
QKV_STRIDE = 128   # Q/K/V column offsets inside the fused weight (lane-tile aligned)
VOCAB_TILE = 512   # V tile for the vocab-projection grid (lane-dense output)
NEG_INF = -1e20    # matches the module's masked_fill value


# ---------------------------------------------------------------------------
# Kernel 1: embedding lookup + both transformer blocks (everything VMEM-resident)
# ---------------------------------------------------------------------------
def gpt2_blocks_kernel(tok_ref, bias_ref, emb_ref,
                       wqkv_ref, wfc_ref, bfc_ref,
                       w1_ref, b1_ref, w2_ref, b2_ref,
                       ln1w_ref, ln1b_ref, ln2w_ref, ln2b_ref,
                       o_ref):
    ns = bias_ref.shape[0]               # N * S flattened token axis
    vocab, embed = emb_ref.shape
    heads = HEADS
    head_dim = embed // heads
    num_layers = wqkv_ref.shape[0]

    # ---- embedding lookup fused as a one-hot MXU matmul (rows are exactly 0/1) ----
    tok = tok_ref[...]                                                 # (NS, 1) int32
    onehot = (lax.broadcasted_iota(jnp.int32, (ns, vocab), 1) == tok).astype(jnp.float32)
    x = jnp.dot(onehot, emb_ref[...], preferred_element_type=jnp.float32)   # (NS, E) f32

    bias = bias_ref[...]                                               # (NS, NS) additive mask

    def layernorm(y, w, b):
        # one-pass variance: E[y^2] - mu^2 (independent cross-lane reductions)
        mu = jnp.mean(y, axis=-1, keepdims=True)
        ms = jnp.mean(y * y, axis=-1, keepdims=True)
        return (y - mu) * lax.rsqrt(ms - mu * mu + LN_EPS) * w + b

    for l in range(num_layers):
        # ---- fused multi-head QKV projection (1/sqrt(E) pre-folded into Q weight) ----
        qkv = jnp.dot(x.astype(jnp.bfloat16), wqkv_ref[l],
                      preferred_element_type=jnp.float32)              # (NS, 3*128)

        def heads_view(col0):
            # lane-tile aligned slice -> batched-head layout (H, NS, Hd), bf16 MXU operand
            t = qkv[:, col0:col0 + embed].astype(jnp.bfloat16)         # (NS, E)
            return jnp.swapaxes(t.reshape(ns, heads, head_dim), 0, 1)  # (H, NS, Hd)

        q = heads_view(0)                    # already scaled by 1/sqrt(EMBED)
        k = heads_view(QKV_STRIDE)
        v = heads_view(2 * QKV_STRIDE)

        # ---- batched attention over all heads; no Python head/batch loops.
        #      Keys span all N*S positions; cross-batch pairs (and mask==0 entries)
        #      carry a -1e20 additive bias so their softmax weight underflows to 0.
        #      (Note: a fully-masked row would spread over all NS keys instead of S;
        #       irrelevant for the module's all-ones mask.) ----
        e = jnp.einsum('hqd,hkd->hqk', q, k,
                       preferred_element_type=jnp.float32)             # (H, NS, NS)
        e = e + bias
        m = jnp.max(e, axis=-1, keepdims=True)
        p = jnp.exp(e - m)
        p = p * pl.reciprocal(jnp.sum(p, axis=-1, keepdims=True), approx=True)
        ctx = jnp.einsum('hqk,hkd->hqd', p.astype(jnp.bfloat16), v,
                         preferred_element_type=jnp.float32)           # (H, NS, Hd)
        ctx = jnp.swapaxes(ctx, 0, 1).reshape(ns, embed)               # (NS, E)

        # ---- attention output projection + residual + LayerNorm ----
        attn_out = jnp.dot(ctx.astype(jnp.bfloat16), wfc_ref[l],
                           preferred_element_type=jnp.float32) + bfc_ref[l]
        x1 = layernorm(attn_out + x, ln1w_ref[l], ln1b_ref[l])

        # ---- feed-forward: Linear(E, 4E) -> ReLU -> Linear(4E, E) ----
        h1 = jnp.dot(x1.astype(jnp.bfloat16), w1_ref[l],
                     preferred_element_type=jnp.float32) + b1_ref[l]
        h1 = jnp.maximum(h1, 0.0)
        ff = jnp.dot(h1.astype(jnp.bfloat16), w2_ref[l],
                     preferred_element_type=jnp.float32) + b2_ref[l]
        x = layernorm(ff + x1, ln2w_ref[l], ln2b_ref[l])

    o_ref[...] = x                                                     # (NS, E) f32


# ---------------------------------------------------------------------------
# Kernel 2: vocab projection, V-tiled (parallel grid axis -> both TCs on v7x)
# ---------------------------------------------------------------------------
def vocab_proj_kernel(x_ref, w_ref, b_ref, o_ref):
    o_ref[...] = (jnp.dot(x_ref[...].astype(jnp.bfloat16), w_ref[...],
                          preferred_element_type=jnp.float32) + b_ref[...])


# ---------------------------------------------------------------------------
# Wrapper
# ---------------------------------------------------------------------------
def gpt2_forward(tokens, mask, params):
    N, S = tokens.shape
    ns = N * S
    tok = tokens.reshape(ns, 1).astype(jnp.int32)

    # Additive attention bias over the flattened (N*S, N*S) token grid:
    #   0      where attention is allowed (same batch element and mask == 1)
    #   -1e20  where disallowed (mask == 0, or a cross-batch pair)
    m3 = mask.reshape(N, S, S).astype(jnp.float32)
    within = (m3 - 1.0) * jnp.float32(-NEG_INF)                # (N, S, S): 0 or -1e20
    same = jnp.eye(N, dtype=jnp.bool_)[:, None, :, None]       # (N, 1, N, 1)
    bias = jnp.where(same, within[:, :, None, :], jnp.float32(NEG_INF)).reshape(ns, ns)

    vmem = pl.BlockSpec(memory_space=pltpu.MemorySpace.VMEM)
    operands = (tok, bias, params["emb"],
                params["wqkv"], params["wfc"], params["bfc"],
                params["w1"], params["b1"], params["w2"], params["b2"],
                params["ln1w"], params["ln1b"], params["ln2w"], params["ln2b"])

    hidden = pl.pallas_call(
        gpt2_blocks_kernel,
        out_shape=jax.ShapeDtypeStruct((ns, EMBED), jnp.float32),
        in_specs=[vmem] * len(operands),
        out_specs=vmem,
    )(*operands)

    tv = VOCAB_TILE
    logits = pl.pallas_call(
        vocab_proj_kernel,
        out_shape=jax.ShapeDtypeStruct((ns, VOCAB), jnp.float32),
        grid=(VOCAB // tv,),
        in_specs=[pl.BlockSpec((ns, EMBED), lambda j: (0, 0)),
                  pl.BlockSpec((EMBED, tv), lambda j: (0, j)),
                  pl.BlockSpec((1, tv), lambda j: (0, j))],
        out_specs=pl.BlockSpec((ns, tv), lambda j: (0, j)),
        compiler_params=pltpu.CompilerParams(dimension_semantics=("parallel",)),
    )(hidden, params["w_out_t"], params["b_out"])
    return logits.reshape(N, S, VOCAB)


# ---------------------------------------------------------------------------
# Deterministic parameter initialization.
# Weights are pre-transposed (y = x @ W^T stored as x @ Wt).  The per-head
# Q/K/V Linears (shared across heads, exactly like the torch module) are packed
# into one block-diagonal fused weight with 128-lane-aligned Q/K/V segments,
# and the 1/sqrt(EMBED) attention scale is folded into the Q block.
# ---------------------------------------------------------------------------
def init_params(key):
    def nrm(k, shape, scale=0.02):
        return (scale * jax.random.normal(k, shape)).astype(jnp.float32)

    keys = jax.random.split(key, 3 + NUM_LAYERS)
    eye_h = jnp.eye(HEADS, dtype=jnp.float32)
    attn_scale = jnp.float32(1.0 / (EMBED ** 0.5))   # module divides energy by sqrt(embed_size)

    wqkv_l, wfc_l, bfc_l = [], [], []
    w1_l, b1_l, w2_l, b2_l = [], [], [], []
    ln1w_l, ln1b_l, ln2w_l, ln2b_l = [], [], [], []
    for i in range(NUM_LAYERS):
        ks = jax.random.split(keys[3 + i], 9)
        wq_t = nrm(ks[0], (HEAD_DIM, HEAD_DIM))       # Linear(Hd, Hd, bias=False)^T
        wk_t = nrm(ks[1], (HEAD_DIM, HEAD_DIM))
        wv_t = nrm(ks[2], (HEAD_DIM, HEAD_DIM))
        wqkv = jnp.zeros((EMBED, 3 * QKV_STRIDE), jnp.float32)
        wqkv = wqkv.at[:, 0:EMBED].set(jnp.kron(eye_h, wq_t) * attn_scale)
        wqkv = wqkv.at[:, QKV_STRIDE:QKV_STRIDE + EMBED].set(jnp.kron(eye_h, wk_t))
        wqkv = wqkv.at[:, 2 * QKV_STRIDE:2 * QKV_STRIDE + EMBED].set(jnp.kron(eye_h, wv_t))
        wqkv_l.append(wqkv.astype(jnp.bfloat16))

        wfc_l.append(nrm(ks[3], (EMBED, EMBED)).astype(jnp.bfloat16))   # fc_out W^T
        bfc_l.append(nrm(ks[4], (1, EMBED)))
        w1_l.append(nrm(ks[5], (EMBED, 4 * EMBED)).astype(jnp.bfloat16))
        b1_l.append(nrm(ks[6], (1, 4 * EMBED)))
        w2_l.append(nrm(ks[7], (4 * EMBED, EMBED)).astype(jnp.bfloat16))
        b2_l.append(nrm(ks[8], (1, EMBED)))
        ln1w_l.append(jnp.ones((1, EMBED), jnp.float32))    # nn.LayerNorm defaults
        ln1b_l.append(jnp.zeros((1, EMBED), jnp.float32))
        ln2w_l.append(jnp.ones((1, EMBED), jnp.float32))
        ln2b_l.append(jnp.zeros((1, EMBED), jnp.float32))

    stack = lambda xs: jnp.stack(xs, axis=0)
    return {
        "emb": nrm(keys[0], (VOCAB, EMBED)),                             # f32 embedding table
        "w_out_t": nrm(keys[1], (EMBED, VOCAB)).astype(jnp.bfloat16),    # Linear(E, V)^T
        "b_out": nrm(keys[2], (1, VOCAB)),
        "wqkv": stack(wqkv_l), "wfc": stack(wfc_l), "bfc": stack(bfc_l),
        "w1": stack(w1_l), "b1": stack(b1_l), "w2": stack(w2_l), "b2": stack(b2_l),
        "ln1w": stack(ln1w_l), "ln1b": stack(ln1b_l),
        "ln2w": stack(ln2w_l), "ln2b": stack(ln2b_l),
    }


if __name__ == "__main__":
    key = jax.random.PRNGKey(0)
    pkey, tkey = jax.random.split(key)
    params = init_params(pkey)

    tokens = jax.random.randint(tkey, (BATCH, SEQ), 0, VOCAB, dtype=jnp.int32)
    # torch: mask = ones(N, 1, S, S); head-broadcast axis handled in the wrapper.
    mask = jnp.ones((BATCH, 1, SEQ, SEQ), jnp.float32)

    logits = jax.jit(gpt2_forward)(tokens, mask, params)
    jax.block_until_ready(logits)
    assert logits.shape == (BATCH, SEQ, VOCAB)
    print("KERNEL_OK")
</pallas_src>

<mosaic_0001>
module attributes {stable_mosaic.version = 11 : i64} {
  func.func @vocab_proj_kernel(%arg0: i32, %arg1: memref<16x64xf32, #tpu.memory_space<vmem>>, %arg2: memref<64x512xbf16, #tpu.memory_space<vmem>>, %arg3: memref<1x512xf32, #tpu.memory_space<vmem>>, %arg4: memref<16x512xf32, #tpu.memory_space<vmem>>) attributes {dimension_semantics = [#tpu.dimension_semantics<parallel>], iteration_bounds = array<i64: 2>, scalar_prefetch = 0 : i64, scratch_operands = 0 : i64, tpu.core_type = #tpu.core_type<tc>, window_params = [{pipeline_mode = #tpu.pipeline_mode<synchronous>, transform_indices = @transform_0, window_bounds = array<i64: 16, 64>}, {transform_indices = @transform_1, window_bounds = array<i64: 64, 512>}, {transform_indices = @transform_2, window_bounds = array<i64: 1, 512>}, {transform_indices = @transform_3, window_bounds = array<i64: 16, 512>}]} {
    %c0 = arith.constant 0 : index
    %c0_0 = arith.constant 0 : index
    %0 = vector.load %arg1[%c0, %c0_0] : memref<16x64xf32, #tpu.memory_space<vmem>>, vector<16x64xf32>
    %1 = arith.truncf %0 : vector<16x64xf32> to vector<16x64xbf16>
    %c0_1 = arith.constant 0 : index
    %c0_2 = arith.constant 0 : index
    %2 = vector.load %arg2[%c0_1, %c0_2] : memref<64x512xbf16, #tpu.memory_space<vmem>>, vector<64x512xbf16>
    %cst = arith.constant dense<0.000000e+00> : vector<16x512xf32>
    %3 = tpu.matmul %1, %2, %cst {dimension_numbers = #tpu.dot_dimension_numbers<[1], [0], [0], [1], [0, 0, 1, 1], [], []>} : vector<16x64xbf16>, vector<64x512xbf16>, vector<16x512xf32> -> vector<16x512xf32>
    %c0_3 = arith.constant 0 : index
    %c0_4 = arith.constant 0 : index
    %4 = vector.load %arg3[%c0_3, %c0_4] : memref<1x512xf32, #tpu.memory_space<vmem>>, vector<1x512xf32>
    %5 = vector.broadcast %4 : vector<1x512xf32> to vector<16x512xf32>
    %6 = arith.addf %3, %5 : vector<16x512xf32>
    %c0_5 = arith.constant 0 : index
    %c0_6 = arith.constant 0 : index
    %7 = vector.load %arg4[%c0_5, %c0_6] : memref<16x512xf32, #tpu.memory_space<vmem>>, vector<16x512xf32>
    tpu.vector_store %arg4[%c0_5, %c0_6], %6 {strides = array<i32>} : memref<16x512xf32, #tpu.memory_space<vmem>>, vector<16x512xf32>,
    return
  }
  func.func @transform_0(%arg0: i32) -> (i32, i32) {
    %c0_i32 = arith.constant 0 : i32
    %c0_i32_0 = arith.constant 0 : i32
    %c0_i32_1 = arith.constant 0 : i32
    return %c0_i32, %c0_i32_0 : i32, i32
  }
  func.func @transform_1(%arg0: i32) -> (i32, i32) {
    %c0_i32 = arith.constant 0 : i32
    %c0_i32_0 = arith.constant 0 : i32
    return %c0_i32, %arg0 : i32, i32
  }
  func.func @transform_2(%arg0: i32) -> (i32, i32) {
    %c0_i32 = arith.constant 0 : i32
    %c0_i32_0 = arith.constant 0 : i32
    return %c0_i32, %arg0 : i32, i32
  }
  func.func @transform_3(%arg0: i32) -> (i32, i32) {
    %c0_i32 = arith.constant 0 : i32
    %c0_i32_0 = arith.constant 0 : i32
    return %c0_i32, %arg0 : i32, i32
  }
}

module attributes {stable_mosaic.version = 11 : i64} {
  func.func @gpt2_blocks_kernel(%arg0: memref<16x1xi32, #tpu.memory_space<vmem>>, %arg1: memref<16x16xf32, #tpu.memory_space<vmem>>, %arg2: memref<1024x64xf32, #tpu.memory_space<vmem>>, %arg3: memref<2x64x384xbf16, #tpu.memory_space<vmem>>, %arg4: memref<2x64x64xbf16, #tpu.memory_space<vmem>>, %arg5: memref<2x1x64xf32, #tpu.memory_space<vmem>>, %arg6: memref<2x64x256xbf16, #tpu.memory_space<vmem>>, %arg7: memref<2x1x256xf32, #tpu.memory_space<vmem>>, %arg8: memref<2x256x64xbf16, #tpu.memory_space<vmem>>, %arg9: memref<2x1x64xf32, #tpu.memory_space<vmem>>, %arg10: memref<2x1x64xf32, #tpu.memory_space<vmem>>, %arg11: memref<2x1x64xf32, #tpu.memory_space<vmem>>, %arg12: memref<2x1x64xf32, #tpu.memory_space<vmem>>, %arg13: memref<2x1x64xf32, #tpu.memory_space<vmem>>, %arg14: memref<16x64xf32, #tpu.memory_space<vmem>>) attributes {dimension_semantics = [], scalar_prefetch = 0 : i64, scratch_operands = 0 : i64, tpu.core_type = #tpu.core_type<tc>} {
    %c0 = arith.constant 0 : index
    %c0_0 = arith.constant 0 : index
    %0 = vector.load %arg0[%c0, %c0_0] : memref<16x1xi32, #tpu.memory_space<vmem>>, vector<16x1xi32>
    %1 = tpu.iota {dimensions = array<i32: 1>} : vector<16x1024xi32>
    %2 = vector.broadcast %0 : vector<16x1xi32> to vector<16x1024xi32>
    %3 = arith.cmpi eq, %1, %2 : vector<16x1024xi32>
    %4 = arith.extui %3 : vector<16x1024xi1> to vector<16x1024xi32>
    %5 = arith.sitofp %4 : vector<16x1024xi32> to vector<16x1024xf32>
    %c0_1 = arith.constant 0 : index
    %c0_2 = arith.constant 0 : index
    %6 = vector.load %arg2[%c0_1, %c0_2] : memref<1024x64xf32, #tpu.memory_space<vmem>>, vector<1024x64xf32>
    %cst = arith.constant dense<0.000000e+00> : vector<16x64xf32>
    %7 = tpu.matmul %5, %6, %cst {dimension_numbers = #tpu.dot_dimension_numbers<[1], [0], [0], [1], [0, 0, 1, 1], [], []>} : vector<16x1024xf32>, vector<1024x64xf32>, vector<16x64xf32> -> vector<16x64xf32>
    %c0_3 = arith.constant 0 : index
    %c0_4 = arith.constant 0 : index
    %8 = vector.load %arg1[%c0_3, %c0_4] : memref<16x16xf32, #tpu.memory_space<vmem>>, vector<16x16xf32>
    %9 = arith.truncf %7 : vector<16x64xf32> to vector<16x64xbf16>
    %c0_5 = arith.constant 0 : index
    %c0_6 = arith.constant 0 : index
    %c0_7 = arith.constant 0 : index
    %10 = vector.load %arg3[%c0_5, %c0_6, %c0_7] : memref<2x64x384xbf16, #tpu.memory_space<vmem>>, vector<1x64x384xbf16>
    %11 = vector.shape_cast %10 : vector<1x64x384xbf16> to vector<64x384xbf16>
    %cst_8 = arith.constant dense<0.000000e+00> : vector<16x384xf32>
    %12 = tpu.matmul %9, %11, %cst_8 {dimension_numbers = #tpu.dot_dimension_numbers<[1], [0], [0], [1], [0, 0, 1, 1], [], []>} : vector<16x64xbf16>, vector<64x384xbf16>, vector<16x384xf32> -> vector<16x384xf32>
    %13 = vector.extract_strided_slice %12 {offsets = [0, 0], sizes = [16, 64], strides = [1, 1]} : vector<16x384xf32> to vector<16x64xf32>
    %14 = arith.truncf %13 : vector<16x64xf32> to vector<16x64xbf16>
    %15 = vector.shape_cast %14 : vector<16x64xbf16> to vector<16x4x16xbf16>
    %16 = tpu.transpose %15, [1, 0, 2] : vector<16x4x16xbf16> -> vector<4x16x16xbf16>
    %17 = vector.extract_strided_slice %12 {offsets = [0, 128], sizes = [16, 64], strides = [1, 1]} : vector<16x384xf32> to vector<16x64xf32>
    %18 = arith.truncf %17 : vector<16x64xf32> to vector<16x64xbf16>
    %19 = vector.shape_cast %18 : vector<16x64xbf16> to vector<16x4x16xbf16>
    %20 = tpu.transpose %19, [1, 0, 2] : vector<16x4x16xbf16> -> vector<4x16x16xbf16>
    %21 = vector.extract_strided_slice %12 {offsets = [0, 256], sizes = [16, 64], strides = [1, 1]} : vector<16x384xf32> to vector<16x64xf32>
    %22 = arith.truncf %21 : vector<16x64xf32> to vector<16x64xbf16>
    %23 = vector.shape_cast %22 : vector<16x64xbf16> to vector<16x4x16xbf16>
    %24 = tpu.transpose %23, [1, 0, 2] : vector<16x4x16xbf16> -> vector<4x16x16xbf16>
    "tpu.trace_start"() <{level = 10 : i32, message = "hqd,hkd->hqk"}> : () -> ()
    %cst_9 = arith.constant dense<0.000000e+00> : vector<4x16x16xf32>
    %25 = tpu.matmul %16, %20, %cst_9 {dimension_numbers = #tpu.dot_dimension_numbers<[2], [2], [1], [1], [0, 0, 0, 1, 1, 1], [0], [0]>} : vector<4x16x16xbf16>, vector<4x16x16xbf16>, vector<4x16x16xf32> -> vector<4x16x16xf32>
    "tpu.trace_stop"() : () -> ()
    %26 = vector.shape_cast %8 : vector<16x16xf32> to vector<1x16x16xf32>
    %27 = vector.broadcast %26 : vector<1x16x16xf32> to vector<4x16x16xf32>
    %28 = arith.addf %25, %27 : vector<4x16x16xf32>
    %cst_10 = arith.constant dense<0xFF800000> : vector<4x16xf32>
    %29 = vector.multi_reduction <maximumf>, %28, %cst_10 [2] : vector<4x16x16xf32> to vector<4x16xf32>
    %30 = vector.shape_cast %29 : vector<4x16xf32> to vector<4x16x1xf32>
    %31 = vector.broadcast %30 : vector<4x16x1xf32> to vector<4x16x16xf32>
    %32 = arith.subf %28, %31 : vector<4x16x16xf32>
    %33 = math.exp %32 : vector<4x16x16xf32>
    %cst_11 = arith.constant dense<0.000000e+00> : vector<4x16xf32>
    %34 = vector.multi_reduction <add>, %33, %cst_11 [2] : vector<4x16x16xf32> to vector<4x16xf32>
    %35 = vector.shape_cast %34 : vector<4x16xf32> to vector<4x16x1xf32>
    %36 = tpu.reciprocal %35 {approx = true} : vector<4x16x1xf32> -> vector<4x16x1xf32>
    %37 = vector.broadcast %36 : vector<4x16x1xf32> to vector<4x16x16xf32>
    %38 = arith.mulf %33, %37 : vector<4x16x16xf32>
    %39 = arith.truncf %38 : vector<4x16x16xf32> to vector<4x16x16xbf16>
    "tpu.trace_start"() <{level = 10 : i32, message = "hqk,hkd->hqd"}> : () -> ()
    %cst_12 = arith.constant dense<0.000000e+00> : vector<4x16x16xf32>
    %40 = tpu.matmul %39, %24, %cst_12 {dimension_numbers = #tpu.dot_dimension_numbers<[2], [1], [1], [2], [0, 0, 0, 1, 1, 2], [0], [0]>} : vector<4x16x16xbf16>, vector<4x16x16xbf16>, vector<4x16x16xf32> -> vector<4x16x16xf32>
    "tpu.trace_stop"() : () -> ()
    %41 = tpu.transpose %40, [1, 0, 2] : vector<4x16x16xf32> -> vector<16x4x16xf32>
    %42 = vector.shape_cast %41 : vector<16x4x16xf32> to vector<16x64xf32>
    %43 = arith.truncf %42 : vector<16x64xf32> to vector<16x64xbf16>
    %c0_13 = arith.constant 0 : index
    %c0_14 = arith.constant 0 : index
    %c0_15 = arith.constant 0 : index
    %44 = vector.load %arg4[%c0_13, %c0_14, %c0_15] : memref<2x64x64xbf16, #tpu.memory_space<vmem>>, vector<1x64x64xbf16>
    %45 = vector.shape_cast %44 : vector<1x64x64xbf16> to vector<64x64xbf16>
    %cst_16 = arith.constant dense<0.000000e+00> : vector<16x64xf32>
    %46 = tpu.matmul %43, %45, %cst_16 {dimension_numbers = #tpu.dot_dimension_numbers<[1], [0], [0], [1], [0, 0, 1, 1], [], []>} : vector<16x64xbf16>, vector<64x64xbf16>, vector<16x64xf32> -> vector<16x64xf32>
    %c0_17 = arith.constant 0 : index
    %c0_18 = arith.constant 0 : index
    %c0_19 = arith.constant 0 : index
    %47 = vector.load %arg5[%c0_17, %c0_18, %c0_19] : memref<2x1x64xf32, #tpu.memory_space<vmem>>, vector<1x1x64xf32>
    %48 = vector.shape_cast %47 : vector<1x1x64xf32> to vector<1x64xf32>
    %49 = vector.broadcast %48 : vector<1x64xf32> to vector<16x64xf32>
    %50 = arith.addf %46, %49 : vector<16x64xf32>
    %51 = arith.addf %50, %7 : vector<16x64xf32>
    %c0_20 = arith.constant 0 : index
    %c0_21 = arith.constant 0 : index
    %c0_22 = arith.constant 0 : index
    %52 = vector.load %arg10[%c0_20, %c0_21, %c0_22] : memref<2x1x64xf32, #tpu.memory_space<vmem>>, vector<1x1x64xf32>
    %53 = vector.shape_cast %52 : vector<1x1x64xf32> to vector<1x64xf32>
    %c0_23 = arith.constant 0 : index
    %c0_24 = arith.constant 0 : index
    %c0_25 = arith.constant 0 : index
    %54 = vector.load %arg11[%c0_23, %c0_24, %c0_25] : memref<2x1x64xf32, #tpu.memory_space<vmem>>, vector<1x1x64xf32>
    %55 = vector.shape_cast %54 : vector<1x1x64xf32> to vector<1x64xf32>
    %cst_26 = arith.constant dense<0.000000e+00> : vector<16xf32>
    %56 = vector.multi_reduction <add>, %51, %cst_26 [1] : vector<16x64xf32> to vector<16xf32>
    %57 = vector.shape_cast %56 : vector<16xf32> to vector<16x1xf32>
    %cst_27 = arith.constant 6.400000e+01 : f32
    %58 = vector.broadcast %cst_27 : f32 to vector<16x1xf32>
    %59 = arith.divf %57, %58 : vector<16x1xf32>
    %60 = arith.mulf %51, %51 : vector<16x64xf32>
    %cst_28 = arith.constant dense<0.000000e+00> : vector<16xf32>
    %61 = vector.multi_reduction <add>, %60, %cst_28 [1] : vector<16x64xf32> to vector<16xf32>
    %62 = vector.shape_cast %61 : vector<16xf32> to vector<16x1xf32>
    %cst_29 = arith.constant 6.400000e+01 : f32
    %63 = vector.broadcast %cst_29 : f32 to vector<16x1xf32>
    %64 = arith.divf %62, %63 : vector<16x1xf32>
    %65 = vector.broadcast %59 : vector<16x1xf32> to vector<16x64xf32>
    %66 = arith.subf %51, %65 : vector<16x64xf32>
    %67 = arith.mulf %59, %59 : vector<16x1xf32>
    %68 = arith.subf %64, %67 : vector<16x1xf32>
    %cst_30 = arith.constant 9.99999974E-6 : f32
    %69 = vector.broadcast %cst_30 : f32 to vector<16x1xf32>
    %70 = arith.addf %68, %69 : vector<16x1xf32>
    %71 = math.rsqrt %70 : vector<16x1xf32>
    %72 = vector.broadcast %71 : vector<16x1xf32> to vector<16x64xf32>
    %73 = arith.mulf %66, %72 : vector<16x64xf32>
    %74 = vector.broadcast %53 : vector<1x64xf32> to vector<16x64xf32>
    %75 = arith.mulf %73, %74 : vector<16x64xf32>
    %76 = vector.broadcast %55 : vector<1x64xf32> to vector<16x64xf32>
    %77 = arith.addf %75, %76 : vector<16x64xf32>
    %78 = arith.truncf %77 : vector<16x64xf32> to vector<16x64xbf16>
    %c0_31 = arith.constant 0 : index
    %c0_32 = arith.constant 0 : index
    %c0_33 = arith.constant 0 : index
    %79 = vector.load %arg6[%c0_31, %c0_32, %c0_33] : memref<2x64x256xbf16, #tpu.memory_space<vmem>>, vector<1x64x256xbf16>
    %80 = vector.shape_cast %79 : vector<1x64x256xbf16> to vector<64x256xbf16>
    %cst_34 = arith.constant dense<0.000000e+00> : vector<16x256xf32>
    %81 = tpu.matmul %78, %80, %cst_34 {dimension_numbers = #tpu.dot_dimension_numbers<[1], [0], [0], [1], [0, 0, 1, 1], [], []>} : vector<16x64xbf16>, vector<64x256xbf16>, vector<16x256xf32> -> vector<16x256xf32>
    %c0_35 = arith.constant 0 : index
    %c0_36 = arith.constant 0 : index
    %c0_37 = arith.constant 0 : index
    %82 = vector.load %arg7[%c0_35, %c0_36, %c0_37] : memref<2x1x256xf32, #tpu.memory_space<vmem>>, vector<1x1x256xf32>
    %83 = vector.shape_cast %82 : vector<1x1x256xf32> to vector<1x256xf32>
    %84 = vector.broadcast %83 : vector<1x256xf32> to vector<16x256xf32>
    %85 = arith.addf %81, %84 : vector<16x256xf32>
    %cst_38 = arith.constant 0.000000e+00 : f32
    %86 = vector.broadcast %cst_38 : f32 to vector<16x256xf32>
    %87 = arith.maximumf %85, %86 : vector<16x256xf32>
    %88 = arith.truncf %87 : vector<16x256xf32> to vector<16x256xbf16>
    %c0_39 = arith.constant 0 : index
    %c0_40 = arith.constant 0 : index
    %c0_41 = arith.constant 0 : index
    %89 = vector.load %arg8[%c0_39, %c0_40, %c0_41] : memref<2x256x64xbf16, #tpu.memory_space<vmem>>, vector<1x256x64xbf16>
    %90 = vector.shape_cast %89 : vector<1x256x64xbf16> to vector<256x64xbf16>
    %cst_42 = arith.constant dense<0.000000e+00> : vector<16x64xf32>
    %91 = tpu.matmul %88, %90, %cst_42 {dimension_numbers = #tpu.dot_dimension_numbers<[1], [0], [0], [1], [0, 0, 1, 1], [], []>} : vector<16x256xbf16>, vector<256x64xbf16>, vector<16x64xf32> -> vector<16x64xf32>
    %c0_43 = arith.constant 0 : index
    %c0_44 = arith.constant 0 : index
    %c0_45 = arith.constant 0 : index
    %92 = vector.load %arg9[%c0_43, %c0_44, %c0_45] : memref<2x1x64xf32, #tpu.memory_space<vmem>>, vector<1x1x64xf32>
    %93 = vector.shape_cast %92 : vector<1x1x64xf32> to vector<1x64xf32>
    %94 = vector.broadcast %93 : vector<1x64xf32> to vector<16x64xf32>
    %95 = arith.addf %91, %94 : vector<16x64xf32>
    %96 = arith.addf %95, %77 : vector<16x64xf32>
    %c0_46 = arith.constant 0 : index
    %c0_47 = arith.constant 0 : index
    %c0_48 = arith.constant 0 : index
    %97 = vector.load %arg12[%c0_46, %c0_47, %c0_48] : memref<2x1x64xf32, #tpu.memory_space<vmem>>, vector<1x1x64xf32>
    %98 = vector.shape_cast %97 : vector<1x1x64xf32> to vector<1x64xf32>
    %c0_49 = arith.constant 0 : index
    %c0_50 = arith.constant 0 : index
    %c0_51 = arith.constant 0 : index
    %99 = vector.load %arg13[%c0_49, %c0_50, %c0_51] : memref<2x1x64xf32, #tpu.memory_space<vmem>>, vector<1x1x64xf32>
    %100 = vector.shape_cast %99 : vector<1x1x64xf32> to vector<1x64xf32>
    %cst_52 = arith.constant dense<0.000000e+00> : vector<16xf32>
    %101 = vector.multi_reduction <add>, %96, %cst_52 [1] : vector<16x64xf32> to vector<16xf32>
    %102 = vector.shape_cast %101 : vector<16xf32> to vector<16x1xf32>
    %cst_53 = arith.constant 6.400000e+01 : f32
    %103 = vector.broadcast %cst_53 : f32 to vector<16x1xf32>
    %104 = arith.divf %102, %103 : vector<16x1xf32>
    %105 = arith.mulf %96, %96 : vector<16x64xf32>
    %cst_54 = arith.constant dense<0.000000e+00> : vector<16xf32>
    %106 = vector.multi_reduction <add>, %105, %cst_54 [1] : vector<16x64xf32> to vector<16xf32>
    %107 = vector.shape_cast %106 : vector<16xf32> to vector<16x1xf32>
    %cst_55 = arith.constant 6.400000e+01 : f32
    %108 = vector.broadcast %cst_55 : f32 to vector<16x1xf32>
    %109 = arith.divf %107, %108 : vector<16x1xf32>
    %110 = vector.broadcast %104 : vector<16x1xf32> to vector<16x64xf32>
    %111 = arith.subf %96, %110 : vector<16x64xf32>
    %112 = arith.mulf %104, %104 : vector<16x1xf32>
    %113 = arith.subf %109, %112 : vector<16x1xf32>
    %cst_56 = arith.constant 9.99999974E-6 : f32
    %114 = vector.broadcast %cst_56 : f32 to vector<16x1xf32>
    %115 = arith.addf %113, %114 : vector<16x1xf32>
    %116 = math.rsqrt %115 : vector<16x1xf32>
    %117 = vector.broadcast %116 : vector<16x1xf32> to vector<16x64xf32>
    %118 = arith.mulf %111, %117 : vector<16x64xf32>
    %119 = vector.broadcast %98 : vector<1x64xf32> to vector<16x64xf32>
    %120 = arith.mulf %118, %119 : vector<16x64xf32>
    %121 = vector.broadcast %100 : vector<1x64xf32> to vector<16x64xf32>
    %122 = arith.addf %120, %121 : vector<16x64xf32>
    %123 = arith.truncf %122 : vector<16x64xf32> to vector<16x64xbf16>
    %c1 = arith.constant 1 : index
    %c0_57 = arith.constant 0 : index
    %c0_58 = arith.constant 0 : index
    %124 = vector.load %arg3[%c1, %c0_57, %c0_58] : memref<2x64x384xbf16, #tpu.memory_space<vmem>>, vector<1x64x384xbf16>
    %125 = vector.shape_cast %124 : vector<1x64x384xbf16> to vector<64x384xbf16>
    %cst_59 = arith.constant dense<0.000000e+00> : vector<16x384xf32>
    %126 = tpu.matmul %123, %125, %cst_59 {dimension_numbers = #tpu.dot_dimension_numbers<[1], [0], [0], [1], [0, 0, 1, 1], [], []>} : vector<16x64xbf16>, vector<64x384xbf16>, vector<16x384xf32> -> vector<16x384xf32>
    %127 = vector.extract_strided_slice %126 {offsets = [0, 0], sizes = [16, 64], strides = [1, 1]} : vector<16x384xf32> to vector<16x64xf32>
    %128 = arith.truncf %127 : vector<16x64xf32> to vector<16x64xbf16>
    %129 = vector.shape_cast %128 : vector<16x64xbf16> to vector<16x4x16xbf16>
    %130 = tpu.transpose %129, [1, 0, 2] : vector<16x4x16xbf16> -> vector<4x16x16xbf16>
    %131 = vector.extract_strided_slice %126 {offsets = [0, 128], sizes = [16, 64], strides = [1, 1]} : vector<16x384xf32> to vector<16x64xf32>
    %132 = arith.truncf %131 : vector<16x64xf32> to vector<16x64xbf16>
    %133 = vector.shape_cast %132 : vector<16x64xbf16> to vector<16x4x16xbf16>
    %134 = tpu.transpose %133, [1, 0, 2] : vector<16x4x16xbf16> -> vector<4x16x16xbf16>
    %135 = vector.extract_strided_slice %126 {offsets = [0, 256], sizes = [16, 64], strides = [1, 1]} : vector<16x384xf32> to vector<16x64xf32>
    %136 = arith.truncf %135 : vector<16x64xf32> to vector<16x64xbf16>
    %137 = vector.shape_cast %136 : vector<16x64xbf16> to vector<16x4x16xbf16>
    %138 = tpu.transpose %137, [1, 0, 2] : vector<16x4x16xbf16> -> vector<4x16x16xbf16>
    "tpu.trace_start"() <{level = 10 : i32, message = "hqd,hkd->hqk"}> : () -> ()
    %cst_60 = arith.constant dense<0.000000e+00> : vector<4x16x16xf32>
    %139 = tpu.matmul %130, %134, %cst_60 {dimension_numbers = #tpu.dot_dimension_numbers<[2], [2], [1], [1], [0, 0, 0, 1, 1, 1], [0], [0]>} : vector<4x16x16xbf16>, vector<4x16x16xbf16>, vector<4x16x16xf32> -> vector<4x16x16xf32>
    "tpu.trace_stop"() : () -> ()
    %140 = vector.shape_cast %8 : vector<16x16xf32> to vector<1x16x16xf32>
    %141 = vector.broadcast %140 : vector<1x16x16xf32> to vector<4x16x16xf32>
    %142 = arith.addf %139, %141 : vector<4x16x16xf32>
    %cst_61 = arith.constant dense<0xFF800000> : vector<4x16xf32>
    %143 = vector.multi_reduction <maximumf>, %142, %cst_61 [2] : vector<4x16x16xf32> to vector<4x16xf32>
    %144 = vector.shape_cast %143 : vector<4x16xf32> to vector<4x16x1xf32>
    %145 = vector.broadcast %144 : vector<4x16x1xf32> to vector<4x16x16xf32>
    %146 = arith.subf %142, %145 : vector<4x16x16xf32>
    %147 = math.exp %146 : vector<4x16x16xf32>
    %cst_62 = arith.constant dense<0.000000e+00> : vector<4x16xf32>
    %148 = vector.multi_reduction <add>, %147, %cst_62 [2] : vector<4x16x16xf32> to vector<4x16xf32>
    %149 = vector.shape_cast %148 : vector<4x16xf32> to vector<4x16x1xf32>
    %150 = tpu.reciprocal %149 {approx = true} : vector<4x16x1xf32> -> vector<4x16x1xf32>
    %151 = vector.broadcast %150 : vector<4x16x1xf32> to vector<4x16x16xf32>
    %152 = arith.mulf %147, %151 : vector<4x16x16xf32>
    %153 = arith.truncf %152 : vector<4x16x16xf32> to vector<4x16x16xbf16>
    "tpu.trace_start"() <{level = 10 : i32, message = "hqk,hkd->hqd"}> : () -> ()
    %cst_63 = arith.constant dense<0.000000e+00> : vector<4x16x16xf32>
    %154 = tpu.matmul %153, %138, %cst_63 {dimension_numbers = #tpu.dot_dimension_numbers<[2], [1], [1], [2], [0, 0, 0, 1, 1, 2], [0], [0]>} : vector<4x16x16xbf16>, vector<4x16x16xbf16>, vector<4x16x16xf32> -> vector<4x16x16xf32>
    "tpu.trace_stop"() : () -> ()
    %155 = tpu.transpose %154, [1, 0, 2] : vector<4x16x16xf32> -> vector<16x4x16xf32>
    %156 = vector.shape_cast %155 : vector<16x4x16xf32> to vector<16x64xf32>
    %157 = arith.truncf %156 : vector<16x64xf32> to vector<16x64xbf16>
    %c1_64 = arith.constant 1 : index
    %c0_65 = arith.constant 0 : index
    %c0_66 = arith.constant 0 : index
    %158 = vector.load %arg4[%c1_64, %c0_65, %c0_66] : memref<2x64x64xbf16, #tpu.memory_space<vmem>>, vector<1x64x64xbf16>
    %159 = vector.shape_cast %158 : vector<1x64x64xbf16> to vector<64x64xbf16>
    %cst_67 = arith.constant dense<0.000000e+00> : vector<16x64xf32>
    %160 = tpu.matmul %157, %159, %cst_67 {dimension_numbers = #tpu.dot_dimension_numbers<[1], [0], [0], [1], [0, 0, 1, 1], [], []>} : vector<16x64xbf16>, vector<64x64xbf16>, vector<16x64xf32> -> vector<16x64xf32>
    %c1_68 = arith.constant 1 : index
    %c0_69 = arith.constant 0 : index
    %c0_70 = arith.constant 0 : index
    %161 = vector.load %arg5[%c1_68, %c0_69, %c0_70] : memref<2x1x64xf32, #tpu.memory_space<vmem>>, vector<1x1x64xf32>
    %162 = vector.shape_cast %161 : vector<1x1x64xf32> to vector<1x64xf32>
    %163 = vector.broadcast %162 : vector<1x64xf32> to vector<16x64xf32>
    %164 = arith.addf %160, %163 : vector<16x64xf32>
    %165 = arith.addf %164, %122 : vector<16x64xf32>
    %c1_71 = arith.constant 1 : index
    %c0_72 = arith.constant 0 : index
    %c0_73 = arith.constant 0 : index
    %166 = vector.load %arg10[%c1_71, %c0_72, %c0_73] : memref<2x1x64xf32, #tpu.memory_space<vmem>>, vector<1x1x64xf32>
    %167 = vector.shape_cast %166 : vector<1x1x64xf32> to vector<1x64xf32>
    %c1_74 = arith.constant 1 : index
    %c0_75 = arith.constant 0 : index
    %c0_76 = arith.constant 0 : index
    %168 = vector.load %arg11[%c1_74, %c0_75, %c0_76] : memref<2x1x64xf32, #tpu.memory_space<vmem>>, vector<1x1x64xf32>
    %169 = vector.shape_cast %168 : vector<1x1x64xf32> to vector<1x64xf32>
    %cst_77 = arith.constant dense<0.000000e+00> : vector<16xf32>
    %170 = vector.multi_reduction <add>, %165, %cst_77 [1] : vector<16x64xf32> to vector<16xf32>
    %171 = vector.shape_cast %170 : vector<16xf32> to vector<16x1xf32>
    %cst_78 = arith.constant 6.400000e+01 : f32
    %172 = vector.broadcast %cst_78 : f32 to vector<16x1xf32>
    %173 = arith.divf %171, %172 : vector<16x1xf32>
    %174 = arith.mulf %165, %165 : vector<16x64xf32>
    %cst_79 = arith.constant dense<0.000000e+00> : vector<16xf32>
    %175 = vector.multi_reduction <add>, %174, %cst_79 [1] : vector<16x64xf32> to vector<16xf32>
    %176 = vector.shape_cast %175 : vector<16xf32> to vector<16x1xf32>
    %cst_80 = arith.constant 6.400000e+01 : f32
    %177 = vector.broadcast %cst_80 : f32 to vector<16x1xf32>
    %178 = arith.divf %176, %177 : vector<16x1xf32>
    %179 = vector.broadcast %173 : vector<16x1xf32> to vector<16x64xf32>
    %180 = arith.subf %165, %179 : vector<16x64xf32>
    %181 = arith.mulf %173, %173 : vector<16x1xf32>
    %182 = arith.subf %178, %181 : vector<16x1xf32>
    %cst_81 = arith.constant 9.99999974E-6 : f32
    %183 = vector.broadcast %cst_81 : f32 to vector<16x1xf32>
    %184 = arith.addf %182, %183 : vector<16x1xf32>
    %185 = math.rsqrt %184 : vector<16x1xf32>
    %186 = vector.broadcast %185 : vector<16x1xf32> to vector<16x64xf32>
    %187 = arith.mulf %180, %186 : vector<16x64xf32>
    %188 = vector.broadcast %167 : vector<1x64xf32> to vector<16x64xf32>
    %189 = arith.mulf %187, %188 : vector<16x64xf32>
    %190 = vector.broadcast %169 : vector<1x64xf32> to vector<16x64xf32>
    %191 = arith.addf %189, %190 : vector<16x64xf32>
    %192 = arith.truncf %191 : vector<16x64xf32> to vector<16x64xbf16>
    %c1_82 = arith.constant 1 : index
    %c0_83 = arith.constant 0 : index
    %c0_84 = arith.constant 0 : index
    %193 = vector.load %arg6[%c1_82, %c0_83, %c0_84] : memref<2x64x256xbf16, #tpu.memory_space<vmem>>, vector<1x64x256xbf16>
    %194 = vector.shape_cast %193 : vector<1x64x256xbf16> to vector<64x256xbf16>
    %cst_85 = arith.constant dense<0.000000e+00> : vector<16x256xf32>
    %195 = tpu.matmul %192, %194, %cst_85 {dimension_numbers = #tpu.dot_dimension_numbers<[1], [0], [0], [1], [0, 0, 1, 1], [], []>} : vector<16x64xbf16>, vector<64x256xbf16>, vector<16x256xf32> -> vector<16x256xf32>
    %c1_86 = arith.constant 1 : index
    %c0_87 = arith.constant 0 : index
    %c0_88 = arith.constant 0 : index
    %196 = vector.load %arg7[%c1_86, %c0_87, %c0_88] : memref<2x1x256xf32, #tpu.memory_space<vmem>>, vector<1x1x256xf32>
    %197 = vector.shape_cast %196 : vector<1x1x256xf32> to vector<1x256xf32>
    %198 = vector.broadcast %197 : vector<1x256xf32> to vector<16x256xf32>
    %199 = arith.addf %195, %198 : vector<16x256xf32>
    %cst_89 = arith.constant 0.000000e+00 : f32
    %200 = vector.broadcast %cst_89 : f32 to vector<16x256xf32>
    %201 = arith.maximumf %199, %200 : vector<16x256xf32>
    %202 = arith.truncf %201 : vector<16x256xf32> to vector<16x256xbf16>
    %c1_90 = arith.constant 1 : index
    %c0_91 = arith.constant 0 : index
    %c0_92 = arith.constant 0 : index
    %203 = vector.load %arg8[%c1_90, %c0_91, %c0_92] : memref<2x256x64xbf16, #tpu.memory_space<vmem>>, vector<1x256x64xbf16>
    %204 = vector.shape_cast %203 : vector<1x256x64xbf16> to vector<256x64xbf16>
    %cst_93 = arith.constant dense<0.000000e+00> : vector<16x64xf32>
    %205 = tpu.matmul %202, %204, %cst_93 {dimension_numbers = #tpu.dot_dimension_numbers<[1], [0], [0], [1], [0, 0, 1, 1], [], []>} : vector<16x256xbf16>, vector<256x64xbf16>, vector<16x64xf32> -> vector<16x64xf32>
    %c1_94 = arith.constant 1 : index
    %c0_95 = arith.constant 0 : index
    %c0_96 = arith.constant 0 : index
    %206 = vector.load %arg9[%c1_94, %c0_95, %c0_96] : memref<2x1x64xf32, #tpu.memory_space<vmem>>, vector<1x1x64xf32>
    %207 = vector.shape_cast %206 : vector<1x1x64xf32> to vector<1x64xf32>
    %208 = vector.broadcast %207 : vector<1x64xf32> to vector<16x64xf32>
    %209 = arith.addf %205, %208 : vector<16x64xf32>
    %210 = arith.addf %209, %191 : vector<16x64xf32>
    %c1_97 = arith.constant 1 : index
    %c0_98 = arith.constant 0 : index
    %c0_99 = arith.constant 0 : index
    %211 = vector.load %arg12[%c1_97, %c0_98, %c0_99] : memref<2x1x64xf32, #tpu.memory_space<vmem>>, vector<1x1x64xf32>
    %212 = vector.shape_cast %211 : vector<1x1x64xf32> to vector<1x64xf32>
    %c1_100 = arith.constant 1 : index
    %c0_101 = arith.constant 0 : index
    %c0_102 = arith.constant 0 : index
    %213 = vector.load %arg13[%c1_100, %c0_101, %c0_102] : memref<2x1x64xf32, #tpu.memory_space<vmem>>, vector<1x1x64xf32>
    %214 = vector.shape_cast %213 : vector<1x1x64xf32> to vector<1x64xf32>
    %cst_103 = arith.constant dense<0.000000e+00> : vector<16xf32>
    %215 = vector.multi_reduction <add>, %210, %cst_103 [1] : vector<16x64xf32> to vector<16xf32>
    %216 = vector.shape_cast %215 : vector<16xf32> to vector<16x1xf32>
    %cst_104 = arith.constant 6.400000e+01 : f32
    %217 = vector.broadcast %cst_104 : f32 to vector<16x1xf32>
    %218 = arith.divf %216, %217 : vector<16x1xf32>
    %219 = arith.mulf %210, %210 : vector<16x64xf32>
    %cst_105 = arith.constant dense<0.000000e+00> : vector<16xf32>
    %220 = vector.multi_reduction <add>, %219, %cst_105 [1] : vector<16x64xf32> to vector<16xf32>
    %221 = vector.shape_cast %220 : vector<16xf32> to vector<16x1xf32>
    %cst_106 = arith.constant 6.400000e+01 : f32
    %222 = vector.broadcast %cst_106 : f32 to vector<16x1xf32>
    %223 = arith.divf %221, %222 : vector<16x1xf32>
    %224 = vector.broadcast %218 : vector<16x1xf32> to vector<16x64xf32>
    %225 = arith.subf %210, %224 : vector<16x64xf32>
    %226 = arith.mulf %218, %218 : vector<16x1xf32>
    %227 = arith.subf %223, %226 : vector<16x1xf32>
    %cst_107 = arith.constant 9.99999974E-6 : f32
    %228 = vector.broadcast %cst_107 : f32 to vector<16x1xf32>
    %229 = arith.addf %227, %228 : vector<16x1xf32>
    %230 = math.rsqrt %229 : vector<16x1xf32>
    %231 = vector.broadcast %230 : vector<16x1xf32> to vector<16x64xf32>
    %232 = arith.mulf %225, %231 : vector<16x64xf32>
    %233 = vector.broadcast %212 : vector<1x64xf32> to vector<16x64xf32>
    %234 = arith.mulf %232, %233 : vector<16x64xf32>
    %235 = vector.broadcast %214 : vector<1x64xf32> to vector<16x64xf32>
    %236 = arith.addf %234, %235 : vector<16x64xf32>
    %c0_108 = arith.constant 0 : index
    %c0_109 = arith.constant 0 : index
    %237 = vector.load %arg14[%c0_108, %c0_109] : memref<16x64xf32, #tpu.memory_space<vmem>>, vector<16x64xf32>
    tpu.vector_store %arg14[%c0_108, %c0_109], %236 {strides = array<i32>} : memref<16x64xf32, #tpu.memory_space<vmem>>, vector<16x64xf32>,
    return
  }
}

</mosaic_0001>

<bundles_post_ra>
// kernel: gpt2_forward.3
= control target key start
LH: loop header
LB: loop body
LE: loop exit
PB: predicated region body
PF: predicated region fallthrough
CT: control target
= control target key end

     0   :  { %8 = vsyncpa [#allocation4], 0  ;;  %s879_s0 = inlined_call_operand.vmem [shape: f32[16,64], index: 0, kind: input, shape index: {}]   ;;  %s880_s1 = inlined_call_operand.vmem [shape: bf16[64,1024], index: 1, kind: input, shape index: {}]   ;;  %s881_s2 = inlined_call_operand.vmem [shape: f32[1,1024], index: 2, kind: input, shape index: {}]   ;;  %s882_s3 = inlined_call_operand.hbm [shape: f32[16,1024], index: 3, kind: output, shape index: {}]  }
   0x1   :  { %10 = vsyncpa [#allocation4 + $0x1], 0  ;;  %s740_s12 = smov 0   ;;  %s742_s13 = smov 0  }
   0x2   :  { %s744_s14 = smov 0   ;;  %s746_s15 = smov 0  }
   0x3 LB: > { %s761_s16 = sadd.s32 4294967295, %s713_s15   ;;  %s551_s17 = sadd.s32 4294967294, %s713_s15   ;;  %s713_s15 = sphi %s746_s15, %s888_s15   ;;  %s709_s14 = sphi %s744_s14, %s887_s14   ;;  %s705_s13 = sphi %s742_s13, %s886_s13   ;;  %s701_s12 = sphi %s740_s12, %s885_s12  }
   0x4   : > { %s765_s18 = sadd.s32 1, %s713_s15   ;;  %s44_s19 = sadd.s32 1, %s709_s14 }
   0x5   : > { %s41_s20 = ssub.s32 %s713_s15, %s765_s18  ;;  %p51_p0 = scmp.ne.s32.totalorder %s709_s14, %s705_s13 }
   0x6   : > { %p42_p1 = scmp.eq.s32.totalorder %s41_s20, 0  ;;  %p52_p2 = scmp.eq.s32.totalorder %s713_s15, 0 }
   0x7   : > { %p107_p3 = scmp.eq.s32.totalorder %s761_s16, 1  ;;  %p112_p4 = scmp.ne.s32.totalorder %s705_s13, %s701_s12 }
   0x8   : > { %s777_s21 = scalar_select %p42_p1, %s709_s14, %s44_s19  }
   0x9   : > { %p53_p5 = por %p52_p2, %p51_p0  ;;  %p779_p6 = por %p107_p3, %p51_p0 }
   0xa   : > { %p113_p7 = scmp.eq.s32.totalorder %s551_s17, 1  ;;  %p553_p9 = scmp.ge.s32.totalorder %s713_s15, 2 }
   0xc   : > { %p783_p8 = por %p113_p7, %p112_p4  ;;  %132 = sbr.rel (%p553_p9) target bundleno = 29 (0x1d), region = 20 }
  0x11   : > { %135 = sbr.rel (!%p53_p5) target bundleno = 29 (0x1d), region = 24  ;;  %s137_s24 = sand.u32 (%p53_p5), 1, %s709_s14  }
  0x12   : > { %s584_s25 = sshll.u32 (%p53_p5), %s713_s15, 4  ;;  %s554_s26 = sshll.u32 (%p53_p5), %s137_s24, 7 }
  0x13   : > { %s795_s29 = scalar_lea.vmem (%p53_p5), %s880_s1, %s584_s25  ;;  %s139_s30 = scalar_lea.vmem (%p53_p5), [#allocation2], %s554_s26 }
  0x14   : > { %v155_v0 = vld [vmem:[%s795_s29] sm:$0xff] (%p53_p5)  ;;  %v157_v1 = vld [vmem:[%s795_s29 + $0x8] sm:$0xff] (%p53_p5) }
  0x15   : > { %v159_v2 = vld [vmem:[%s795_s29 + $0x20] sm:$0xff] (%p53_p5)  ;;  %156 = vst [vmem:[%s139_s30] sm:$0xff] (%p53_p5), %v155_v0  ;;  %158 = vst [vmem:[%s139_s30 + $0x8] sm:$0xff] (%p53_p5), %v157_v1  ;;  %v161_v3 = vld [vmem:[%s795_s29 + $0x28] sm:$0xff] (%p53_p5) }
  0x16   : > { %160 = vst [vmem:[%s139_s30 + $0x10] sm:$0xff] %v159_v2  ;;  %v163_v4 = vld [vmem:[%s795_s29 + $0x40] sm:$0xff]  ;;  %v165_v5 = vld [vmem:[%s795_s29 + $0x48] sm:$0xff]  ;;  %162 = vst [vmem:[%s139_s30 + $0x18] sm:$0xff] %v161_v3 }
  0x17   : > { %164 = vst [vmem:[%s139_s30 + $0x20] sm:$0xff] %v163_v4  ;;  %166 = vst [vmem:[%s139_s30 + $0x28] sm:$0xff] %v165_v5  ;;  %v167_v6 = vld [vmem:[%s795_s29 + $0x60] sm:$0xff]  ;;  %v169_v7 = vld [vmem:[%s795_s29 + $0x68] sm:$0xff] }
  0x18   : > { %v171_v8 = vld [vmem:[%s795_s29 + $0x80] sm:$0xff]  ;;  %168 = vst [vmem:[%s139_s30 + $0x30] sm:$0xff] %v167_v6  ;;  %170 = vst [vmem:[%s139_s30 + $0x38] sm:$0xff] %v169_v7  ;;  %v173_v9 = vld [vmem:[%s795_s29 + $0x88] sm:$0xff] }
  0x19   : > { %172 = vst [vmem:[%s139_s30 + $0x40] sm:$0xff] %v171_v8  ;;  %v175_v10 = vld [vmem:[%s795_s29 + $0xa0] sm:$0xff]  ;;  %v177_v11 = vld [vmem:[%s795_s29 + $0xa8] sm:$0xff]  ;;  %174 = vst [vmem:[%s139_s30 + $0x48] sm:$0xff] %v173_v9 }
  0x1a   : > { %176 = vst [vmem:[%s139_s30 + $0x50] sm:$0xff] %v175_v10  ;;  %178 = vst [vmem:[%s139_s30 + $0x58] sm:$0xff] %v177_v11  ;;  %v179_v12 = vld [vmem:[%s795_s29 + $0xc0] sm:$0xff]  ;;  %v181_v13 = vld [vmem:[%s795_s29 + $0xc8] sm:$0xff] }
  0x1b   : > { %v183_v14 = vld [vmem:[%s795_s29 + $0xe0] sm:$0xff]  ;;  %180 = vst [vmem:[%s139_s30 + $0x60] sm:$0xff] %v179_v12  ;;  %182 = vst [vmem:[%s139_s30 + $0x68] sm:$0xff] %v181_v13  ;;  %v185_v15 = vld [vmem:[%s795_s29 + $0xe8] sm:$0xff] }
  0x1c   : > { %184 = vst [vmem:[%s139_s30 + $0x70] sm:$0xff] %v183_v14  ;;  %186 = vst [vmem:[%s139_s30 + $0x78] sm:$0xff] %v185_v15 }
  0x1d PF: > { %p557_p10 = scmp.ge.s32.totalorder %s713_s15, 1  ;;  %p199_p11 = scmp.lt.s32.totalorder %s713_s15, 3 }
  0x1f   : > { %p200_p12 = pnand %p557_p10, %p199_p11 }
  0x20   : > { %s816_s4 = sand.u32 (!%p200_p12), 1, %s705_s13   ;;  %s560_s11 = sshll.u32 (!%p200_p12), %s761_s16, 2 }
  0x21   : > { %203 = sbr.rel (%p200_p12) target bundleno = 272 (0x110), region = 51  ;;  %s558_s5 = sshll.u32 (!%p200_p12), %s816_s4, 7 }
  0x22   : > { %s208_s6 = scalar_lea.vmem (!%p200_p12), [#allocation2], %s558_s5  ;;  %p235_p13 = scmp.lt.s32.totalorder (!%p200_p12), %s560_s11, 7 }
  0x23   : > { %s559_s24 = sshll.u32 (!%p200_p12), %s816_s4, 6  ;;  %s585_s27 = sshll.u32 (!%p200_p12), %s761_s16, 9 }
  0x24   : > { %s232_s25 = scalar_lea.vmem (!%p200_p12), [#allocation3], %s559_s24  ;;  %s836_s30 = scalar_lea.hbm (!%p200_p12), %s882_s3, %s585_s27 }
  0x25   : > { %s474_s26 = sshll.u32 (!%p200_p12), %s232_s25, 4  ;;  %s461_s16 = scalar_lea.sflag (!%p200_p12), [#allocation4], %s816_s4  ;;  %s831_s26 = int_to_ptr.vmem [resolvable:$true] %s474_s26 }
  0x26   : > { %v715_v16 = vmov 0   ;;  %v629_v17 = vld [vmem:[%s208_s6 + $0x64] ss:$16 sps:$4 sm:$0xff]   ;;  %v631_v18 = vld [vmem:[%s208_s6 + $0x6c] ss:$16 sps:$4 sm:$0xff]   ;;  %vm362_vm0 = vcmask 523264   ;;  %v262_v36 = vlaneseq }
  0x27   : > { %398 = vmatprep.mubr.bf16.mxu0 %v715_v16  ;;  %441 = vmatprep.mubr.bf16.mxu1 %v715_v16  ;;  %v633_v19 = vld [vmem:[%s208_s6 + $0x60] ss:$16 sps:$4 sm:$0xff]   ;;  %v634_v20 = vld [vmem:[%s208_s6 + $0x68] ss:$16 sps:$4 sm:$0xff]   ;;  %v635_v21 = vld [vmem:[%s208_s6 + $0x44] ss:$16 sps:$4 sm:$0xff]  }
  0x28   : > { %374 = vmatprep.subr.bf16.mxu0 %v629_v17  ;;  %417 = vmatprep.subr.bf16.mxu1 %v631_v18  ;;  %v637_v22 = vld [vmem:[%s208_s6 + $0x4c] ss:$16 sps:$4 sm:$0xff]   ;;  %v639_v23 = vld [vmem:[%s208_s6 + $0x40] ss:$16 sps:$4 sm:$0xff]   ;;  %v640_v24 = vld [vmem:[%s208_s6 + $0x48] ss:$16 sps:$4 sm:$0xff]  }
  0x29   : > { %375 = vmatpush1.bf16.msra.mxu0 %v633_v19  ;;  %418 = vmatpush1.bf16.msra.mxu1 %v634_v20  ;;  %v641_v25 = vld [vmem:[%s208_s6 + $0x24] ss:$16 sps:$4 sm:$0xff]   ;;  %v643_v26 = vld [vmem:[%s208_s6 + $0x2c] ss:$16 sps:$4 sm:$0xff]   ;;  %v645_v27 = vld [vmem:[%s208_s6 + $0x20] ss:$16 sps:$4 sm:$0xff]  }
  0x2a   : > { %376 = vmatprep.subr.bf16.mxu0 %v635_v21  ;;  %419 = vmatprep.subr.bf16.mxu1 %v637_v22  ;;  %v646_v28 = vld [vmem:[%s208_s6 + $0x28] ss:$16 sps:$4 sm:$0xff]   ;;  %v647_v29 = vld [vmem:[%s208_s6 + $0x4] ss:$16 sps:$4 sm:$0xff]   ;;  %v649_v30 = vld [vmem:[%s208_s6 + $0xc] ss:$16 sps:$4 sm:$0xff]  }
  0x2b   : > { %v241_v31 = vld [vmem:[%s879_s0] sm:$0xff]  ;;  %v652_v33 = vld [vmem:[%s208_s6 + $0x8] ss:$16 sps:$4 sm:$0xff]   ;;  %s890_s11 = smov (!%p235_p13, %s560_s11), 7  ;;  %v263_v37 = vshrl.u32 %v262_v36, 7  ;;  %s653_s5 = scalar_lea.vmem %s831_s26, 1024 }
  0x2c   : > { %v651_v32 = vld [vmem:[%s208_s6] ss:$16 sps:$4 sm:$0xff]   ;;  %v242_v34 = vld [vmem:[%s879_s0 + $0x8] sm:$0xff]  ;;  %s237_s20 = scalar_lea.vmem %s881_s2, %s890_s11  ;;  %p654_p0 = scmp.ne.s32.totalorder %s831_s26, %s653_s5 }
  0x2d   : > { %377 = vmatpush1.bf16.msra.mxu0 %v639_v23  ;;  %420 = vmatpush1.bf16.msra.mxu1 %v640_v24  ;;  %v243_v35 = vpack.c.bf16 %v242_v34, %v241_v31  ;;  %v264_v38 = vsub.s32 0, %v263_v37  ;;  %v272_v39 = vsub.s32 2, %v263_v37  ;;  %v260_v40 = vld [vmem:[%s237_s20] sm:$0xf]  ;;  %v268_v41 = vsub.s32 1, %v263_v37  ;;  %s716_s6 = smov [#allocation3]  }
  0x2e   : > { %378 = vmatprep.subr.bf16.mxu0 %v641_v25  ;;  %421 = vmatprep.subr.bf16.mxu1 %v643_v26  ;;  %v276_v42 = vsub.s32 3, %v263_v37  ;;  %p655_p1 = pnand %p654_p0, %p779_p6  ;;  %s657_s7 = sshll.u32 %s716_s6, 4  ;;  %s658_s7 = int_to_ptr.vmem [resolvable:$false] %s657_s7 }
  0x2f   : > { %v265_v43 = vrot.slane %v260_v40, %v264_v38  ;;  %v273_v44 = vrot.slane %v260_v40, %v272_v39  ;;  %v269_v45 = vrot.slane %v260_v40, %v268_v41  ;;  %s659_s8 = scalar_lea.vmem %s658_s7, 2048  ;;  %p660_p3 = scmp.lt.s32.totalorder %s831_s26, %s658_s7 }
  0x30   : > { %v277_v46 = vrot.slane %v260_v40, %v276_v42  ;;  %p656_p2 = pneg %p655_p1  ;;  %p661_p4 = scmp.lt.s32.totalorder %s659_s8, %s653_s5 }
  0x31   : > { %379 = vmatpush1.bf16.msra.mxu0 %v645_v27  ;;  %422 = vmatpush1.bf16.msra.mxu1 %v646_v28 }
  0x32   : > { %380 = vmatprep.subr.bf16.mxu0 %v647_v29  ;;  %423 = vmatprep.subr.bf16.mxu1 %v649_v30  ;;  %p662_p5 = por %p661_p4, %p660_p3 }
  0x34   : > { %p663_p7 = pnand %p662_p5, %p656_p2 }
  0x35   : > { %381 = vmatpush1.bf16.msra.mxu0 %v651_v32  ;;  %424 = vmatpush1.bf16.msra.mxu1 %v652_v33 }
  0x38   : > { %577 = vmatmul.mubr.msk.bf16.vlgmr.msra.gmra.mxu0 %vm362_vm0, %v243_v35  ;;  %578 = vmatmul.mubr.msk.bf16.vlgmr.msra.gmra.mxu1 %vm362_vm0, %v243_v35 }
  0xf8   : > { %v400_v47 = vpop.f32.mrf.mxu0  ;;  %v443_v48 = vpop.f32.mrf.mxu1 }
  0xf9   : > { %v401_v49 = vadd.f32 %v400_v47, %v265_v43  ;;  %v444_v50 = vadd.f32 %v443_v48, %v273_v44 }
  0xfa   : > { %v402_v51 = vpop.f32.mrf.mxu0  ;;  %v445_v52 = vpop.f32.mrf.mxu1 }
  0xfb   : > { %452 = vst [vmem:[%s232_s25] sm:$0xff] %v401_v49  ;;  %454 = vst [vmem:[%s232_s25 + $0x10] sm:$0xff] %v444_v50  ;;  %v403_v53 = vadd.f32 %v402_v51, %v269_v45  ;;  %v446_v54 = vadd.f32 %v445_v52, %v277_v46 }
  0xfc   : > { %v404_v55 = vpop.f32.mrf.mxu0  ;;  %v447_v56 = vpop.f32.mrf.mxu1 }
  0xfd   : > { %453 = vst [vmem:[%s232_s25 + $0x8] sm:$0xff] %v403_v53  ;;  %455 = vst [vmem:[%s232_s25 + $0x18] sm:$0xff] %v446_v54  ;;  %v405_v57 = vadd.f32 %v404_v55, %v265_v43  ;;  %v448_v58 = vadd.f32 %v447_v56, %v273_v44 }
  0xfe   : > { %v406_v59 = vpop.f32.mrf.mxu0  ;;  %v449_v60 = vpop.f32.mrf.mxu1 }
  0xff   : > { %456 = vst [vmem:[%s232_s25 + $0x20] sm:$0xff] %v405_v57  ;;  %458 = vst [vmem:[%s232_s25 + $0x30] sm:$0xff] %v448_v58  ;;  %v407_v61 = vadd.f32 %v406_v59, %v269_v45  ;;  %v450_v62 = vadd.f32 %v449_v60, %v277_v46 }
 0x101   : > { %457 = vst [vmem:[%s232_s25 + $0x28] sm:$0xff] %v407_v61  ;;  %459 = vst [vmem:[%s232_s25 + $0x38] sm:$0xff] %v450_v62 }
 0x102   : > { %666 = shalt.err (!%p663_p7)
}
 0x103   : > { %s667_s9 = scalar_lea.hbm %s836_s30, 1024  ;;  %s671_s17 = scalar_lea.hbm %s882_s3, 2048 }
 0x104   : > { %p668_p10 = scmp.ne.s32.totalorder %s836_s30, %s667_s9  ;;  %p672_p13 = scmp.lt.s32.totalorder %s836_s30, %s882_s3 }
 0x105   : > { %p673_p0 = scmp.lt.s32.totalorder %s671_s17, %s667_s9 }
 0x106   : > { %p669_p11 = pnand %p668_p10, %p779_p6 }
 0x107   : > { %p674_p1 = por %p673_p0, %p672_p13 }
 0x108   : > { %p670_p12 = pneg %p669_p11 }
 0x10a   : > { %p675_p2 = pnand %p674_p1, %p670_p12 }
 0x10c   : > { %678 = shalt.err (!%p675_p2)
}
 0x10d   : > { %s717_s24 = smov 512   ;;  %s718_s25 = smov 1024  }
 0x10e   : > { %s719_s27 = smov 32  }
 0x10f   : > { %586 = dma.vmem_to_hbm [thread:$0]  (%p779_p6), %s831_s26, 1024, %s836_s30, %s461_s16, %s717_s24, %s718_s25, %s719_s27  }
 0x110 PF: > { %s489_s28 = sand.u32 1, %s701_s12   ;;  %p589_p3 = pnand %p553_p9, %p783_p8 }
 0x111   : > { %s490_s29 = scalar_lea.sflag [#allocation4], %s489_s28 }
 0x112   : > { %p590_p4 = pneg %p589_p3 }
 0x114   : > { %696 = dma.done.wait (%p590_p4), %s490_s29, 1024  }
 0x115   : > { %698 = vsyncadd (%p590_p4), %s490_s29, 4294966272  ;;  %p13_p5 = scmp.ge.s32.totalorder %s765_s18, 4   ;;  %s885_s12 = smov %s705_s13 }
 0x116   : > { %s886_s13 = smov %s709_s14  ;;  %s887_s14 = smov %s777_s21 }
 0x117   : > { %s888_s15 = smov %s765_s18  ;;  %15 = sbr.rel (!%p13_p5) target bundleno = 3 (0x3), region = 98 }
 0x11c   :  { %495 = vsyncpa [#allocation4], 1 }
 0x11d   :  { %497 = vsyncpa [#allocation4 + $0x1], 1 }

// kernel: gpt2_forward.2
= control target key start
LH: loop header
LB: loop body
LE: loop exit
PB: predicated region body
PF: predicated region fallthrough
CT: control target
= control target key end

     0   :  { %v5849_v0 = vmov 0   ;;  %s5853_s23 = smov 80   ;;  %s5854_s24 = smov 112   ;;  %s7274_s0 = inlined_call_operand.vmem [shape: s32[16,1], index: 0, kind: input, shape index: {}]   ;;  %s7275_s2 = inlined_call_operand.vmem [shape: f32[1024,64], index: 2, kind: input, shape index: {}]   ;;  %s7276_s3 = inlined_call_operand.vmem [shape: bf16[2,64,384], index: 3, kind: input, shape index: {}]   ;;  %s7277_s1 = inlined_call_operand.vmem [shape: f32[16,16], index: 1, kind: input, shape index: {}]   ;;  %s7278_s4 = inlined_call_operand.vmem [shape: bf16[2,64,64], index: 4, kind: input, shape index: {}]   ;;  %s7279_s5 = inlined_call_operand.vmem [shape: f32[2,1,64], index: 5, kind: input, shape index: {}]   ;;  %s7280_s6 = inlined_call_operand.vmem [shape: bf16[2,64,256], index: 6, kind: input, shape index: {}]   ;;  %s7281_s8 = inlined_call_operand.vmem [shape: bf16[2,256,64], index: 8, kind: input, shape index: {}]   ;;  %s7282_s10 = inlined_call_operand.vmem [shape: f32[2,1,64], index: 10, kind: input, shape index: {}]   ;;  %s7283_s11 = inlined_call_operand.vmem [shape: f32[2,1,64], index: 11, kind: input, shape index: {}]   ;;  %s7284_s7 = inlined_call_operand.vmem [shape: f32[2,1,256], index: 7, kind: input, shape index: {}]   ;;  %s7285_s9 = inlined_call_operand.vmem [shape: f32[2,1,64], index: 9, kind: input, shape index: {}]   ;;  %s7286_s12 = inlined_call_operand.vmem [shape: f32[2,1,64], index: 12, kind: input, shape index: {}]   ;;  %s7287_s13 = inlined_call_operand.vmem [shape: f32[2,1,64], index: 13, kind: input, shape index: {}]   ;;  %s7288_s14 = inlined_call_operand.vmem [shape: f32[16,64], index: 14, kind: output, shape index: {}]  }
   0x1   :  { %5640 = vset.pattern.permute.xlu0 %v5849_v0  ;;  %v48_v1 = vld [vmem:[%s7274_s0] sm:$0xff]  ;;  %v49_v2 = vld [vmem:[%s7274_s0 + $0x8] sm:$0xff]  ;;  %v144_v3 = vld [vmem:[%s7275_s2 + $0xf8] sm:$0xff]  ;;  %s5855_s0 = smov 96   ;;  %s5858_s20 = smov 32  }
   0x2   :  { %60 = vperm.xlu0 %5640, %v48_v1   ;;  %5236 = vmatprep.subr.mxu0 %v144_v3  ;;  %v176_v4 = vld [vmem:[%s7275_s2 + $0x1f8] sm:$0xff]  ;;  %v143_v7 = vld [vmem:[%s7275_s2 + $0xf0] sm:$0xff]  ;;  %v142_v11 = vld [vmem:[%s7275_s2 + $0xe8] sm:$0xff]  ;;  %s5859_s21 = smov 16   ;;  %s5860_s22 = smov 48  }
   0x3   :  { %v128_v5 = vld [vmem:[%s7275_s2 + $0x78] sm:$0xff]  ;;  %5274 = vmatprep.subr.mxu1 %v176_v4  ;;  %v175_v8 = vld [vmem:[%s7275_s2 + $0x1f0] sm:$0xff]  ;;  %v174_v12 = vld [vmem:[%s7275_s2 + $0x1e8] sm:$0xff] }
   0x4   :  { %v160_v6 = vld [vmem:[%s7275_s2 + $0x178] sm:$0xff]  ;;  %5237 = vmatpush3.msra.mxu0 %v128_v5  ;;  %v127_v9 = vld [vmem:[%s7275_s2 + $0x70] sm:$0xff]  ;;  %v126_v13 = vld [vmem:[%s7275_s2 + $0x68] sm:$0xff] }
   0x5   :  { %5275 = vmatpush3.msra.mxu1 %v160_v6  ;;  %5238 = vmatprep.subr.mxu0 %v143_v7  ;;  %v159_v10 = vld [vmem:[%s7275_s2 + $0x170] sm:$0xff]  ;;  %v158_v14 = vld [vmem:[%s7275_s2 + $0x168] sm:$0xff]  ;;  %v141_v15 = vld [vmem:[%s7275_s2 + $0xe0] sm:$0xff]  ;;  %v50_v6 = vlaneseq }
   0x6   :  { %5276 = vmatprep.subr.mxu1 %v175_v8  ;;  %5239 = vmatpush3.msra.mxu0 %v127_v9  ;;  %v173_v16 = vld [vmem:[%s7275_s2 + $0x1e0] sm:$0xff]  ;;  %v140_v19 = vld [vmem:[%s7275_s2 + $0xd8] sm:$0xff]  ;;  %v139_v23 = vld [vmem:[%s7275_s2 + $0xd0] sm:$0xff] }
   0x7   :  { %63 = vperm.xlu0 %5640, %v49_v2   ;;  %5277 = vmatpush3.msra.mxu1 %v159_v10  ;;  %v125_v17 = vld [vmem:[%s7275_s2 + $0x60] sm:$0xff]  ;;  %v172_v20 = vld [vmem:[%s7275_s2 + $0x1d8] sm:$0xff]  ;;  %v171_v24 = vld [vmem:[%s7275_s2 + $0x1d0] sm:$0xff]  ;;  %v6142_v7 = vand.u32 127, %v50_v6 }
   0x8   :  { %5240 = vmatprep.subr.mxu0 %v142_v11  ;;  %5278 = vmatprep.subr.mxu1 %v174_v12  ;;  %v157_v18 = vld [vmem:[%s7275_s2 + $0x160] sm:$0xff]  ;;  %v124_v21 = vld [vmem:[%s7275_s2 + $0x58] sm:$0xff]  ;;  %v123_v25 = vld [vmem:[%s7275_s2 + $0x50] sm:$0xff] }
   0x9   :  { %5241 = vmatpush3.msra.mxu0 %v126_v13  ;;  %5279 = vmatpush3.msra.mxu1 %v158_v14  ;;  %v156_v22 = vld [vmem:[%s7275_s2 + $0x158] sm:$0xff]  ;;  %v155_v26 = vld [vmem:[%s7275_s2 + $0x150] sm:$0xff]  ;;  %v138_v27 = vld [vmem:[%s7275_s2 + $0xc8] sm:$0xff]  ;;  %v52_v8 = vadd.s32 128, %v6142_v7  ;;  %v54_v9 = vadd.s32 384, %v6142_v7  ;;  %v53_v10 = vadd.s32 256, %v6142_v7 }
   0xa   :  { %5242 = vmatprep.subr.mxu0 %v141_v15  ;;  %5280 = vmatprep.subr.mxu1 %v173_v16  ;;  %v170_v28 = vld [vmem:[%s7275_s2 + $0x1c8] sm:$0xff]  ;;  %v137_v31 = vld [vmem:[%s7275_s2 + $0xc0] sm:$0xff]  ;;  %v136_v35 = vld [vmem:[%s7275_s2 + $0xb8] sm:$0xff]  ;;  %v5850_v14 = vmov 1.0  }
   0xb   :  { %5243 = vmatpush3.msra.mxu0 %v125_v17  ;;  %5281 = vmatpush3.msra.mxu1 %v157_v18  ;;  %v122_v29 = vld [vmem:[%s7275_s2 + $0x48] sm:$0xff]  ;;  %v169_v32 = vld [vmem:[%s7275_s2 + $0x1c0] sm:$0xff]  ;;  %v168_v36 = vld [vmem:[%s7275_s2 + $0x1b8] sm:$0xff] }
   0xc   :  { %5244 = vmatprep.subr.mxu0 %v140_v19  ;;  %5282 = vmatprep.subr.mxu1 %v172_v20  ;;  %v154_v30 = vld [vmem:[%s7275_s2 + $0x148] sm:$0xff]  ;;  %v121_v33 = vld [vmem:[%s7275_s2 + $0x40] sm:$0xff]  ;;  %v120_v37 = vld [vmem:[%s7275_s2 + $0x38] sm:$0xff] }
   0xd   :  { %5245 = vmatpush3.msra.mxu0 %v124_v21  ;;  %5283 = vmatpush3.msra.mxu1 %v156_v22  ;;  %v153_v34 = vld [vmem:[%s7275_s2 + $0x140] sm:$0xff]  ;;  %v152_v38 = vld [vmem:[%s7275_s2 + $0x138] sm:$0xff]  ;;  %v135_v39 = vld [vmem:[%s7275_s2 + $0xb0] sm:$0xff]  ;;  %v6190_v22 = vadd.s32 640, %v6142_v7 }
   0xe   :  { %5246 = vmatprep.subr.mxu0 %v139_v23  ;;  %5284 = vmatprep.subr.mxu1 %v171_v24  ;;  %v167_v40 = vld [vmem:[%s7275_s2 + $0x1b0] sm:$0xff]  ;;  %v134_v43 = vld [vmem:[%s7275_s2 + $0xa8] sm:$0xff]  ;;  %v133_v47 = vld [vmem:[%s7275_s2 + $0xa0] sm:$0xff] }
   0xf   :  { %5247 = vmatpush3.msra.mxu0 %v123_v25  ;;  %5285 = vmatpush3.msra.mxu1 %v155_v26  ;;  %v119_v41 = vld [vmem:[%s7275_s2 + $0x30] sm:$0xff]  ;;  %v166_v44 = vld [vmem:[%s7275_s2 + $0x1a8] sm:$0xff]  ;;  %v165_v48 = vld [vmem:[%s7275_s2 + $0x1a0] sm:$0xff]  ;;  %v6201_v25 = vadd.s32 896, %v6142_v7 }
  0x10   :  { %5248 = vmatprep.subr.mxu0 %v138_v27  ;;  %5286 = vmatprep.subr.mxu1 %v170_v28  ;;  %v151_v42 = vld [vmem:[%s7275_s2 + $0x130] sm:$0xff]  ;;  %v118_v45 = vld [vmem:[%s7275_s2 + $0x28] sm:$0xff]  ;;  %v117_v49 = vld [vmem:[%s7275_s2 + $0x20] sm:$0xff] }
  0x11   :  { %5249 = vmatpush3.msra.mxu0 %v122_v29  ;;  %5287 = vmatpush3.msra.mxu1 %v154_v30  ;;  %v150_v46 = vld [vmem:[%s7275_s2 + $0x128] sm:$0xff]  ;;  %v149_v50 = vld [vmem:[%s7275_s2 + $0x120] sm:$0xff]  ;;  %v132_v51 = vld [vmem:[%s7275_s2 + $0x98] sm:$0xff] }
  0x12   :  { %5250 = vmatprep.subr.mxu0 %v137_v31  ;;  %5288 = vmatprep.subr.mxu1 %v169_v32  ;;  %v164_v52 = vld [vmem:[%s7275_s2 + $0x198] sm:$0xff]  ;;  %v131_v55 = vld [vmem:[%s7275_s2 + $0x90] sm:$0xff]  ;;  %v130_v59 = vld [vmem:[%s7275_s2 + $0x88] sm:$0xff] }
  0x13   :  { %5251 = vmatpush3.msra.mxu0 %v121_v33  ;;  %5289 = vmatpush3.msra.mxu1 %v153_v34  ;;  %v116_v53 = vld [vmem:[%s7275_s2 + $0x18] sm:$0xff]  ;;  %v163_v56 = vld [vmem:[%s7275_s2 + $0x190] sm:$0xff]  ;;  %v162_v60 = vld [vmem:[%s7275_s2 + $0x188] sm:$0xff] }
  0x14   :  { %5252 = vmatprep.subr.mxu0 %v136_v35  ;;  %5290 = vmatprep.subr.mxu1 %v168_v36  ;;  %v148_v54 = vld [vmem:[%s7275_s2 + $0x118] sm:$0xff]  ;;  %v115_v57 = vld [vmem:[%s7275_s2 + $0x10] sm:$0xff]  ;;  %v114_v61 = vld [vmem:[%s7275_s2 + $0x8] sm:$0xff] }
  0x15   :  { %5253 = vmatpush3.msra.mxu0 %v120_v37  ;;  %5291 = vmatpush3.msra.mxu1 %v152_v38  ;;  %v147_v58 = vld [vmem:[%s7275_s2 + $0x110] sm:$0xff]  ;;  %v146_v62 = vld [vmem:[%s7275_s2 + $0x108] sm:$0xff]  ;;  %v129_v63 = vld [vmem:[%s7275_s2 + $0x80] sm:$0xff] }
  0x16   :  { %5254 = vmatprep.subr.mxu0 %v135_v39  ;;  %5292 = vmatprep.subr.mxu1 %v167_v40  ;;  %v161_v1 = vld [vmem:[%s7275_s2 + $0x180] sm:$0xff]  ;;  %v208_v4 = vld [vmem:[%s7275_s2 + $0x2f8] sm:$0xff]  ;;  %v207_v15 = vld [vmem:[%s7275_s2 + $0x2f0] sm:$0xff] }
  0x17   :  { %5255 = vmatpush3.msra.mxu0 %v119_v41  ;;  %5293 = vmatpush3.msra.mxu1 %v151_v42  ;;  %v113_v2 = vld [vmem:[%s7275_s2] sm:$0xff]  ;;  %v240_v5 = vld [vmem:[%s7275_s2 + $0x3f8] sm:$0xff]  ;;  %v239_v16 = vld [vmem:[%s7275_s2 + $0x3f0] sm:$0xff] }
  0x18   :  { %5256 = vmatprep.subr.mxu0 %v134_v43  ;;  %5294 = vmatprep.subr.mxu1 %v166_v44  ;;  %v145_v3 = vld [vmem:[%s7275_s2 + $0x100] sm:$0xff]  ;;  %v192_v12 = vld [vmem:[%s7275_s2 + $0x278] sm:$0xff]  ;;  %v191_v17 = vld [vmem:[%s7275_s2 + $0x270] sm:$0xff] }
  0x19   :  { %5257 = vmatpush3.msra.mxu0 %v118_v45  ;;  %5295 = vmatpush3.msra.mxu1 %v150_v46  ;;  %v224_v13 = vld [vmem:[%s7275_s2 + $0x378] sm:$0xff]  ;;  %v223_v18 = vld [vmem:[%s7275_s2 + $0x370] sm:$0xff]  ;;  %v206_v20 = vld [vmem:[%s7275_s2 + $0x2e8] sm:$0xff] }
  0x1a   :  { %5258 = vmatprep.subr.mxu0 %v133_v47  ;;  %5296 = vmatprep.subr.mxu1 %v165_v48  ;;  %v238_v21 = vld [vmem:[%s7275_s2 + $0x3e8] sm:$0xff]  ;;  %v205_v26 = vld [vmem:[%s7275_s2 + $0x2e0] sm:$0xff]  ;;  %v204_v30 = vld [vmem:[%s7275_s2 + $0x2d8] sm:$0xff] }
  0x1b   :  { %5259 = vmatpush3.msra.mxu0 %v117_v49  ;;  %5297 = vmatpush3.msra.mxu1 %v149_v50  ;;  %v190_v23 = vld [vmem:[%s7275_s2 + $0x268] sm:$0xff]  ;;  %v237_v27 = vld [vmem:[%s7275_s2 + $0x3e0] sm:$0xff]  ;;  %v236_v31 = vld [vmem:[%s7275_s2 + $0x3d8] sm:$0xff] }
  0x1c   :  { %5260 = vmatprep.subr.mxu0 %v132_v51  ;;  %5298 = vmatprep.subr.mxu1 %v164_v52  ;;  %v222_v24 = vld [vmem:[%s7275_s2 + $0x368] sm:$0xff]  ;;  %v189_v28 = vld [vmem:[%s7275_s2 + $0x260] sm:$0xff]  ;;  %v188_v32 = vld [vmem:[%s7275_s2 + $0x258] sm:$0xff] }
  0x1d   :  { %5261 = vmatpush3.msra.mxu0 %v116_v53  ;;  %5299 = vmatpush3.msra.mxu1 %v148_v54  ;;  %v221_v29 = vld [vmem:[%s7275_s2 + $0x360] sm:$0xff]  ;;  %v220_v33 = vld [vmem:[%s7275_s2 + $0x358] sm:$0xff]  ;;  %v203_v34 = vld [vmem:[%s7275_s2 + $0x2d0] sm:$0xff] }
  0x1e   :  { %5262 = vmatprep.subr.mxu0 %v131_v55  ;;  %5300 = vmatprep.subr.mxu1 %v163_v56  ;;  %v235_v35 = vld [vmem:[%s7275_s2 + $0x3d0] sm:$0xff]  ;;  %v202_v38 = vld [vmem:[%s7275_s2 + $0x2c8] sm:$0xff]  ;;  %v201_v42 = vld [vmem:[%s7275_s2 + $0x2c0] sm:$0xff] }
  0x1f   :  { %5263 = vmatpush3.msra.mxu0 %v115_v57  ;;  %5301 = vmatpush3.msra.mxu1 %v147_v58  ;;  %v187_v36 = vld [vmem:[%s7275_s2 + $0x250] sm:$0xff]  ;;  %v234_v39 = vld [vmem:[%s7275_s2 + $0x3c8] sm:$0xff]  ;;  %v233_v43 = vld [vmem:[%s7275_s2 + $0x3c0] sm:$0xff] }
  0x20   :  { %5264 = vmatprep.subr.mxu0 %v130_v59  ;;  %5302 = vmatprep.subr.mxu1 %v162_v60  ;;  %v219_v37 = vld [vmem:[%s7275_s2 + $0x350] sm:$0xff]  ;;  %v186_v40 = vld [vmem:[%s7275_s2 + $0x248] sm:$0xff]  ;;  %v185_v44 = vld [vmem:[%s7275_s2 + $0x240] sm:$0xff] }
  0x21   :  { %5265 = vmatpush3.msra.mxu0 %v114_v61  ;;  %5303 = vmatpush3.msra.mxu1 %v146_v62  ;;  %v218_v41 = vld [vmem:[%s7275_s2 + $0x348] sm:$0xff]  ;;  %v217_v45 = vld [vmem:[%s7275_s2 + $0x340] sm:$0xff]  ;;  %v200_v46 = vld [vmem:[%s7275_s2 + $0x2b8] sm:$0xff] }
  0x22   :  { %5266 = vmatprep.subr.mxu0 %v129_v63  ;;  %5304 = vmatprep.subr.mxu1 %v161_v1  ;;  %v232_v47 = vld [vmem:[%s7275_s2 + $0x3b8] sm:$0xff]  ;;  %v199_v50 = vld [vmem:[%s7275_s2 + $0x2b0] sm:$0xff]  ;;  %v198_v54 = vld [vmem:[%s7275_s2 + $0x2a8] sm:$0xff] }
  0x23   :  { %5267 = vmatpush3.msra.mxu0 %v113_v2  ;;  %5305 = vmatpush3.msra.mxu1 %v145_v3  ;;  %v184_v48 = vld [vmem:[%s7275_s2 + $0x238] sm:$0xff]  ;;  %v231_v51 = vld [vmem:[%s7275_s2 + $0x3b0] sm:$0xff]  ;;  %v230_v55 = vld [vmem:[%s7275_s2 + $0x3a8] sm:$0xff] }
  0x24   :  { %5312 = vmatprep.subr.mxu0 %v208_v4  ;;  %5350 = vmatprep.subr.mxu1 %v240_v5  ;;  %v216_v49 = vld [vmem:[%s7275_s2 + $0x338] sm:$0xff]  ;;  %v183_v52 = vld [vmem:[%s7275_s2 + $0x230] sm:$0xff]  ;;  %v182_v56 = vld [vmem:[%s7275_s2 + $0x228] sm:$0xff] }
  0x25   :  { %v215_v53 = vld [vmem:[%s7275_s2 + $0x330] sm:$0xff]  ;;  %v214_v57 = vld [vmem:[%s7275_s2 + $0x328] sm:$0xff]  ;;  %v197_v58 = vld [vmem:[%s7275_s2 + $0x2a0] sm:$0xff] }
  0x26   :  { %v229_v59 = vld [vmem:[%s7275_s2 + $0x3a0] sm:$0xff]  ;;  %v196_v62 = vld [vmem:[%s7275_s2 + $0x298] sm:$0xff]  ;;  %v195_v3 = vld [vmem:[%s7275_s2 + $0x290] sm:$0xff] }
  0x27   :  { %v181_v60 = vld [vmem:[%s7275_s2 + $0x220] sm:$0xff]  ;;  %v228_v63 = vld [vmem:[%s7275_s2 + $0x398] sm:$0xff]  ;;  %v227_v4 = vld [vmem:[%s7275_s2 + $0x390] sm:$0xff] }
  0x28   :  { %v213_v61 = vld [vmem:[%s7275_s2 + $0x320] sm:$0xff]  ;;  %v180_v1 = vld [vmem:[%s7275_s2 + $0x218] sm:$0xff]  ;;  %v179_v5 = vld [vmem:[%s7275_s2 + $0x210] sm:$0xff] }
  0x29   :  { %v212_v2 = vld [vmem:[%s7275_s2 + $0x318] sm:$0xff] }
  0x7d   :  { %v6147_v11 = vpop.permute.xlu0 %60 }
  0x7e   :  { %vm66_vm0 = vcmp.eq.s32.totalorder %v52_v8, %v6147_v11  ;;  %vm68_vm1 = vcmp.eq.s32.totalorder %v54_v9, %v6147_v11  ;;  %vm65_vm2 = vcmp.eq.s32.totalorder %v6142_v7, %v6147_v11  ;;  %vm67_vm3 = vcmp.eq.s32.totalorder %v53_v10, %v6147_v11 }
  0x7f   :  { %5001 = vmatprep.mubr.msk.f32.mxu0 %vm66_vm0, %v5850_v14  ;;  %5005 = vmatprep.mubr.msk.f32.mxu1 %vm68_vm1, %v5850_v14  ;;  %vm70_vm8 = vcmp.eq.s32.totalorder %v6190_v22, %v6147_v11  ;;  %vm72_vm9 = vcmp.eq.s32.totalorder %v6201_v25, %v6147_v11  ;;  %vm5852_vm0 = vmmov 0   ;;  %vm624_vm1 = vcmask 523264  }
  0x80   :  { %5002 = vmatmul.mubr.msk.f32.vlgmr.msra.gmra.mxu0 %vm65_vm2, %v5850_v14  ;;  %5006 = vmatmul.mubr.msk.f32.vlgmr.msra.gmra.mxu1 %vm67_vm3, %v5850_v14  ;;  %vm1526_vm2 = vcmask 130048   ;;  %vm2281_vm3 = vcmask 261120  }
  0x81   :  { %5313 = vmatpush3.msra.mxu0 %v192_v12  ;;  %5351 = vmatpush3.msra.mxu1 %v224_v13  ;;  %v178_v12 = vld [vmem:[%s7275_s2 + $0x208] sm:$0xff] }
  0x82   :  { %v6176_v19 = vpop.permute.xlu0 %63  ;;  %5314 = vmatprep.subr.mxu0 %v207_v15  ;;  %5352 = vmatprep.subr.mxu1 %v239_v16  ;;  %v210_v13 = vld [vmem:[%s7275_s2 + $0x308] sm:$0xff]  ;;  %v193_v15 = vld [vmem:[%s7275_s2 + $0x280] sm:$0xff] }
  0x83   :  { %vm74_vm4 = vcmp.eq.s32.totalorder %v52_v8, %v6176_v19  ;;  %vm76_vm5 = vcmp.eq.s32.totalorder %v54_v9, %v6176_v19  ;;  %5315 = vmatpush3.msra.mxu0 %v191_v17  ;;  %5353 = vmatpush3.msra.mxu1 %v223_v18  ;;  %vm73_vm6 = vcmp.eq.s32.totalorder %v6142_v7, %v6176_v19  ;;  %v211_v8 = vld [vmem:[%s7275_s2 + $0x310] sm:$0xff]  ;;  %v194_v9 = vld [vmem:[%s7275_s2 + $0x288] sm:$0xff]  ;;  %v225_v16 = vld [vmem:[%s7275_s2 + $0x380] sm:$0xff]  ;;  %v55_v17 = vadd.s32 512, %v6142_v7 }
  0x84   :  { %vm75_vm7 = vcmp.eq.s32.totalorder %v53_v10, %v6176_v19  ;;  %5003 = vmatprep.mubr.msk.f32.mxu0 %vm74_vm4, %v5850_v14  ;;  %5007 = vmatprep.mubr.msk.f32.mxu1 %vm76_vm5, %v5850_v14  ;;  %v226_v10 = vld [vmem:[%s7275_s2 + $0x388] sm:$0xff]  ;;  %v57_v18 = vadd.s32 768, %v6142_v7  ;;  %vm78_vm12 = vcmp.eq.s32.totalorder %v6190_v22, %v6176_v19  ;;  %vm80_vm13 = vcmp.eq.s32.totalorder %v6201_v25, %v6176_v19 }
  0x85   :  { %5316 = vmatprep.subr.mxu0 %v206_v20  ;;  %5354 = vmatprep.subr.mxu1 %v238_v21  ;;  %v177_v20 = vld [vmem:[%s7275_s2 + $0x200] sm:$0xff]  ;;  %vm69_vm10 = vcmp.eq.s32.totalorder %v55_v17, %v6147_v11  ;;  %vm77_vm14 = vcmp.eq.s32.totalorder %v55_v17, %v6176_v19  ;;  %v5671_v7 = vld [vmem:[%s7276_s3 + $0x48] ss:$12 sps:$4 sm:$0xff]   ;;  %vm2284_vm4 = vcmask 392192  }
  0x86   :  { %5004 = vmatmul.mubr.msk.f32.gmra.mxu0 %vm73_vm6, %v5850_v14  ;;  %5008 = vmatmul.mubr.msk.f32.gmra.mxu1 %vm75_vm7, %v5850_v14  ;;  %v209_v21 = vld [vmem:[%s7275_s2 + $0x300] sm:$0xff]  ;;  %vm71_vm11 = vcmp.eq.s32.totalorder %v57_v18, %v6147_v11  ;;  %vm79_vm15 = vcmp.eq.s32.totalorder %v57_v18, %v6176_v19  ;;  %v5673_v11 = vld [vmem:[%s7276_s3 + $0x4c] ss:$12 sps:$4 sm:$0xff]   ;;  %v5679_v22 = vld [vmem:[%s7276_s3 + $0x1c] ss:$12 sps:$4 sm:$0xff]  }
  0x87   :  { %5317 = vmatpush3.msra.mxu0 %v190_v23  ;;  %5355 = vmatpush3.msra.mxu1 %v222_v24  ;;  %v5676_v19 = vld [vmem:[%s7276_s3 + $0x34] ss:$12 sps:$4 sm:$0xff]   ;;  %v5677_v23 = vld [vmem:[%s7276_s3 + $0x18] ss:$12 sps:$4 sm:$0xff]  }
  0x88   :  { %5318 = vmatprep.subr.mxu0 %v205_v26  ;;  %5009 = vmatprep.mubr.msk.f32.mxu0 %vm70_vm8, %v5850_v14  ;;  %v5682_v24 = vld [vmem:[%s7276_s3 + $0x4] ss:$12 sps:$4 sm:$0xff]   ;;  %v5680_v25 = vld [vmem:[%s7276_s3] ss:$12 sps:$4 sm:$0xff]   ;;  %v5851_v26 = vmov 0.0  }
  0x89   :  { %5356 = vmatprep.subr.mxu1 %v237_v27  ;;  %5013 = vmatprep.mubr.msk.f32.mxu1 %vm72_vm9, %v5850_v14 }
  0x8a   :  { %5319 = vmatpush3.msra.mxu0 %v189_v28  ;;  %5357 = vmatpush3.msra.mxu1 %v221_v29 }
  0x8b   :  { %5320 = vmatprep.subr.mxu0 %v204_v30  ;;  %5358 = vmatprep.subr.mxu1 %v236_v31 }
  0x8c   :  { %5321 = vmatpush3.msra.mxu0 %v188_v32  ;;  %5359 = vmatpush3.msra.mxu1 %v220_v33 }
  0x8d   :  { %5322 = vmatprep.subr.mxu0 %v203_v34  ;;  %5360 = vmatprep.subr.mxu1 %v235_v35 }
  0x8e   :  { %5323 = vmatpush3.msra.mxu0 %v187_v36  ;;  %5361 = vmatpush3.msra.mxu1 %v219_v37 }
  0x8f   :  { %5324 = vmatprep.subr.mxu0 %v202_v38  ;;  %5362 = vmatprep.subr.mxu1 %v234_v39 }
  0x90   :  { %5325 = vmatpush3.msra.mxu0 %v186_v40  ;;  %5363 = vmatpush3.msra.mxu1 %v218_v41 }
  0x91   :  { %5326 = vmatprep.subr.mxu0 %v201_v42  ;;  %5364 = vmatprep.subr.mxu1 %v233_v43 }
  0x92   :  { %5327 = vmatpush3.msra.mxu0 %v185_v44  ;;  %5365 = vmatpush3.msra.mxu1 %v217_v45 }
  0x93   :  { %5328 = vmatprep.subr.mxu0 %v200_v46  ;;  %5366 = vmatprep.subr.mxu1 %v232_v47 }
  0x94   :  { %5329 = vmatpush3.msra.mxu0 %v184_v48  ;;  %5367 = vmatpush3.msra.mxu1 %v216_v49 }
  0x95   :  { %5330 = vmatprep.subr.mxu0 %v199_v50  ;;  %5368 = vmatprep.subr.mxu1 %v231_v51 }
  0x96   :  { %5331 = vmatpush3.msra.mxu0 %v183_v52  ;;  %5369 = vmatpush3.msra.mxu1 %v215_v53 }
  0x97   :  { %5332 = vmatprep.subr.mxu0 %v198_v54  ;;  %5370 = vmatprep.subr.mxu1 %v230_v55 }
  0x98   :  { %5333 = vmatpush3.msra.mxu0 %v182_v56  ;;  %5371 = vmatpush3.msra.mxu1 %v214_v57  ;;  %v5683_v57 = vld [vmem:[%s7276_s3 + $0x50] ss:$12 sps:$4 sm:$0xff]  }
  0x99   :  { %5334 = vmatprep.subr.mxu0 %v197_v58  ;;  %5372 = vmatprep.subr.mxu1 %v229_v59  ;;  %v5684_v59 = vld [vmem:[%s7276_s3 + $0x38] ss:$12 sps:$4 sm:$0xff]  }
  0x9a   :  { %5335 = vmatpush3.msra.mxu0 %v181_v60  ;;  %5373 = vmatpush3.msra.mxu1 %v213_v61  ;;  %v5685_v60 = vld [vmem:[%s7276_s3 + $0x20] ss:$12 sps:$4 sm:$0xff]   ;;  %v5686_v61 = vld [vmem:[%s7276_s3 + $0x8] ss:$12 sps:$4 sm:$0xff]  }
  0x9b   :  { %5336 = vmatprep.subr.mxu0 %v196_v62  ;;  %5374 = vmatprep.subr.mxu1 %v228_v63 }
  0x9c   :  { %5337 = vmatpush3.msra.mxu0 %v180_v1  ;;  %5375 = vmatpush3.msra.mxu1 %v212_v2 }
  0x9d   :  { %5338 = vmatprep.subr.mxu0 %v195_v3  ;;  %5376 = vmatprep.subr.mxu1 %v227_v4 }
  0x9e   :  { %5339 = vmatpush3.msra.mxu0 %v179_v5  ;;  %5377 = vmatpush3.msra.mxu1 %v211_v8 }
  0x9f   :  { %5340 = vmatprep.subr.mxu0 %v194_v9  ;;  %5378 = vmatprep.subr.mxu1 %v226_v10 }
  0xa0   :  { %5341 = vmatpush3.msra.mxu0 %v178_v12  ;;  %5379 = vmatpush3.msra.mxu1 %v210_v13  ;;  %v5856_v13 = vmov 1983009808  }
  0xa1   :  { %5342 = vmatprep.subr.mxu0 %v193_v15  ;;  %5380 = vmatprep.subr.mxu1 %v225_v16  ;;  %v744_v15 = vunpack.c.l.s4 %v5856_v13  ;;  %v5857_v16 = vmov 1934713408  }
  0xa2   :  { %5343 = vmatpush3.msra.mxu0 %v177_v20  ;;  %5381 = vmatpush3.msra.mxu1 %v209_v21  ;;  %v775_v17 = vunpack.c.l.s4 %v5857_v16  ;;  %v6449_v20 = vshrl.u32 %v50_v6, 7 }
  0xa3   :  { %5010 = vmatmul.mubr.msk.f32.vlgmr.msra.gmra.mxu0 %vm69_vm10, %v5850_v14  ;;  %5014 = vmatmul.mubr.msk.f32.vlgmr.msra.gmra.mxu1 %vm71_vm11, %v5850_v14  ;;  %v745_v18 = vunpack.c.0.s8 %v744_v15 }
  0xa4   :  { %5011 = vmatprep.mubr.msk.f32.mxu0 %vm78_vm12, %v5850_v14  ;;  %5015 = vmatprep.mubr.msk.f32.mxu1 %vm80_vm13, %v5850_v14 }
  0xa5   :  { %636 = vmatprep.subr.bf16.mxu1 %v5673_v11  ;;  %5496 = vmatprep.subr.bf16.mxu0 %v5851_v26 }
  0xa6   :  { %637 = vmatpush1.bf16.msra.mxu1 %v5671_v7  ;;  %v6453_v7 = vpack.i.b16 %v5849_v0, %v5849_v0 }
  0xa7   :  { %5012 = vmatmul.mubr.msk.f32.gmra.mxu0 %vm77_vm14, %v5850_v14  ;;  %5016 = vmatmul.mubr.msk.f32.gmra.mxu1 %vm79_vm15, %v5850_v14  ;;  %v5674_v14 = vld [vmem:[%s7276_s3 + $0x30] ss:$12 sps:$4 sm:$0xff]  }
  0xa8   :  { %660 = vmatprep.mubr.bf16.mxu1 %v5849_v0  ;;  %638 = vmatprep.subr.bf16.mxu1 %v5676_v19 }
  0xa9   :  { %5498 = vmatprep.mubr.msk.bf16.mxu0 %vm5852_vm0, %v5851_v26 }
  0xaa   :  { %639 = vmatpush1.bf16.msra.mxu1 %v5674_v14 }
  0xab   :  { %640 = vmatprep.subr.bf16.mxu1 %v5679_v22  ;;  %v776_v22 = vunpack.c.0.s8 %v775_v17 }
  0xae   :  { %641 = vmatpush1.bf16.msra.mxu1 %v5677_v23 }
  0xaf   :  { %642 = vmatprep.subr.bf16.mxu1 %v5682_v24 }
  0xb2   :  { %643 = vmatpush1.bf16.msra.mxu1 %v5680_v25  ;;  %v6456_v25 = vsub.s32 %v745_v18, %v6449_v20 }
  0xb3   :  { %5484 = vmatprep.subr.bf16.mxu1 %v5851_v26 }
 0x140   :  { %v5268_v27 = vpop.f32.mrf.mxu0  ;;  %v5306_v28 = vpop.f32.mrf.mxu1 }
 0x142   :  { %v5269_v29 = vpop.f32.mrf.mxu0  ;;  %v5307_v30 = vpop.f32.mrf.mxu1 }
 0x143   :  { %v5270_v37 = vadd.f32 %v5269_v29, %v5268_v27  ;;  %v5308_v38 = vadd.f32 %v5307_v30, %v5306_v28 }
 0x145   :  { %v383_v46 = vadd.f32 %v5308_v38, %v5270_v37 }
 0x146   :  { %v5271_v31 = vpop.f32.mrf.mxu0  ;;  %v5309_v32 = vpop.f32.mrf.mxu1 }
 0x148   :  { %v5272_v33 = vpop.f32.mrf.mxu0  ;;  %v5310_v34 = vpop.f32.mrf.mxu1 }
 0x149   :  { %v5273_v41 = vadd.f32 %v5272_v33, %v5271_v31  ;;  %v5311_v42 = vadd.f32 %v5310_v34, %v5309_v32  ;;  %v6460_v31 = vsub.s32 %v776_v22, %v6449_v20 }
 0x14b   :  { %v388_v49 = vadd.f32 %v5311_v42, %v5273_v41 }
 0x163   :  { %v5344_v35 = vpop.f32.mrf.mxu0  ;;  %v5382_v36 = vpop.f32.mrf.mxu1 }
 0x165   :  { %v5345_v39 = vpop.f32.mrf.mxu0  ;;  %v5383_v40 = vpop.f32.mrf.mxu1 }
 0x166   :  { %v5346_v43 = vadd.f32 %v5345_v39, %v5344_v35  ;;  %v5384_v52 = vadd.f32 %v5383_v40, %v5382_v36 }
 0x167   :  { %v5347_v44 = vpop.f32.mrf.mxu0  ;;  %v5385_v45 = vpop.f32.mrf.mxu1 }
 0x168   :  { %v458_v50 = vadd.f32 %v5346_v43, %v383_v46 }
 0x169   :  { %v5348_v47 = vpop.f32.mrf.mxu0  ;;  %v5386_v48 = vpop.f32.mrf.mxu1 }
 0x16a   :  { %v5349_v51 = vadd.f32 %v5348_v47, %v5347_v44  ;;  %v5387_v54 = vadd.f32 %v5386_v48, %v5385_v45  ;;  %v6412_v55 = vadd.f32 %v5384_v52, %v458_v50 }
 0x16c   :  { %v463_v53 = vadd.f32 %v5349_v51, %v388_v49 }
 0x16e   :  { %v6414_v56 = vadd.f32 %v5387_v54, %v463_v53 }
 0x170   :  { %v543_v58 = vpack.c.bf16 %v6414_v56, %v6412_v55 }
 0x172   :  { %5029 = vmatmul.mubr.msk.bf16.vlgmr.msra.gmra.mxu1 %vm624_vm1, %v543_v58 }
 0x173   :  { %5485 = vmatpush3.bf16.msra.mxu1 %v5683_v57  ;;  %5492 = vmatprep.mubr.msk.bf16.mxu1 %vm5852_vm0, %v5851_v26 }
 0x174   :  { %5486 = vmatprep.subr.bf16.mxu1 %v5851_v26 }
 0x177   :  { %5487 = vmatpush3.bf16.msra.mxu1 %v5684_v59 }
 0x178   :  { %5488 = vmatprep.subr.bf16.mxu1 %v5851_v26 }
 0x17b   :  { %5489 = vmatpush3.bf16.msra.mxu1 %v5685_v60 }
 0x17c   :  { %5490 = vmatprep.subr.bf16.mxu1 %v5851_v26 }
 0x17f   :  { %5491 = vmatpush3.bf16.msra.mxu1 %v5686_v61 }
 0x180   :  { %5502 = vmatprep.subr.bf16.mxu1 %v5851_v26 }
 0x182   :  { %5493 = vmatmul.mubr.msk.bf16.vlgmr.msra.gmra.mxu1 %vm624_vm1, %v543_v58 }
 0x183   :  { %5504 = vmatprep.mubr.msk.bf16.mxu1 %vm5852_vm0, %v5851_v26 }
 0x232   :  { %v662_v62 = vpop.f32.mrf.mxu1 }
 0x234   :  { %v664_v63 = vpop.f32.mrf.mxu1 }
 0x236   :  { %v666_v1 = vpop.f32.mrf.mxu1 }
 0x237   :  { %v712_v4 = vpack.c.bf16 %v666_v1, %v662_v62 }
 0x238   :  { %v668_v2 = vpop.f32.mrf.mxu1 }
 0x239   :  { %v986_v3 = vpack.c.bf16 %v668_v2, %v664_v63  ;;  %v724_v39 = vshrl.u32 %v712_v4, 16 }
 0x23b   :  { %992 = vrot.lane.b32.xlu0 %v986_v3, %s5853_s23  ;;  %988 = vrot.lane.b32.xlu1 %v986_v3, %s5854_s24  ;;  %v998_v19 = vshrl.u32 %v986_v3, 16 }
 0x23f   :  { %716 = vrot.lane.b32.xlu0 %v712_v4, %s5855_s0  ;;  %990 = vrot.lane.b32.xlu1 %v986_v3, %s5855_s0 }
 0x242   :  { %v705_v5 = vpop.f32.mrf.mxu1 }
 0x243   :  { %714 = vrot.lane.b32.xlu1 %v712_v4, %s5854_s24 }
 0x244   :  { %v5494_v8 = vpop.f32.mrf.mxu1 }
 0x246   :  { %v708_v9 = vpop.f32.mrf.mxu1 }
 0x247   :  { %v6445_v10 = vpack.c.bf16 %v708_v9, %v705_v5  ;;  %718 = vrot.lane.b32.xlu1 %v712_v4, %s5853_s23 }
 0x248   :  { %v5495_v12 = vpop.f32.mrf.mxu1 }
 0x2ad   :  { %v989_v21 = vpop.permute.xlu1 %988  ;;  %v993_v23 = vpop.permute.xlu0 %992 }
 0x2ae   :  { %v996_v11 = vpack.i.b16 %v989_v21, %v986_v3  ;;  %v999_v14 = vshrl.u32 %v989_v21, 16  ;;  %v1007_v29 = vshrl.u32 %v993_v23, 16 }
 0x2b0   :  { %v1000_v24 = vpack.i.b16 %v999_v14, %v998_v19  ;;  %v1010_v28 = vcombine.high %v996_v11, %v6453_v7  ;;  %v1017_v33 = vrot.slane %v996_v11, %v6456_v25 }
 0x2b1   :  { %v991_v27 = vpop.permute.xlu1 %990  ;;  %v717_v54 = vpop.permute.xlu0 %716 }
 0x2b2   :  { %v1004_v6 = vpack.i.b16 %v993_v23, %v991_v27  ;;  %v1006_v30 = vshrl.u32 %v991_v27, 16  ;;  %v1076_v32 = vcombine.high %v1000_v24, %v6453_v7  ;;  %v1024_v38 = vrot.slane %v1010_v28, %v6456_v25 }
 0x2b3   :  { %v1083_v46 = vrot.slane %v1000_v24, %v6456_v25  ;;  %v732_v9 = vshrl.u32 %v717_v54, 16 }
 0x2b4   :  { %v1008_v34 = vpack.i.b16 %v1007_v29, %v1006_v30  ;;  %v1025_v35 = vcombine.high %v1004_v6, %v6453_v7  ;;  %v1032_v36 = vrot.slane %v1004_v6, %v6456_v25  ;;  %v1090_v47 = vrot.slane %v1076_v32, %v6456_v25 }
 0x2b5   :  { %v715_v37 = vpop.permute.xlu1 %714 }
 0x2b6   :  { %v722_v40 = vpack.i.b16 %v715_v37, %v712_v4  ;;  %v725_v41 = vshrl.u32 %v715_v37, 16  ;;  %v1039_v42 = vrot.slane %v1025_v35, %v6456_v25  ;;  %v1040_v43 = vcombine.low %v1017_v33, %v1032_v36 }
 0x2b7   :  { %v1041_v44 = vcombine.high %v1017_v33, %v1032_v36  ;;  %v1091_v45 = vcombine.high %v1008_v34, %v6453_v7  ;;  %v1098_v48 = vrot.slane %v1008_v34, %v6456_v25 }
 0x2b8   :  { %v726_v49 = vpack.i.b16 %v725_v41, %v724_v39  ;;  %v1048_v50 = vrot.slane %v1040_v43, %v6460_v31  ;;  %v1056_v52 = vcombine.low %v1024_v38, %v1039_v42  ;;  %v1057_v53 = vcombine.high %v1024_v38, %v1039_v42 }
 0x2b9   :  { %v1055_v51 = vrot.slane %v1041_v44, %v6460_v31  ;;  %v1105_v57 = vrot.slane %v1091_v45, %v6456_v25  ;;  %v1106_v58 = vcombine.low %v1083_v46, %v1098_v48  ;;  %v1107_v59 = vcombine.high %v1083_v46, %v1098_v48  ;;  %v719_v8 = vpop.permute.xlu1 %718 }
 0x2ba   :  { %v742_v60 = vcombine.high %v722_v40, %v6453_v7  ;;  %v1064_v61 = vrot.slane %v1056_v52, %v6460_v31  ;;  %v1071_v62 = vrot.slane %v1057_v53, %v6460_v31  ;;  %v749_v15 = vrot.slane %v722_v40, %v6456_v25 }
 0x2bb   :  { %v1142_v63 = vcombine.low %v1048_v50, %v1055_v51  ;;  %v5035_v1 = vcombine.high %v1048_v50, %v1055_v51  ;;  %v1114_v2 = vrot.slane %v1106_v58, %v6460_v31  ;;  %v1121_v3 = vrot.slane %v1107_v59, %v6460_v31 }
 0x2bc   :  { %v1122_v4 = vcombine.low %v1090_v47, %v1105_v57  ;;  %v1123_v5 = vcombine.high %v1090_v47, %v1105_v57  ;;  %v1158_v12 = vcombine.low %v1064_v61, %v1071_v62  ;;  %v5036_v13 = vcombine.high %v1064_v61, %v1071_v62 }
 0x2bd   :  { %v1149_v18 = vrot.slane %v1142_v63, %v6456_v25  ;;  %v1157_v21 = vrot.slane %v5035_v1, %v6456_v25  ;;  %v756_v11 = vrot.slane %v742_v60, %v6456_v25  ;;  %v808_v19 = vcombine.high %v726_v49, %v6453_v7 }
 0x2be   :  { %v1130_v16 = vrot.slane %v1122_v4, %v6460_v31  ;;  %v1137_v17 = vrot.slane %v1123_v5, %v6460_v31  ;;  %v730_v14 = vpack.i.b16 %v719_v8, %v717_v54  ;;  %v733_v22 = vshrl.u32 %v719_v8, 16 }
 0x2bf   :  { %v1192_v23 = vcombine.low %v1114_v2, %v1121_v3  ;;  %v5037_v24 = vcombine.high %v1114_v2, %v1121_v3  ;;  %v1165_v27 = vrot.slane %v1158_v12, %v6456_v25  ;;  %v1173_v28 = vrot.slane %v5036_v13, %v6456_v25 }
 0x2c0   :  { %v815_v29 = vrot.slane %v726_v49, %v6456_v25  ;;  %v734_v6 = vpack.i.b16 %v733_v22, %v732_v9  ;;  %v757_v30 = vcombine.high %v730_v14, %v6453_v7  ;;  %v764_v32 = vrot.slane %v730_v14, %v6456_v25 }
 0x2c1   :  { %v1208_v33 = vcombine.low %v1130_v16, %v1137_v17  ;;  %v5038_v34 = vcombine.high %v1130_v16, %v1137_v17  ;;  %v822_v35 = vrot.slane %v808_v19, %v6456_v25  ;;  %v1174_v36 = vcombine.low %v1149_v18, %v1157_v21 }
 0x2c2   :  { %v771_v37 = vrot.slane %v757_v30, %v6456_v25  ;;  %v772_v38 = vcombine.low %v749_v15, %v764_v32  ;;  %v773_v39 = vcombine.high %v749_v15, %v764_v32  ;;  %v823_v40 = vcombine.high %v734_v6, %v6453_v7 }
 0x2c3   :  { %v830_v41 = vrot.slane %v734_v6, %v6456_v25  ;;  %v1182_v42 = vcombine.low %v1165_v27, %v1173_v28  ;;  %v1199_v43 = vrot.slane %v1192_v23, %v6456_v25  ;;  %v1207_v44 = vrot.slane %v5037_v24, %v6456_v25 }
 0x2c4   :  { %v780_v45 = vrot.slane %v772_v38, %v6460_v31  ;;  %v787_v46 = vrot.slane %v773_v39, %v6460_v31  ;;  %v788_v47 = vcombine.low %v756_v11, %v771_v37  ;;  %v789_v48 = vcombine.high %v756_v11, %v771_v37 }
 0x2c5   :  { %v837_v49 = vrot.slane %v823_v40, %v6456_v25  ;;  %v838_v50 = vcombine.low %v815_v29, %v830_v41  ;;  %v839_v51 = vcombine.high %v815_v29, %v830_v41  ;;  %v1215_v52 = vrot.slane %v1208_v33, %v6456_v25 }
 0x2c6   :  { %v796_v53 = vrot.slane %v788_v47, %v6460_v31  ;;  %v803_v54 = vrot.slane %v789_v48, %v6460_v31  ;;  %v874_v57 = vcombine.low %v780_v45, %v787_v46  ;;  %v5031_v58 = vcombine.high %v780_v45, %v787_v46 }
 0x2c7   :  { %v846_v59 = vrot.slane %v838_v50, %v6460_v31  ;;  %v853_v60 = vrot.slane %v839_v51, %v6460_v31  ;;  %v854_v61 = vcombine.low %v822_v35, %v837_v49  ;;  %v855_v62 = vcombine.high %v822_v35, %v837_v49 }
 0x2c8   :  { %v881_v63 = vrot.slane %v874_v57, %v6456_v25  ;;  %v889_v1 = vrot.slane %v5031_v58, %v6456_v25  ;;  %v890_v2 = vcombine.low %v796_v53, %v803_v54  ;;  %v5032_v3 = vcombine.high %v796_v53, %v803_v54 }
 0x2c9   :  { %v862_v4 = vrot.slane %v854_v61, %v6460_v31  ;;  %v869_v5 = vrot.slane %v855_v62, %v6460_v31  ;;  %v924_v8 = vcombine.low %v846_v59, %v853_v60  ;;  %v5033_v9 = vcombine.high %v846_v59, %v853_v60 }
 0x2ca   :  { %v897_v12 = vrot.slane %v890_v2, %v6456_v25  ;;  %v905_v13 = vrot.slane %v5032_v3, %v6456_v25  ;;  %v1189_v15 = vrot.slane %v1182_v42, %v6460_v31  ;;  %v1223_v16 = vrot.slane %v5038_v34, %v6456_v25 }
 0x2cb   :  { %v931_v17 = vrot.slane %v924_v8, %v6456_v25  ;;  %v939_v18 = vrot.slane %v5033_v9, %v6456_v25  ;;  %v940_v21 = vcombine.low %v862_v4, %v869_v5  ;;  %v5034_v11 = vcombine.high %v862_v4, %v869_v5  ;;  %v541_v4 = vld [vmem:[%s7277_s1] sm:$0xff] }
 0x2cc   :  { %v914_v19 = vcombine.low %v897_v12, %v905_v13  ;;  %v1181_v14 = vrot.slane %v1174_v36, %v6460_v31  ;;  %v1224_v22 = vcombine.low %v1199_v43, %v1207_v44  ;;  %v1232_v23 = vcombine.low %v1215_v52, %v1223_v16  ;;  %v542_v13 = vld [vmem:[%s7277_s1 + $0x8] sm:$0xff] }
 0x2cd   :  { %v906_v24 = vcombine.low %v881_v63, %v889_v1  ;;  %v947_v27 = vrot.slane %v940_v21, %v6456_v25  ;;  %v955_v28 = vrot.slane %v5034_v11, %v6456_v25  ;;  %v956_v29 = vcombine.low %v931_v17, %v939_v18 }
 0x2ce   :  { %v1190_v6 = vcombine.low %v1181_v14, %v1189_v15  ;;  %v1231_v30 = vrot.slane %v1224_v22, %v6460_v31  ;;  %v1239_v32 = vrot.slane %v1232_v23, %v6460_v31  ;;  %v921_v34 = vrot.slane %v914_v19, %v6460_v31 }
 0x2cf   :  { %v964_v33 = vcombine.low %v947_v27, %v955_v28  ;;  %v913_v37 = vrot.slane %v906_v24, %v6460_v31  ;;  %v963_v36 = vrot.slane %v956_v29, %v6460_v31  ;;  %v1191_v47 = vcombine.high %v1181_v14, %v1189_v15 }
 0x2d0   :  { %v1240_v35 = vcombine.low %v1231_v30, %v1239_v32  ;;  %v1245_v40 = vshrl.u32 %v1190_v6, 16  ;;  %v1241_v42 = vcombine.high %v1231_v30, %v1239_v32 }
 0x2d1   :  { %v971_v38 = vrot.slane %v964_v33, %v6460_v31  ;;  %v922_v44 = vcombine.low %v913_v37, %v921_v34  ;;  %v1251_v54 = vshrl.u32 %v1191_v47, 16  ;;  %v923_v62 = vcombine.high %v913_v37, %v921_v34 }
 0x2d2   :  { %v1244_v39 = vpack.i.b16 %v1240_v35, %v1190_v6  ;;  %v1246_v41 = vshrl.u32 %v1240_v35, 16  ;;  %v1252_v50 = vshrl.u32 %v1241_v42, 16  ;;  %v1250_v52 = vpack.i.b16 %v1241_v42, %v1191_v47 }
 0x2d3   :  { %v972_v43 = vcombine.low %v963_v36, %v971_v38  ;;  %v977_v53 = vshrl.u32 %v922_v44, 16  ;;  %v973_v60 = vcombine.high %v963_v36, %v971_v38  ;;  %v983_v2 = vshrl.u32 %v923_v62, 16 }
 0x2d4   :  { %v1531_v45 = vsel %vm1526_vm2, %v1244_v39, 0  ;;  %v1247_v46 = vpack.i.b16 %v1246_v41, %v1245_v40  ;;  %v1253_v58 = vpack.i.b16 %v1252_v50, %v1251_v54  ;;  %v1625_v59 = vsel %vm1526_vm2, %v1250_v52, 0 }
 0x2d5   :  { %5497 = vmatpush3.bf16.xpose.msra.mxu0 %v1531_v45  ;;  %v978_v49 = vshrl.u32 %v972_v43, 16  ;;  %v976_v51 = vpack.i.b16 %v972_v43, %v922_v44  ;;  %v984_v63 = vshrl.u32 %v973_v60, 16  ;;  %v982_v1 = vpack.i.b16 %v973_v60, %v923_v62 }
 0x2d6   :  { %v1578_v48 = vsel %vm1526_vm2, %v1247_v46, 0  ;;  %5508 = vmatprep.subr.bf16.mxu0 %v5851_v26  ;;  %v1672_v61 = vsel %vm1526_vm2, %v1253_v58, 0 }
 0x2d7   :  { %5503 = vmatpush3.bf16.xpose.msra.mxu1 %v1578_v48  ;;  %v979_v57 = vpack.i.b16 %v978_v49, %v977_v53  ;;  %v985_v3 = vpack.i.b16 %v984_v63, %v983_v2 }
 0x2d8   :  { %5514 = vmatprep.subr.bf16.mxu1 %v5851_v26 }
 0x2dc   :  { %5499 = vmatmul.mubr.msk.bf16.vlgmr.msra.gmra.mxu0 %vm1526_vm2, %v976_v51 }
 0x2dd   :  { %5509 = vmatpush3.bf16.xpose.msra.mxu0 %v1625_v59  ;;  %5510 = vmatprep.mubr.msk.bf16.mxu0 %vm5852_vm0, %v5851_v26 }
 0x2de   :  { %5505 = vmatmul.mubr.msk.bf16.vlgmr.msra.gmra.mxu1 %vm1526_vm2, %v979_v57  ;;  %5520 = vmatprep.subr.bf16.mxu0 %v5851_v26 }
 0x2df   :  { %5515 = vmatpush3.bf16.xpose.msra.mxu1 %v1672_v61  ;;  %5516 = vmatprep.mubr.msk.bf16.mxu1 %vm5852_vm0, %v5851_v26 }
 0x2e0   :  { %5526 = vmatprep.subr.bf16.mxu1 %v5851_v26 }
 0x2e4   :  { %5511 = vmatmul.mubr.msk.bf16.vlgmr.msra.gmra.mxu0 %vm1526_vm2, %v982_v1 }
 0x2e5   :  { %5522 = vmatprep.mubr.msk.bf16.mxu0 %vm5852_vm0, %v5851_v26 }
 0x2e6   :  { %5517 = vmatmul.mubr.msk.bf16.vlgmr.msra.gmra.mxu1 %vm1526_vm2, %v985_v3 }
 0x2e7   :  { %5528 = vmatprep.mubr.msk.bf16.mxu1 %vm5852_vm0, %v5851_v26 }
 0x39c   :  { %v1567_v5 = vpop.f32.mrf.mxu0 }
 0x39d   :  { %v1568_v8 = vadd.f32 %v1567_v5, %v541_v4  ;;  %v1266_v5 = vshrl.u32 %v6445_v10, 16 }
 0x39e   :  { %v5500_v9 = vpop.f32.mrf.mxu0  ;;  %v1614_v12 = vpop.f32.mrf.mxu1 }
 0x39f   :  { %v1615_v15 = vadd.f32 %v1614_v12, %v541_v4  ;;  %v1715_v16 = vsel %vm1526_vm2, %v1568_v8, -inf }
 0x3a0   :  { %1716 = vmax.xlane.f32.xlu0 %v1715_v16  ;;  %v1570_v17 = vpop.f32.mrf.mxu0  ;;  %v5506_v18 = vpop.f32.mrf.mxu1 }
 0x3a1   :  { %v1571_v21 = vadd.f32 %v1570_v17, %v542_v13  ;;  %v1721_v23 = vsel %vm1526_vm2, %v1615_v15, -inf }
 0x3a2   :  { %v5501_v11 = vpop.f32.mrf.mxu0  ;;  %v1617_v19 = vpop.f32.mrf.mxu1 }
 0x3a3   :  { %v1618_v14 = vadd.f32 %v1617_v19, %v542_v13  ;;  %v1718_v22 = vsel %vm1526_vm2, %v1571_v21, -inf }
 0x3a4   :  { %1719 = vmax.xlane.f32.xlu1 %v1718_v22  ;;  %v1661_v24 = vpop.f32.mrf.mxu0  ;;  %1722 = vmax.xlane.f32.xlu0 %v1721_v23  ;;  %v5507_v27 = vpop.f32.mrf.mxu1 }
 0x3a5   :  { %v1662_v28 = vadd.f32 %v1661_v24, %v541_v4  ;;  %v1724_v33 = vsel %vm1526_vm2, %v1618_v14, -inf }
 0x3a6   :  { %v5512_v29 = vpop.f32.mrf.mxu0  ;;  %v1708_v6 = vpop.f32.mrf.mxu1 }
 0x3a7   :  { %v1709_v30 = vadd.f32 %v1708_v6, %v541_v4  ;;  %v1727_v32 = vsel %vm1526_vm2, %v1662_v28, -inf }
 0x3a8   :  { %1728 = vmax.xlane.f32.xlu1 %v1727_v32  ;;  %v1664_v34 = vpop.f32.mrf.mxu0  ;;  %1725 = vmax.xlane.f32.xlu0 %v1724_v33  ;;  %v5518_v35 = vpop.f32.mrf.mxu1 }
 0x3a9   :  { %v1665_v37 = vadd.f32 %v1664_v34, %v542_v13  ;;  %v1733_v41 = vsel %vm1526_vm2, %v1709_v30, -inf }
 0x3aa   :  { %v5513_v36 = vpop.f32.mrf.mxu0  ;;  %v1711_v38 = vpop.f32.mrf.mxu1 }
 0x3ab   :  { %v1712_v39 = vadd.f32 %v1711_v38, %v542_v13  ;;  %v1730_v40 = vsel %vm1526_vm2, %v1665_v37, -inf }
 0x3ac   :  { %1731 = vmax.xlane.f32.xlu0 %v1730_v40  ;;  %1734 = vmax.xlane.f32.xlu1 %v1733_v41  ;;  %v5519_v42 = vpop.f32.mrf.mxu1 }
 0x3ad   :  { %v1736_v43 = vsel %vm1526_vm2, %v1712_v39, -inf }
 0x3b0   :  { %1737 = vmax.xlane.f32.xlu0 %v1736_v43 }
 0x3bd   :  { %1256 = vrot.lane.b32.xlu1 %v6445_v10, %s5854_s24 }
 0x3c1   :  { %1260 = vrot.lane.b32.xlu1 %v6445_v10, %s5853_s23 }
 0x3c6   :  { %1258 = vrot.lane.b32.xlu0 %v6445_v10, %s5855_s0 }
 0x429   :  { %v1717_v44 = vpop.xlane.xlu0 %1716 }
 0x42a   :  { %v1739_v45 = vsub.f32 %v1568_v8, %v1717_v44 }
 0x42c   :  { %v1747_v46 = vmul.f32 1.442695, %v1739_v45 }
 0x42d   :  { %v1720_v47 = vpop.xlane.xlu1 %1719  ;;  %v1723_v48 = vpop.xlane.xlu0 %1722 }
 0x42e   :  { %5767 = vpow2.f32 %v1747_v46  ;;  %v1740_v49 = vsub.f32 %v1571_v21, %v1720_v47  ;;  %v1741_v50 = vsub.f32 %v1615_v15, %v1723_v48 }
 0x430   :  { %v1749_v51 = vmul.f32 1.442695, %v1740_v49  ;;  %v1751_v52 = vmul.f32 1.442695, %v1741_v50 }
 0x431   :  { %v1729_v53 = vpop.xlane.xlu1 %1728  ;;  %v1726_v54 = vpop.xlane.xlu0 %1725 }
 0x432   :  { %5769 = vpow2.f32 %v1749_v51  ;;  %v1743_v57 = vsub.f32 %v1662_v28, %v1729_v53  ;;  %v1742_v58 = vsub.f32 %v1618_v14, %v1726_v54 }
 0x433   :  { %5771 = vpow2.f32 %v1751_v52 }
 0x434   :  { %v1755_v59 = vmul.f32 1.442695, %v1743_v57  ;;  %v1753_v60 = vmul.f32 1.442695, %v1742_v58 }
 0x435   :  { %v1732_v61 = vpop.xlane.xlu0 %1731  ;;  %v1735_v62 = vpop.xlane.xlu1 %1734 }
 0x436   :  { %5773 = vpow2.f32 %v1755_v59  ;;  %v1744_v63 = vsub.f32 %v1665_v37, %v1732_v61  ;;  %v1745_v1 = vsub.f32 %v1709_v30, %v1735_v62 }
 0x437   :  { %5775 = vpow2.f32 %v1753_v60 }
 0x438   :  { %v1757_v2 = vmul.f32 1.442695, %v1744_v63  ;;  %v1759_v15 = vmul.f32 1.442695, %v1745_v1 }
 0x439   :  { %v1257_v3 = vpop.permute.xlu1 %1256  ;;  %v1738_v4 = vpop.xlane.xlu0 %1737 }
 0x43a   :  { %v1264_v8 = vpack.i.b16 %v1257_v3, %v6445_v10  ;;  %v1267_v9 = vshrl.u32 %v1257_v3, 16  ;;  %v1746_v12 = vsub.f32 %v1712_v39, %v1738_v4  ;;  %5777 = vpow2.f32 %v1757_v2 }
 0x43b   :  { %v6567_v13 = vpop.eup %5767 }
 0x43c   :  { %v1268_v16 = vpack.i.b16 %v1267_v9, %v1266_v5  ;;  %v1761_v17 = vmul.f32 1.442695, %v1746_v12  ;;  %v1763_v18 = vsel %vm1526_vm2, %v6567_v13, 0.0  ;;  %v1278_v19 = vcombine.high %v1264_v8, %v6453_v7 }
 0x43d   :  { %v1261_v21 = vpop.permute.xlu1 %1260  ;;  %v1259_v11 = vpop.permute.xlu0 %1258  ;;  %1764 = vadd.xlane.f32.xlu1 %v1763_v18  ;;  %v1285_v27 = vrot.slane %v1264_v8, %v6456_v25 }
 0x43e   :  { %5779 = vpow2.f32 %v1761_v17  ;;  %v1275_v10 = vshrl.u32 %v1261_v21, 16  ;;  %v1272_v22 = vpack.i.b16 %v1261_v21, %v1259_v11  ;;  %v1274_v23 = vshrl.u32 %v1259_v11, 16 }
 0x43f   :  { %v6572_v14 = vpop.eup %5769  ;;  %5781 = vpow2.f32 %v1759_v15  ;;  %v1344_v28 = vcombine.high %v1268_v16, %v6453_v7  ;;  %v1292_v34 = vrot.slane %v1278_v19, %v6456_v25  ;;  %v1351_v41 = vrot.slane %v1268_v16, %v6456_v25 }
 0x440   :  { %v6574_v24 = vpop.eup %5771  ;;  %v1766_v29 = vsel %vm1526_vm2, %v6572_v14, 0.0  ;;  %v1276_v6 = vpack.i.b16 %v1275_v10, %v1274_v23  ;;  %v1293_v30 = vcombine.high %v1272_v22, %v6453_v7  ;;  %v1300_v32 = vrot.slane %v1272_v22, %v6456_v25 }
 0x441   :  { %v1769_v33 = vsel %vm1526_vm2, %v6574_v24, 0.0  ;;  %1767 = vadd.xlane.f32.xlu0 %v1766_v29  ;;  %v1358_v42 = vrot.slane %v1344_v28, %v6456_v25 }
 0x442   :  { %1770 = vadd.xlane.f32.xlu1 %v1769_v33  ;;  %v1307_v37 = vrot.slane %v1293_v30, %v6456_v25  ;;  %v1308_v36 = vcombine.low %v1285_v27, %v1300_v32  ;;  %v1309_v38 = vcombine.high %v1285_v27, %v1300_v32  ;;  %v1359_v39 = vcombine.high %v1276_v6, %v6453_v7 }
 0x443   :  { %v6585_v35 = vpop.eup %5773  ;;  %v1366_v43 = vrot.slane %v1276_v6, %v6456_v25 }
 0x444   :  { %v6589_v40 = vpop.eup %5775  ;;  %v1775_v44 = vsel %vm1526_vm2, %v6585_v35, 0.0  ;;  %v1316_v45 = vrot.slane %v1308_v36, %v6460_v31  ;;  %v1323_v46 = vrot.slane %v1309_v38, %v6460_v31  ;;  %v1324_v47 = vcombine.low %v1292_v34, %v1307_v37 }
 0x445   :  { %v1325_v48 = vcombine.high %v1292_v34, %v1307_v37  ;;  %v1373_v49 = vrot.slane %v1359_v39, %v6456_v25  ;;  %v1374_v50 = vcombine.low %v1351_v41, %v1366_v43  ;;  %v1375_v51 = vcombine.high %v1351_v41, %v1366_v43 }
 0x446   :  { %1776 = vadd.xlane.f32.xlu1 %v1775_v44  ;;  %v1772_v52 = vsel %vm1526_vm2, %v6589_v40, 0.0  ;;  %v1332_v53 = vrot.slane %v1324_v47, %v6460_v31  ;;  %v1410_v57 = vcombine.low %v1316_v45, %v1323_v46  ;;  %v5039_v58 = vcombine.high %v1316_v45, %v1323_v46 }
 0x447   :  { %v1339_v54 = vrot.slane %v1325_v48, %v6460_v31  ;;  %1773 = vadd.xlane.f32.xlu0 %v1772_v52  ;;  %v6603_v59 = vpop.eup %5777  ;;  %v1382_v60 = vrot.slane %v1374_v50, %v6460_v31  ;;  %v1389_v61 = vrot.slane %v1375_v51, %v6460_v31  ;;  %v1390_v62 = vcombine.low %v1358_v42, %v1373_v49 }
 0x448   :  { %v1391_v63 = vcombine.high %v1358_v42, %v1373_v49  ;;  %v1417_v1 = vrot.slane %v1410_v57, %v6456_v25  ;;  %v1425_v2 = vrot.slane %v5039_v58, %v6456_v25  ;;  %v1778_v18 = vsel %vm1526_vm2, %v6603_v59, 0.0 }
 0x449   :  { %v1426_v3 = vcombine.low %v1332_v53, %v1339_v54  ;;  %v5040_v4 = vcombine.high %v1332_v53, %v1339_v54  ;;  %v1398_v5 = vrot.slane %v1390_v62, %v6460_v31  ;;  %v1460_v9 = vcombine.low %v1382_v60, %v1389_v61 }
 0x44a   :  { %v1405_v8 = vrot.slane %v1391_v63, %v6460_v31  ;;  %v5041_v12 = vcombine.high %v1382_v60, %v1389_v61  ;;  %v1442_v27 = vcombine.low %v1417_v1, %v1425_v2 }
 0x44b   :  { %v6611_v15 = vpop.eup %5779  ;;  %v1433_v16 = vrot.slane %v1426_v3, %v6456_v25  ;;  %v1441_v17 = vrot.slane %v5040_v4, %v6456_v25  ;;  %v1467_v11 = vrot.slane %v1460_v9, %v6456_v25  ;;  %1779 = vadd.xlane.f32.xlu0 %v1778_v18 }
 0x44c   :  { %v6617_v21 = vpop.eup %5781  ;;  %v1475_v19 = vrot.slane %v5041_v12, %v6456_v25  ;;  %v1476_v10 = vcombine.low %v1398_v5, %v1405_v8  ;;  %v5042_v22 = vcombine.high %v1398_v5, %v1405_v8  ;;  %v1784_v23 = vsel %vm1526_vm2, %v6611_v15, 0.0 }
 0x44d   :  { %v1450_v28 = vcombine.low %v1433_v16, %v1441_v17  ;;  %1785 = vadd.xlane.f32.xlu1 %v1784_v23  ;;  %v1781_v32 = vsel %vm1526_vm2, %v6617_v21, 0.0  ;;  %v1449_v33 = vrot.slane %v1442_v27, %v6460_v31 }
 0x44e   :  { %v1483_v29 = vrot.slane %v1476_v10, %v6456_v25  ;;  %v1491_v6 = vrot.slane %v5042_v22, %v6456_v25  ;;  %v1492_v30 = vcombine.low %v1467_v11, %v1475_v19 }
 0x44f   :  { %v1457_v34 = vrot.slane %v1450_v28, %v6460_v31  ;;  %1782 = vadd.xlane.f32.xlu0 %v1781_v32 }
 0x450   :  { %v1500_v37 = vcombine.low %v1483_v29, %v1491_v6  ;;  %v1499_v39 = vrot.slane %v1492_v30, %v6460_v31 }
 0x451   :  { %v1458_v36 = vcombine.low %v1449_v33, %v1457_v34  ;;  %v1459_v38 = vcombine.high %v1449_v33, %v1457_v34 }
 0x452   :  { %v1507_v41 = vrot.slane %v1500_v37, %v6460_v31 }
 0x453   :  { %v1514_v44 = vshrl.u32 %v1458_v36, 16  ;;  %v1522_v45 = vshrl.u32 %v1459_v38, 16 }
 0x454   :  { %v1508_v42 = vcombine.low %v1499_v39, %v1507_v41  ;;  %v1509_v43 = vcombine.high %v1499_v39, %v1507_v41 }
 0x456   :  { %v1512_v46 = vpack.i.b16 %v1508_v42, %v1458_v36  ;;  %v1515_v47 = vshrl.u32 %v1508_v42, 16  ;;  %v1520_v48 = vpack.i.b16 %v1509_v43, %v1459_v38  ;;  %v1523_v49 = vshrl.u32 %v1509_v43, 16 }
 0x458   :  { %5521 = vmatpush3.bf16.msra.mxu0 %v1512_v46  ;;  %v1516_v50 = vpack.i.b16 %v1515_v47, %v1514_v44  ;;  %v1524_v51 = vpack.i.b16 %v1523_v49, %v1522_v45 }
 0x459   :  { %5532 = vmatprep.subr.bf16.mxu0 %v5851_v26 }
 0x45a   :  { %5527 = vmatpush3.bf16.msra.mxu1 %v1516_v50 }
 0x45b   :  { %5538 = vmatprep.subr.bf16.mxu1 %v5851_v26 }
 0x4c6   :  { %v1765_v52 = vpop.xlane.xlu1 %1764 }
 0x4c7   :  { %5783 = vrcp.f32 %v1765_v52 }
 0x4ca   :  { %v1768_v53 = vpop.xlane.xlu0 %1767 }
 0x4cb   :  { %v1771_v54 = vpop.xlane.xlu1 %1770  ;;  %5785 = vrcp.f32 %v1768_v53 }
 0x4cc   :  { %5787 = vrcp.f32 %v1771_v54 }
 0x4cf   :  { %v1777_v58 = vpop.xlane.xlu1 %1776 }
 0x4d0   :  { %v1774_v57 = vpop.xlane.xlu0 %1773 }
 0x4d1   :  { %5789 = vrcp.f32 %v1774_v57 }
 0x4d2   :  { %5791 = vrcp.f32 %v1777_v58 }
 0x4d4   :  { %v1780_v60 = vpop.xlane.xlu0 %1779  ;;  %v5784_v61 = vpop.eup %5783 }
 0x4d5   :  { %5793 = vrcp.f32 %v1780_v60  ;;  %v1795_v2 = vmul.f32 %v5784_v61, %v6567_v13 }
 0x4d6   :  { %v1786_v62 = vpop.xlane.xlu1 %1785 }
 0x4d7   :  { %5795 = vrcp.f32 %v1786_v62 }
 0x4d8   :  { %v5786_v63 = vpop.eup %5785  ;;  %v1783_v1 = vpop.xlane.xlu0 %1782 }
 0x4d9   :  { %v1796_v3 = vmul.f32 %v5786_v63, %v6572_v14  ;;  %5797 = vrcp.f32 %v1783_v1  ;;  %v5788_v5 = vpop.eup %5787 }
 0x4da   :  { %v1797_v9 = vmul.f32 %v5788_v5, %v6574_v24 }
 0x4db   :  { %v1803_v4 = vpack.c.bf16 %v1796_v3, %v1795_v2 }
 0x4dd   :  { %5523 = vmatmul.mubr.msk.bf16.vlgmr.msra.gmra.mxu0 %vm1526_vm2, %v1803_v4 }
 0x4de   :  { %v5790_v8 = vpop.eup %5789  ;;  %5533 = vmatpush3.bf16.msra.mxu0 %v1520_v48  ;;  %5534 = vmatprep.mubr.msk.bf16.mxu0 %vm5852_vm0, %v5851_v26 }
 0x4df   :  { %v1798_v12 = vmul.f32 %v5790_v8, %v6589_v40  ;;  %5544 = vmatprep.subr.bf16.mxu0 %v5851_v26  ;;  %v5792_v16 = vpop.eup %5791 }
 0x4e0   :  { %v1799_v14 = vmul.f32 %v5792_v16, %v6585_v35  ;;  %v5687_v35 = vld [vmem:[%s7278_s4 + $0x18] sm:$0xff]  }
 0x4e1   :  { %v1804_v13 = vpack.c.bf16 %v1798_v12, %v1797_v9 }
 0x4e2   :  { %v5794_v17 = vpop.eup %5793 }
 0x4e3   :  { %5529 = vmatmul.mubr.msk.bf16.vlgmr.msra.gmra.mxu1 %vm1526_vm2, %v1804_v13  ;;  %v1800_v18 = vmul.f32 %v5794_v17, %v6603_v59  ;;  %v5688_v59 = vld [vmem:[%s7278_s4 + $0x10] sm:$0xff]  }
 0x4e4   :  { %5539 = vmatpush3.bf16.msra.mxu1 %v1524_v51  ;;  %5540 = vmatprep.mubr.msk.bf16.mxu1 %vm5852_vm0, %v5851_v26  ;;  %v5796_v11 = vpop.eup %5795 }
 0x4e5   :  { %v1805_v19 = vpack.c.bf16 %v1800_v18, %v1799_v14  ;;  %v1802_v24 = vmul.f32 %v5796_v11, %v6611_v15 }
 0x4e6   :  { %v5798_v40 = vpop.eup %5797 }
 0x4e7   :  { %5535 = vmatmul.mubr.msk.bf16.vlgmr.msra.gmra.mxu0 %vm1526_vm2, %v1805_v19  ;;  %v1801_v10 = vmul.f32 %v5798_v40, %v6617_v21 }
 0x4e8   :  { %5552 = vmatprep.mubr.msk.bf16.mxu0 %vm5852_vm0, %v5851_v26  ;;  %5545 = vmatpush3.bf16.msra.mxu0 %v5687_v35 }
 0x4e9   :  { %v1806_v22 = vpack.c.bf16 %v1802_v24, %v1801_v10  ;;  %5546 = vmatprep.subr.bf16.mxu0 %v5851_v26 }
 0x4eb   :  { %5541 = vmatmul.mubr.msk.bf16.vlgmr.msra.gmra.mxu1 %vm1526_vm2, %v1806_v22 }
 0x4ec   :  { %2518 = vmatprep.mubr.bf16.mxu1 %v5849_v0  ;;  %5547 = vmatpush3.bf16.msra.mxu0 %v5688_v59 }
 0x4ed   :  { %5548 = vmatprep.subr.bf16.mxu0 %v5851_v26 }
 0x59d   :  { %v1844_v15 = vpop.f32.mrf.mxu0 }
 0x59f   :  { %v5524_v21 = vpop.f32.mrf.mxu0 }
 0x5a1   :  { %v1847_v23 = vpop.f32.mrf.mxu0 }
 0x5a3   :  { %v1888_v27 = vpop.f32.mrf.mxu1  ;;  %v5525_v28 = vpop.f32.mrf.mxu0 }
 0x5a4   :  { %v5689_v28 = vld [vmem:[%s7278_s4 + $0x8] sm:$0xff]  }
 0x5a5   :  { %v5530_v29 = vpop.f32.mrf.mxu1  ;;  %5549 = vmatpush3.bf16.msra.mxu0 %v5689_v28 }
 0x5a6   :  { %5550 = vmatprep.subr.bf16.mxu0 %v5851_v26 }
 0x5a7   :  { %v1891_v6 = vpop.f32.mrf.mxu1  ;;  %v1932_v30 = vpop.f32.mrf.mxu0 }
 0x5a8   :  { %v1983_v34 = vcombine.low %v1844_v15, %v1932_v30  ;;  %v1984_v37 = vcombine.high %v1844_v15, %v1932_v30 }
 0x5a9   :  { %v5531_v32 = vpop.f32.mrf.mxu1  ;;  %v5536_v33 = vpop.f32.mrf.mxu0 }
 0x5aa   :  { %v1991_v44 = vrot.slane %v1983_v34, %v6456_v25  ;;  %v1998_v45 = vrot.slane %v1984_v37, %v6456_v25 }
 0x5ab   :  { %v1935_v36 = vpop.f32.mrf.mxu0  ;;  %v1976_v38 = vpop.f32.mrf.mxu1 }
 0x5ac   :  { %v1999_v39 = vcombine.low %v1888_v27, %v1976_v38  ;;  %v2000_v41 = vcombine.high %v1888_v27, %v1976_v38  ;;  %v2051_v48 = vcombine.low %v1847_v23, %v1935_v36  ;;  %v2052_v49 = vcombine.high %v1847_v23, %v1935_v36 }
 0x5ad   :  { %v5537_v42 = vpop.f32.mrf.mxu0  ;;  %v5542_v43 = vpop.f32.mrf.mxu1 }
 0x5ae   :  { %v2007_v46 = vrot.slane %v1999_v39, %v6456_v25  ;;  %v2014_v47 = vrot.slane %v2000_v41, %v6456_v25  ;;  %v2059_v2 = vrot.slane %v2051_v48, %v6456_v25  ;;  %v2066_v3 = vrot.slane %v2052_v49, %v6456_v25 }
 0x5af   :  { %v1979_v50 = vpop.f32.mrf.mxu1 }
 0x5b0   :  { %v2015_v51 = vcombine.low %v1991_v44, %v2007_v46  ;;  %v2016_v52 = vcombine.high %v1991_v44, %v2007_v46  ;;  %v2031_v53 = vcombine.low %v1998_v45, %v2014_v47  ;;  %v2032_v54 = vcombine.high %v1998_v45, %v2014_v47  ;;  %v5690_v44 = vld [vmem:[%s7278_s4] sm:$0xff]  }
 0x5b1   :  { %v2067_v57 = vcombine.low %v1891_v6, %v1979_v50  ;;  %v2068_v58 = vcombine.high %v1891_v6, %v1979_v50  ;;  %v5543_v60 = vpop.f32.mrf.mxu1  ;;  %5551 = vmatpush3.bf16.msra.mxu0 %v5690_v44  ;;  %v5703_v44 = vld [vmem:[%s7281_s8 + $0x78] sm:$0xff]  }
 0x5b2   :  { %v2023_v61 = vrot.slane %v2015_v51, %v6460_v31  ;;  %v2030_v62 = vrot.slane %v2016_v52, %v6460_v31  ;;  %v2039_v63 = vrot.slane %v2031_v53, %v6460_v31  ;;  %v2046_v1 = vrot.slane %v2032_v54, %v6460_v31  ;;  %5414 = vmatprep.subr.bf16.mxu0 %v5703_v44 }
 0x5b3   :  { %v2075_v4 = vrot.slane %v2067_v57, %v6456_v25  ;;  %v2082_v5 = vrot.slane %v2068_v58, %v6456_v25 }
 0x5b4   :  { %v2119_v8 = vcombine.low %v2023_v61, %v2030_v62  ;;  %v5051_v9 = vcombine.high %v2023_v61, %v2030_v62  ;;  %v2135_v12 = vcombine.low %v2039_v63, %v2046_v1  ;;  %v5052_v16 = vcombine.high %v2039_v63, %v2046_v1 }
 0x5b5   :  { %v2083_v13 = vcombine.low %v2059_v2, %v2075_v4  ;;  %v2084_v17 = vcombine.high %v2059_v2, %v2075_v4  ;;  %v2099_v14 = vcombine.low %v2066_v3, %v2082_v5  ;;  %v2100_v18 = vcombine.high %v2066_v3, %v2082_v5 }
 0x5b6   :  { %v2126_v11 = vrot.slane %v2119_v8, %v6456_v25  ;;  %v2134_v19 = vrot.slane %v5051_v9, %v6456_v25  ;;  %v2142_v24 = vrot.slane %v2135_v12, %v6456_v25  ;;  %v2150_v40 = vrot.slane %v5052_v16, %v6456_v25 }
 0x5b7   :  { %v2091_v10 = vrot.slane %v2083_v13, %v6460_v31  ;;  %v2098_v22 = vrot.slane %v2084_v17, %v6460_v31  ;;  %v2107_v35 = vrot.slane %v2099_v14, %v6460_v31  ;;  %v2114_v59 = vrot.slane %v2100_v18, %v6460_v31 }
 0x5b8   :  { %v2152_v15 = vcombine.high %v2126_v11, %v2134_v19  ;;  %v2168_v21 = vcombine.high %v2142_v24, %v2150_v40  ;;  %v2151_v23 = vcombine.low %v2126_v11, %v2134_v19  ;;  %v2167_v27 = vcombine.low %v2142_v24, %v2150_v40 }
 0x5b9   :  { %v2187_v29 = vcombine.low %v2091_v10, %v2098_v22  ;;  %v5053_v6 = vcombine.high %v2091_v10, %v2098_v22  ;;  %v2203_v30 = vcombine.low %v2107_v35, %v2114_v59  ;;  %v5054_v32 = vcombine.high %v2107_v35, %v2114_v59  ;;  %v5055_v22 = vld [vmem:[%s7279_s5] ss:$0 sm:$0xff] }
 0x5ba   :  { %v2159_v33 = vrot.slane %v2151_v23, %v6460_v31  ;;  %v2175_v34 = vrot.slane %v2167_v27, %v6460_v31  ;;  %v2166_v41 = vrot.slane %v2152_v15, %v6460_v31  ;;  %v2182_v42 = vrot.slane %v2168_v21, %v6460_v31 }
 0x5bb   :  { %v2194_v37 = vrot.slane %v2187_v29, %v6456_v25  ;;  %v2202_v36 = vrot.slane %v5053_v6, %v6456_v25  ;;  %v2210_v38 = vrot.slane %v2203_v30, %v6456_v25  ;;  %v2218_v39 = vrot.slane %v5054_v32, %v6456_v25 }
 0x5bc   :  { %v2183_v43 = vcombine.low %v2159_v33, %v2175_v34  ;;  %v2185_v53 = vcombine.low %v2166_v41, %v2182_v42  ;;  %v2184_v57 = vcombine.high %v2159_v33, %v2175_v34  ;;  %v2186_v1 = vcombine.high %v2166_v41, %v2182_v42  ;;  %v5697_v41 = vld [vmem:[%s7280_s6 + $0x10] ss:$8 sps:$4 sm:$0xff]   ;;  %v5702_v42 = vld [vmem:[%s7280_s6 + $0x4] ss:$8 sps:$4 sm:$0xff]  }
 0x5bd   :  { %v2220_v45 = vcombine.high %v2194_v37, %v2202_v36  ;;  %v2236_v46 = vcombine.high %v2210_v38, %v2218_v39  ;;  %v2219_v47 = vcombine.low %v2194_v37, %v2202_v36  ;;  %v2235_v48 = vcombine.low %v2210_v38, %v2218_v39  ;;  %v5693_v37 = vld [vmem:[%s7280_s6 + $0x34] ss:$8 sps:$4 sm:$0xff]   ;;  %v5696_v36 = vld [vmem:[%s7280_s6 + $0x24] ss:$8 sps:$4 sm:$0xff]   ;;  %v5694_v38 = vld [vmem:[%s7280_s6 + $0x20] ss:$8 sps:$4 sm:$0xff]  }
 0x5be   :  { %2494 = vmatprep.subr.bf16.mxu1 %v5693_v37  ;;  %v5699_v39 = vld [vmem:[%s7280_s6 + $0x14] ss:$8 sps:$4 sm:$0xff]  }
 0x5bf   :  { %v2234_v49 = vrot.slane %v2220_v45, %v6460_v31  ;;  %v2250_v50 = vrot.slane %v2236_v46, %v6460_v31  ;;  %v2227_v51 = vrot.slane %v2219_v47, %v6460_v31  ;;  %v2243_v52 = vrot.slane %v2235_v48, %v6460_v31  ;;  %v5704_v45 = vld [vmem:[%s7281_s8 + $0x38] sm:$0xff]   ;;  %v5705_v46 = vld [vmem:[%s7281_s8 + $0x70] sm:$0xff]   ;;  %v5707_v48 = vld [vmem:[%s7281_s8 + $0x68] sm:$0xff]  }
 0x5c0   :  { %v5706_v47 = vld [vmem:[%s7281_s8 + $0x30] sm:$0xff]  }
 0x5c1   :  { %v2253_v54 = vcombine.low %v2234_v49, %v2250_v50  ;;  %v2252_v58 = vcombine.high %v2227_v51, %v2243_v52  ;;  %v2251_v60 = vcombine.low %v2227_v51, %v2243_v52  ;;  %v2254_v63 = vcombine.high %v2234_v49, %v2250_v50  ;;  %v5708_v49 = vld [vmem:[%s7281_s8 + $0x28] sm:$0xff]   ;;  %v5709_v50 = vld [vmem:[%s7281_s8 + $0x60] sm:$0xff]   ;;  %v5711_v52 = vld [vmem:[%s7281_s8 + $0x58] sm:$0xff]  }
 0x5c2   :  { %v5710_v51 = vld [vmem:[%s7281_s8 + $0x20] sm:$0xff]  }
 0x5c3   :  { %v5646_v61 = vpack.i.bf16 %v2253_v54, %v2185_v53  ;;  %v5641_v62 = vpack.i.bf16 %v2252_v58, %v2184_v57  ;;  %v5651_v2 = vpack.i.bf16 %v2254_v63, %v2186_v1  ;;  %v5712_v53 = vld [vmem:[%s7281_s8 + $0x18] sm:$0xff]  }
 0x5c5   :  { %5647 = vrot.lane.b32.xlu1 %v5646_v61, %s5858_s20  ;;  %5642 = vrot.lane.b32.xlu0 %v5641_v62, %s5859_s21 }
 0x5c9   :  { %5652 = vrot.lane.b32.xlu1 %v5651_v2, %s5860_s22 }
 0x637   :  { %v5648_v3 = vpop.permute.xlu1 %5647  ;;  %v5643_v4 = vpop.permute.xlu0 %5642 }
 0x638   :  { %v5645_v5 = vunpack.i.h.bf16 %v5643_v4  ;;  %v5644_v8 = vunpack.i.l.bf16 %v5643_v4  ;;  %v5650_v9 = vunpack.i.h.bf16 %v5648_v3  ;;  %v5649_v12 = vunpack.i.l.bf16 %v5648_v3 }
 0x63a   :  { %v2279_v16 = vsel %vm1526_vm2, %v2183_v43, %v5644_v8  ;;  %v2280_v13 = vsel %vm1526_vm2, %v2251_v60, %v5645_v5  ;;  %v5700_v43 = vld [vmem:[%s7280_s6] ss:$8 sps:$4 sm:$0xff]  }
 0x63b   :  { %v5653_v17 = vpop.permute.xlu1 %5652  ;;  %v2282_v11 = vsel %vm2281_vm3, %v2279_v16, %v5649_v12  ;;  %v2283_v19 = vsel %vm2281_vm3, %v2280_v13, %v5650_v9 }
 0x63c   :  { %v5655_v14 = vunpack.i.h.bf16 %v5653_v17  ;;  %v5654_v18 = vunpack.i.l.bf16 %v5653_v17  ;;  %v5061_v17 = vld [vmem:[%s7282_s10] ss:$0 sm:$0xff] }
 0x63e   :  { %v2285_v24 = vsel %vm2284_vm4, %v2282_v11, %v5654_v18  ;;  %v2286_v40 = vsel %vm2284_vm4, %v2283_v19, %v5655_v14 }
 0x63f   :  { %v2287_v10 = vpack.c.bf16 %v2286_v40, %v2285_v24  ;;  %v5062_v24 = vld [vmem:[%s7283_s11] ss:$0 sm:$0xff] }
 0x641   :  { %5553 = vmatmul.mubr.msk.bf16.vlgmr.msra.gmra.mxu0 %vm624_vm1, %v2287_v10 }
 0x642   :  { %5415 = vmatpush3.bf16.msra.mxu0 %v5704_v45 }
 0x643   :  { %5416 = vmatprep.subr.bf16.mxu0 %v5705_v46 }
 0x646   :  { %5417 = vmatpush3.bf16.msra.mxu0 %v5706_v47 }
 0x647   :  { %5418 = vmatprep.subr.bf16.mxu0 %v5707_v48 }
 0x64a   :  { %5419 = vmatpush3.bf16.msra.mxu0 %v5708_v49  ;;  %v5072_v49 = vld [vmem:[%s7285_s9] ss:$0 sm:$0xff] }
 0x64b   :  { %5420 = vmatprep.subr.bf16.mxu0 %v5709_v50 }
 0x64e   :  { %5421 = vmatpush3.bf16.msra.mxu0 %v5710_v51 }
 0x64f   :  { %5422 = vmatprep.subr.bf16.mxu0 %v5711_v52 }
 0x652   :  { %5423 = vmatpush3.bf16.msra.mxu0 %v5712_v53 }
 0x701   :  { %v2364_v35 = vpop.f32.mrf.mxu0 }
 0x702   :  { %v2365_v59 = vadd.f32 %v5055_v22, %v2364_v35 }
 0x703   :  { %v5554_v15 = vpop.f32.mrf.mxu0 }
 0x704   :  { %v6714_v21 = vadd.f32 %v2365_v59, %v6412_v55  ;;  %v5713_v59 = vld [vmem:[%s7281_s8 + $0x50] sm:$0xff]  }
 0x705   :  { %v2367_v23 = vpop.f32.mrf.mxu0  ;;  %v5714_v15 = vld [vmem:[%s7281_s8 + $0x10] sm:$0xff]   ;;  %5424 = vmatprep.subr.bf16.mxu0 %v5713_v59 }
 0x706   :  { %v2368_v27 = vadd.f32 %v5055_v22, %v2367_v23  ;;  %v2375_v28 = vsel %vm624_vm1, %v6714_v21, 0.0  ;;  %v2384_v29 = vmul.f32 %v6714_v21, %v6714_v21  ;;  %5425 = vmatpush3.bf16.msra.mxu0 %v5714_v15  ;;  %v5716_v23 = vld [vmem:[%s7281_s8 + $0x8] sm:$0xff]  }
 0x707   :  { %2376 = vadd.xlane.f32.xlu0 %v2375_v28  ;;  %v5555_v6 = vpop.f32.mrf.mxu0  ;;  %v5718_v28 = vld [vmem:[%s7281_s8] sm:$0xff]  }
 0x708   :  { %v6721_v30 = vadd.f32 %v2368_v27, %v6414_v56  ;;  %v2386_v32 = vsel %vm624_vm1, %v2384_v29, 0.0  ;;  %v5691_v56 = vld [vmem:[%s7280_s6 + $0x30] ss:$8 sps:$4 sm:$0xff]   ;;  %v5717_v27 = vld [vmem:[%s7281_s8 + $0x40] sm:$0xff]   ;;  %v2439_v29 = vsub.s32 1, %v6449_v20  ;;  %v2435_v6 = vsub.s32 0, %v6449_v20 }
 0x709   :  { %2495 = vmatpush1.bf16.msra.mxu1 %v5691_v56  ;;  %v5215_v20 = vld [vmem:[%s7285_s9 + $0x1] ss:$0 sm:$0xff] }
 0x70a   :  { %v2378_v33 = vsel %vm624_vm1, %v6721_v30, 0.0  ;;  %v2385_v55 = vmul.f32 %v6721_v30, %v6721_v30  ;;  %2496 = vmatprep.subr.bf16.mxu1 %v5696_v36 }
 0x70b   :  { %2387 = vadd.xlane.f32.xlu0 %v2386_v32  ;;  %2379 = vadd.xlane.f32.xlu1 %v2378_v33 }
 0x70c   :  { %v2389_v34 = vsel %vm624_vm1, %v2385_v55, 0.0 }
 0x70d   :  { %2497 = vmatpush1.bf16.msra.mxu1 %v5694_v38 }
 0x70e   :  { %2498 = vmatprep.subr.bf16.mxu1 %v5699_v39 }
 0x70f   :  { %2390 = vadd.xlane.f32.xlu0 %v2389_v34 }
 0x711   :  { %2499 = vmatpush1.bf16.msra.mxu1 %v5697_v41 }
 0x712   :  { %2500 = vmatprep.subr.bf16.mxu1 %v5702_v42 }
 0x715   :  { %2501 = vmatpush1.bf16.msra.mxu1 %v5700_v43 }
 0x790   :  { %v2377_v54 = vpop.xlane.xlu0 %2376 }
 0x791   :  { %v2382_v57 = vmul.f32 0.015625, %v2377_v54 }
 0x793   :  { %v2396_v61 = vmul.f32 %v2382_v57, %v2382_v57  ;;  %v2394_v12 = vsub.f32 %v6714_v21, %v2382_v57  ;;  %v5715_v21 = vld [vmem:[%s7281_s8 + $0x48] sm:$0xff]  }
 0x794   :  { %v2388_v58 = vpop.xlane.xlu0 %2387  ;;  %v2380_v60 = vpop.xlane.xlu1 %2379  ;;  %5426 = vmatprep.subr.bf16.mxu0 %v5715_v21 }
 0x795   :  { %v2392_v62 = vmul.f32 0.015625, %v2388_v58  ;;  %v2383_v63 = vmul.f32 0.015625, %v2380_v60  ;;  %5427 = vmatpush3.bf16.msra.mxu0 %v5716_v23 }
 0x796   :  { %5428 = vmatprep.subr.bf16.mxu0 %v5717_v27 }
 0x797   :  { %v2398_v1 = vsub.f32 %v2392_v62, %v2396_v61  ;;  %v2397_v4 = vmul.f32 %v2383_v63, %v2383_v63  ;;  %v2395_v14 = vsub.f32 %v6721_v30, %v2383_v63  ;;  %v2431_v30 = vld [vmem:[%s7284_s7] sm:$0x3] }
 0x798   :  { %v2391_v2 = vpop.xlane.xlu0 %2390  ;;  %v2440_v33 = vrot.slane %v2431_v30, %v2439_v29  ;;  %v2436_v55 = vrot.slane %v2431_v30, %v2435_v6 }
 0x799   :  { %v2400_v3 = vadd.f32 1e-05, %v2398_v1  ;;  %v2393_v5 = vmul.f32 0.015625, %v2391_v2  ;;  %5429 = vmatpush3.bf16.msra.mxu0 %v5718_v28 }
 0x79a   :  { %5568 = vmatprep.subr.bf16.mxu0 %v5851_v26 }
 0x79b   :  { %5799 = vrsqrt.f32 %v2400_v3  ;;  %v2399_v8 = vsub.f32 %v2393_v5, %v2397_v4  ;;  %v5721_v5 = vld [vmem:[%s7276_s3 + $0xac] ss:$12 sps:$4 sm:$0xff]  }
 0x79c   :  { %2854 = vmatprep.subr.bf16.mxu1 %v5721_v5 }
 0x79d   :  { %v2401_v9 = vadd.f32 1e-05, %v2399_v8  ;;  %v5719_v8 = vld [vmem:[%s7276_s3 + $0xa8] ss:$12 sps:$4 sm:$0xff]  }
 0x79f   :  { %5801 = vrsqrt.f32 %v2401_v9  ;;  %v5724_v9 = vld [vmem:[%s7276_s3 + $0x94] ss:$12 sps:$4 sm:$0xff]  }
 0x7a8   :  { %v5800_v16 = vpop.eup %5799 }
 0x7a9   :  { %v2404_v13 = vmul.f32 %v5800_v16, %v2394_v12  ;;  %v5722_v12 = vld [vmem:[%s7276_s3 + $0x90] ss:$12 sps:$4 sm:$0xff]  }
 0x7aa   :  { %v5727_v16 = vld [vmem:[%s7276_s3 + $0x7c] ss:$12 sps:$4 sm:$0xff]  }
 0x7ab   :  { %v2412_v19 = vmul.f32 %v5061_v17, %v2404_v13  ;;  %v5725_v13 = vld [vmem:[%s7276_s3 + $0x78] ss:$12 sps:$4 sm:$0xff]  }
 0x7ac   :  { %v5802_v18 = vpop.eup %5801 }
 0x7ad   :  { %v2405_v11 = vmul.f32 %v5802_v18, %v2395_v14  ;;  %v2420_v10 = vadd.f32 %v5062_v24, %v2412_v19  ;;  %v5730_v14 = vld [vmem:[%s7276_s3 + $0x64] ss:$12 sps:$4 sm:$0xff]  }
 0x7af   :  { %v2413_v40 = vmul.f32 %v5061_v17, %v2405_v11  ;;  %v5728_v17 = vld [vmem:[%s7276_s3 + $0x60] ss:$12 sps:$4 sm:$0xff]  }
 0x7b1   :  { %v2421_v22 = vadd.f32 %v5062_v24, %v2413_v40 }
 0x7b3   :  { %v2422_v35 = vpack.c.bf16 %v2421_v22, %v2420_v10 }
 0x7b5   :  { %5071 = vmatmul.mubr.msk.bf16.vlgmr.msra.gmra.mxu1 %vm624_vm1, %v2422_v35 }
 0x7b6   :  { %2878 = vmatprep.mubr.bf16.mxu1 %v5849_v0  ;;  %2855 = vmatpush1.bf16.msra.mxu1 %v5719_v8 }
 0x7b7   :  { %2856 = vmatprep.subr.bf16.mxu1 %v5724_v9 }
 0x7ba   :  { %2857 = vmatpush1.bf16.msra.mxu1 %v5722_v12 }
 0x7bb   :  { %2858 = vmatprep.subr.bf16.mxu1 %v5727_v16 }
 0x7be   :  { %2859 = vmatpush1.bf16.msra.mxu1 %v5725_v13 }
 0x7bf   :  { %2860 = vmatprep.subr.bf16.mxu1 %v5730_v14 }
 0x7c2   :  { %2861 = vmatpush1.bf16.msra.mxu1 %v5728_v17 }
 0x7c3   :  { %5556 = vmatprep.subr.bf16.mxu1 %v5851_v26 }
 0x875   :  { %v2520_v32 = vpop.f32.mrf.mxu1 }
 0x876   :  { %v2521_v38 = vadd.f32 %v2520_v32, %v2436_v55 }
 0x877   :  { %v2522_v34 = vpop.f32.mrf.mxu1 }
 0x878   :  { %v2523_v56 = vadd.f32 %v2522_v34, %v2440_v33  ;;  %v2529_v45 = vmax.f32 %v2521_v38, 0.0  ;;  %v5090_v38 = vld [vmem:[%s7287_s13] ss:$0 sm:$0xff] }
 0x879   :  { %v2524_v37 = vpop.f32.mrf.mxu1 }
 0x87a   :  { %v2525_v36 = vadd.f32 %v2524_v37, %v2436_v55  ;;  %v2530_v43 = vmax.f32 %v2523_v56, 0.0  ;;  %v5089_v55 = vld [vmem:[%s7286_s12] ss:$0 sm:$0xff] }
 0x87b   :  { %v2526_v39 = vpop.f32.mrf.mxu1 }
 0x87c   :  { %v2527_v41 = vadd.f32 %v2526_v39, %v2440_v33  ;;  %v2531_v42 = vmax.f32 %v2525_v36, 0.0 }
 0x87e   :  { %v2532_v44 = vmax.f32 %v2527_v41, 0.0  ;;  %v2533_v47 = vpack.c.bf16 %v2531_v42, %v2529_v45  ;;  %v5732_v45 = vld [vmem:[%s7276_s3 + $0x98] ss:$12 sps:$4 sm:$0xff]  }
 0x880   :  { %v2534_v46 = vpack.c.bf16 %v2532_v44, %v2530_v43  ;;  %v5731_v43 = vld [vmem:[%s7276_s3 + $0xb0] ss:$12 sps:$4 sm:$0xff]  }
 0x882   :  { %2702 = vmatprep.mubr.bf16.mxu0 %v2534_v46  ;;  %v5733_v46 = vld [vmem:[%s7276_s3 + $0x80] ss:$12 sps:$4 sm:$0xff]  }
 0x883   :  { %2703 = vmatmul.mubr.bf16.vlgmr.msra.gmra.mxu0 %v2533_v47  ;;  %v5734_v47 = vld [vmem:[%s7276_s3 + $0x68] ss:$12 sps:$4 sm:$0xff]  }
 0x884   :  { %5570 = vmatprep.mubr.msk.bf16.mxu0 %vm5852_vm0, %v5851_v26 }
 0x943   :  { %v5430_v48 = vpop.f32.mrf.mxu0 }
 0x945   :  { %v5431_v50 = vpop.f32.mrf.mxu0 }
 0x946   :  { %v5432_v51 = vadd.f32 %v5431_v50, %v5430_v48 }
 0x947   :  { %v5433_v52 = vpop.f32.mrf.mxu0 }
 0x948   :  { %v2705_v53 = vadd.f32 %v5432_v51, %v5072_v49 }
 0x949   :  { %v5434_v54 = vpop.f32.mrf.mxu0 }
 0x94a   :  { %v2711_v57 = vadd.f32 %v2705_v53, %v2420_v10  ;;  %v5435_v58 = vadd.f32 %v5434_v54, %v5433_v52 }
 0x94c   :  { %v2708_v60 = vadd.f32 %v5435_v58, %v5072_v49  ;;  %v2715_v61 = vsel %vm624_vm1, %v2711_v57, 0.0  ;;  %v2723_v62 = vmul.f32 %v2711_v57, %v2711_v57 }
 0x94d   :  { %2716 = vadd.xlane.f32.xlu1 %v2715_v61 }
 0x94e   :  { %v2712_v63 = vadd.f32 %v2708_v60, %v2421_v22  ;;  %v2725_v2 = vsel %vm624_vm1, %v2723_v62, 0.0 }
 0x950   :  { %v2718_v1 = vsel %vm624_vm1, %v2712_v63, 0.0  ;;  %v2724_v3 = vmul.f32 %v2712_v63, %v2712_v63 }
 0x951   :  { %2719 = vadd.xlane.f32.xlu0 %v2718_v1  ;;  %2726 = vadd.xlane.f32.xlu1 %v2725_v2 }
 0x952   :  { %v2728_v4 = vsel %vm624_vm1, %v2724_v3, 0.0 }
 0x955   :  { %2729 = vadd.xlane.f32.xlu0 %v2728_v4 }
 0x9d6   :  { %v2717_v18 = vpop.xlane.xlu1 %2716 }
 0x9d7   :  { %v2721_v11 = vmul.f32 0.015625, %v2717_v18 }
 0x9d9   :  { %v2735_v40 = vmul.f32 %v2721_v11, %v2721_v11  ;;  %v2733_v30 = vsub.f32 %v2711_v57, %v2721_v11 }
 0x9da   :  { %v2720_v19 = vpop.xlane.xlu0 %2719  ;;  %v2727_v24 = vpop.xlane.xlu1 %2726 }
 0x9db   :  { %v2722_v10 = vmul.f32 0.015625, %v2720_v19  ;;  %v2731_v22 = vmul.f32 0.015625, %v2727_v24 }
 0x9dd   :  { %v2737_v35 = vsub.f32 %v2731_v22, %v2735_v40  ;;  %v2736_v15 = vmul.f32 %v2722_v10, %v2722_v10  ;;  %v2734_v34 = vsub.f32 %v2712_v63, %v2722_v10 }
 0x9de   :  { %v2730_v59 = vpop.xlane.xlu0 %2729 }
 0x9df   :  { %v2739_v21 = vadd.f32 1e-05, %v2737_v35  ;;  %v2732_v23 = vmul.f32 0.015625, %v2730_v59 }
 0x9e1   :  { %5803 = vrsqrt.f32 %v2739_v21  ;;  %v2738_v27 = vsub.f32 %v2732_v23, %v2736_v15 }
 0x9e3   :  { %v2740_v28 = vadd.f32 1e-05, %v2738_v27 }
 0x9e5   :  { %5805 = vrsqrt.f32 %v2740_v28 }
 0x9ee   :  { %v5804_v32 = vpop.eup %5803 }
 0x9ef   :  { %v2743_v33 = vmul.f32 %v5804_v32, %v2733_v30 }
 0x9f1   :  { %v2751_v36 = vmul.f32 %v5089_v55, %v2743_v33 }
 0x9f2   :  { %v5806_v37 = vpop.eup %5805 }
 0x9f3   :  { %v2744_v56 = vmul.f32 %v5806_v37, %v2734_v34  ;;  %v6861_v41 = vadd.f32 %v5090_v38, %v2751_v36 }
 0x9f5   :  { %v2752_v39 = vmul.f32 %v5089_v55, %v2744_v56 }
 0x9f7   :  { %v6863_v42 = vadd.f32 %v5090_v38, %v2752_v39 }
 0x9f9   :  { %v2761_v44 = vpack.c.bf16 %v6863_v42, %v6861_v41 }
 0x9fb   :  { %5119 = vmatmul.mubr.msk.bf16.vlgmr.msra.gmra.mxu1 %vm624_vm1, %v2761_v44 }
 0x9fc   :  { %5557 = vmatpush3.bf16.msra.mxu1 %v5731_v43  ;;  %5564 = vmatprep.mubr.msk.bf16.mxu1 %vm5852_vm0, %v5851_v26 }
 0x9fd   :  { %5558 = vmatprep.subr.bf16.mxu1 %v5851_v26 }
 0xa00   :  { %5559 = vmatpush3.bf16.msra.mxu1 %v5732_v45 }
 0xa01   :  { %5560 = vmatprep.subr.bf16.mxu1 %v5851_v26 }
 0xa04   :  { %5561 = vmatpush3.bf16.msra.mxu1 %v5733_v46 }
 0xa05   :  { %5562 = vmatprep.subr.bf16.mxu1 %v5851_v26 }
 0xa08   :  { %5563 = vmatpush3.bf16.msra.mxu1 %v5734_v47 }
 0xa09   :  { %5574 = vmatprep.subr.bf16.mxu1 %v5851_v26 }
 0xa0b   :  { %5565 = vmatmul.mubr.msk.bf16.vlgmr.msra.gmra.mxu1 %vm624_vm1, %v2761_v44 }
 0xa0c   :  { %5576 = vmatprep.mubr.msk.bf16.mxu1 %vm5852_vm0, %v5851_v26 }
 0xabb   :  { %v2880_v48 = vpop.f32.mrf.mxu1 }
 0xabd   :  { %v2882_v49 = vpop.f32.mrf.mxu1 }
 0xabf   :  { %v2884_v50 = vpop.f32.mrf.mxu1 }
 0xac0   :  { %v2930_v53 = vpack.c.bf16 %v2884_v50, %v2880_v48 }
 0xac1   :  { %v2886_v51 = vpop.f32.mrf.mxu1 }
 0xac2   :  { %v3198_v52 = vpack.c.bf16 %v2886_v51, %v2882_v49  ;;  %v2942_v40 = vshrl.u32 %v2930_v53, 16 }
 0xac4   :  { %3202 = vrot.lane.b32.xlu0 %v3198_v52, %s5855_s0  ;;  %3200 = vrot.lane.b32.xlu1 %v3198_v52, %s5854_s24  ;;  %v3210_v1 = vshrl.u32 %v3198_v52, 16 }
 0xac8   :  { %2934 = vrot.lane.b32.xlu0 %v2930_v53, %s5855_s0  ;;  %3204 = vrot.lane.b32.xlu1 %v3198_v52, %s5853_s23 }
 0xacb   :  { %v2923_v54 = vpop.f32.mrf.mxu1 }
 0xacc   :  { %2932 = vrot.lane.b32.xlu1 %v2930_v53, %s5854_s24 }
 0xacd   :  { %v5566_v57 = vpop.f32.mrf.mxu1 }
 0xacf   :  { %v2926_v58 = vpop.f32.mrf.mxu1 }
 0xad0   :  { %v6894_v60 = vpack.c.bf16 %v2926_v58, %v2923_v54  ;;  %2936 = vrot.lane.b32.xlu1 %v2930_v53, %s5853_s23 }
 0xad1   :  { %v5567_v61 = vpop.f32.mrf.mxu1 }
 0xb36   :  { %v3201_v62 = vpop.permute.xlu1 %3200  ;;  %v3203_v3 = vpop.permute.xlu0 %3202 }
 0xb37   :  { %v3208_v63 = vpack.i.b16 %v3201_v62, %v3198_v52  ;;  %v3211_v2 = vshrl.u32 %v3201_v62, 16  ;;  %v3218_v9 = vshrl.u32 %v3203_v3, 16 }
 0xb39   :  { %v3212_v4 = vpack.i.b16 %v3211_v2, %v3210_v1  ;;  %v3222_v8 = vcombine.high %v3208_v63, %v6453_v7  ;;  %v3229_v17 = vrot.slane %v3208_v63, %v6456_v25 }
 0xb3a   :  { %v3205_v5 = vpop.permute.xlu1 %3204  ;;  %v2935_v37 = vpop.permute.xlu0 %2934 }
 0xb3b   :  { %v3216_v12 = vpack.i.b16 %v3205_v5, %v3203_v3  ;;  %v3219_v16 = vshrl.u32 %v3205_v5, 16  ;;  %v3288_v13 = vcombine.high %v3212_v4, %v6453_v7  ;;  %v3236_v24 = vrot.slane %v3222_v8, %v6456_v25 }
 0xb3c   :  { %v3295_v23 = vrot.slane %v3212_v4, %v6456_v25  ;;  %v2950_v52 = vshrl.u32 %v2935_v37, 16 }
 0xb3d   :  { %v3220_v14 = vpack.i.b16 %v3219_v16, %v3218_v9  ;;  %v3237_v18 = vcombine.high %v3216_v12, %v6453_v7  ;;  %v3244_v11 = vrot.slane %v3216_v12, %v6456_v25  ;;  %v3302_v27 = vrot.slane %v3288_v13, %v6456_v25 }
 0xb3e   :  { %v2933_v19 = vpop.permute.xlu1 %2932 }
 0xb3f   :  { %v2940_v10 = vpack.i.b16 %v2933_v19, %v2930_v53  ;;  %v2943_v22 = vshrl.u32 %v2933_v19, 16  ;;  %v3251_v35 = vrot.slane %v3237_v18, %v6456_v25  ;;  %v3252_v59 = vcombine.low %v3229_v17, %v3244_v11 }
 0xb40   :  { %v3253_v15 = vcombine.high %v3229_v17, %v3244_v11  ;;  %v3303_v21 = vcombine.high %v3220_v14, %v6453_v7  ;;  %v3310_v28 = vrot.slane %v3220_v14, %v6456_v25 }
 0xb41   :  { %v2944_v30 = vpack.i.b16 %v2943_v22, %v2942_v40  ;;  %v3260_v32 = vrot.slane %v3252_v59, %v6460_v31  ;;  %v3268_v55 = vcombine.low %v3236_v24, %v3251_v35  ;;  %v3269_v34 = vcombine.high %v3236_v24, %v3251_v35 }
 0xb42   :  { %v3267_v33 = vrot.slane %v3253_v15, %v6460_v31  ;;  %v3317_v56 = vrot.slane %v3303_v21, %v6456_v25  ;;  %v3318_v36 = vcombine.low %v3295_v23, %v3310_v28  ;;  %v3319_v38 = vcombine.high %v3295_v23, %v3310_v28  ;;  %v2937_v51 = vpop.permute.xlu1 %2936 }
 0xb43   :  { %v2954_v39 = vcombine.high %v2940_v10, %v6453_v7  ;;  %v3276_v43 = vrot.slane %v3268_v55, %v6460_v31  ;;  %v3283_v44 = vrot.slane %v3269_v34, %v6460_v31  ;;  %v2961_v57 = vrot.slane %v2940_v10, %v6456_v25 }
 0xb44   :  { %v3354_v45 = vcombine.low %v3260_v32, %v3267_v33  ;;  %v5125_v46 = vcombine.high %v3260_v32, %v3267_v33  ;;  %v3326_v47 = vrot.slane %v3318_v36, %v6460_v31  ;;  %v3333_v48 = vrot.slane %v3319_v38, %v6460_v31 }
 0xb45   :  { %v3334_v49 = vcombine.low %v3302_v27, %v3317_v56  ;;  %v3335_v50 = vcombine.high %v3302_v27, %v3317_v56  ;;  %v3370_v53 = vcombine.low %v3276_v43, %v3283_v44  ;;  %v5126_v54 = vcombine.high %v3276_v43, %v3283_v44 }
 0xb46   :  { %v3361_v62 = vrot.slane %v3354_v45, %v6456_v25  ;;  %v3369_v63 = vrot.slane %v5125_v46, %v6456_v25  ;;  %v2968_v1 = vrot.slane %v2954_v39, %v6456_v25  ;;  %v3020_v2 = vcombine.high %v2944_v30, %v6453_v7 }
 0xb47   :  { %v3342_v58 = vrot.slane %v3334_v49, %v6460_v31  ;;  %v3349_v61 = vrot.slane %v3335_v50, %v6460_v31  ;;  %v2948_v3 = vpack.i.b16 %v2937_v51, %v2935_v37  ;;  %v2951_v4 = vshrl.u32 %v2937_v51, 16 }
 0xb48   :  { %v3404_v5 = vcombine.low %v3326_v47, %v3333_v48  ;;  %v5127_v8 = vcombine.high %v3326_v47, %v3333_v48  ;;  %v3377_v9 = vrot.slane %v3370_v53, %v6456_v25  ;;  %v3385_v12 = vrot.slane %v5126_v54, %v6456_v25 }
 0xb49   :  { %v3027_v16 = vrot.slane %v2944_v30, %v6456_v25  ;;  %v2952_v13 = vpack.i.b16 %v2951_v4, %v2950_v52  ;;  %v2969_v17 = vcombine.high %v2948_v3, %v6453_v7  ;;  %v2976_v14 = vrot.slane %v2948_v3, %v6456_v25 }
 0xb4a   :  { %v3420_v18 = vcombine.low %v3342_v58, %v3349_v61  ;;  %v5128_v11 = vcombine.high %v3342_v58, %v3349_v61  ;;  %v3034_v19 = vrot.slane %v3020_v2, %v6456_v25  ;;  %v3386_v24 = vcombine.low %v3361_v62, %v3369_v63 }
 0xb4b   :  { %v2983_v40 = vrot.slane %v2969_v17, %v6456_v25  ;;  %v2984_v10 = vcombine.low %v2961_v57, %v2976_v14  ;;  %v2985_v22 = vcombine.high %v2961_v57, %v2976_v14  ;;  %v3035_v35 = vcombine.high %v2952_v13, %v6453_v7 }
 0xb4c   :  { %v3042_v59 = vrot.slane %v2952_v13, %v6456_v25  ;;  %v3394_v15 = vcombine.low %v3377_v9, %v3385_v12  ;;  %v3411_v21 = vrot.slane %v3404_v5, %v6456_v25  ;;  %v3419_v23 = vrot.slane %v5127_v8, %v6456_v25 }
 0xb4d   :  { %v2992_v27 = vrot.slane %v2984_v10, %v6460_v31  ;;  %v2999_v28 = vrot.slane %v2985_v22, %v6460_v31  ;;  %v3000_v30 = vcombine.low %v2968_v1, %v2983_v40  ;;  %v3001_v32 = vcombine.high %v2968_v1, %v2983_v40 }
 0xb4e   :  { %v3049_v33 = vrot.slane %v3035_v35, %v6456_v25  ;;  %v3050_v55 = vcombine.low %v3027_v16, %v3042_v59  ;;  %v3051_v34 = vcombine.high %v3027_v16, %v3042_v59  ;;  %v3427_v37 = vrot.slane %v3420_v18, %v6456_v25 }
 0xb4f   :  { %v3008_v56 = vrot.slane %v3000_v30, %v6460_v31  ;;  %v3015_v36 = vrot.slane %v3001_v32, %v6460_v31  ;;  %v3086_v38 = vcombine.low %v2992_v27, %v2999_v28  ;;  %v5121_v39 = vcombine.high %v2992_v27, %v2999_v28 }
 0xb50   :  { %v3058_v43 = vrot.slane %v3050_v55, %v6460_v31  ;;  %v3065_v44 = vrot.slane %v3051_v34, %v6460_v31  ;;  %v3066_v45 = vcombine.low %v3034_v19, %v3049_v33  ;;  %v3067_v46 = vcombine.high %v3034_v19, %v3049_v33 }
 0xb51   :  { %v3093_v47 = vrot.slane %v3086_v38, %v6456_v25  ;;  %v3101_v48 = vrot.slane %v5121_v39, %v6456_v25  ;;  %v3102_v49 = vcombine.low %v3008_v56, %v3015_v36  ;;  %v5122_v50 = vcombine.high %v3008_v56, %v3015_v36 }
 0xb52   :  { %v3074_v51 = vrot.slane %v3066_v45, %v6460_v31  ;;  %v3081_v52 = vrot.slane %v3067_v46, %v6460_v31  ;;  %v3136_v53 = vcombine.low %v3058_v43, %v3065_v44  ;;  %v5123_v54 = vcombine.high %v3058_v43, %v3065_v44 }
 0xb53   :  { %v3109_v57 = vrot.slane %v3102_v49, %v6456_v25  ;;  %v3117_v58 = vrot.slane %v5122_v50, %v6456_v25  ;;  %v3401_v61 = vrot.slane %v3394_v15, %v6460_v31  ;;  %v3435_v62 = vrot.slane %v5128_v11, %v6456_v25 }
 0xb54   :  { %v3143_v63 = vrot.slane %v3136_v53, %v6456_v25  ;;  %v3151_v1 = vrot.slane %v5123_v54, %v6456_v25  ;;  %v3152_v2 = vcombine.low %v3074_v51, %v3081_v52  ;;  %v5124_v3 = vcombine.high %v3074_v51, %v3081_v52  ;;  %v5847_v54 = vld [vmem:[%s7277_s1] sm:$0xff] }
 0xb55   :  { %v3126_v4 = vcombine.low %v3109_v57, %v3117_v58  ;;  %v3393_v5 = vrot.slane %v3386_v24, %v6460_v31  ;;  %v3436_v8 = vcombine.low %v3411_v21, %v3419_v23  ;;  %v3444_v9 = vcombine.low %v3427_v37, %v3435_v62 }
 0xb56   :  { %v3118_v12 = vcombine.low %v3093_v47, %v3101_v48  ;;  %v3159_v16 = vrot.slane %v3152_v2, %v6456_v25  ;;  %v3167_v13 = vrot.slane %v5124_v3, %v6456_v25  ;;  %v3168_v17 = vcombine.low %v3143_v63, %v3151_v1  ;;  %v5848_v3 = vld [vmem:[%s7277_s1 + $0x8] sm:$0xff] }
 0xb57   :  { %v3402_v14 = vcombine.low %v3393_v5, %v3401_v61  ;;  %v3443_v18 = vrot.slane %v3436_v8, %v6460_v31  ;;  %v3451_v11 = vrot.slane %v3444_v9, %v6460_v31  ;;  %v3133_v10 = vrot.slane %v3126_v4, %v6460_v31 }
 0xb58   :  { %v3176_v19 = vcombine.low %v3159_v16, %v3167_v13  ;;  %v3125_v22 = vrot.slane %v3118_v12, %v6460_v31  ;;  %v3175_v24 = vrot.slane %v3168_v17, %v6460_v31  ;;  %v3403_v33 = vcombine.high %v3393_v5, %v3401_v61 }
 0xb59   :  { %v3452_v40 = vcombine.low %v3443_v18, %v3451_v11  ;;  %v3457_v15 = vshrl.u32 %v3402_v14, 16  ;;  %v3453_v23 = vcombine.high %v3443_v18, %v3451_v11 }
 0xb5a   :  { %v3183_v35 = vrot.slane %v3176_v19, %v6460_v31  ;;  %v3134_v32 = vcombine.low %v3125_v22, %v3133_v10  ;;  %v3463_v39 = vshrl.u32 %v3403_v33, 16  ;;  %v3135_v48 = vcombine.high %v3125_v22, %v3133_v10 }
 0xb5b   :  { %v3456_v59 = vpack.i.b16 %v3452_v40, %v3402_v14  ;;  %v3458_v21 = vshrl.u32 %v3452_v40, 16  ;;  %v3464_v37 = vshrl.u32 %v3453_v23, 16  ;;  %v3462_v36 = vpack.i.b16 %v3453_v23, %v3403_v33 }
 0xb5c   :  { %v3184_v27 = vcombine.low %v3175_v24, %v3183_v35  ;;  %v3189_v38 = vshrl.u32 %v3134_v32, 16  ;;  %v3185_v46 = vcombine.high %v3175_v24, %v3183_v35  ;;  %v3195_v51 = vshrl.u32 %v3135_v48, 16 }
 0xb5d   :  { %v3742_v28 = vsel %vm1526_vm2, %v3456_v59, 0  ;;  %v3459_v30 = vpack.i.b16 %v3458_v21, %v3457_v15  ;;  %v3465_v44 = vpack.i.b16 %v3464_v37, %v3463_v39  ;;  %v3836_v45 = vsel %vm1526_vm2, %v3462_v36, 0 }
 0xb5e   :  { %5569 = vmatpush3.bf16.xpose.msra.mxu0 %v3742_v28  ;;  %v3190_v34 = vshrl.u32 %v3184_v27, 16  ;;  %v3188_v56 = vpack.i.b16 %v3184_v27, %v3134_v32  ;;  %v3196_v49 = vshrl.u32 %v3185_v46, 16  ;;  %v3194_v50 = vpack.i.b16 %v3185_v46, %v3135_v48 }
 0xb5f   :  { %v3789_v55 = vsel %vm1526_vm2, %v3459_v30, 0  ;;  %5580 = vmatprep.subr.bf16.mxu0 %v5851_v26  ;;  %v3883_v47 = vsel %vm1526_vm2, %v3465_v44, 0 }
 0xb60   :  { %5575 = vmatpush3.bf16.xpose.msra.mxu1 %v3789_v55  ;;  %v3191_v43 = vpack.i.b16 %v3190_v34, %v3189_v38  ;;  %v3197_v52 = vpack.i.b16 %v3196_v49, %v3195_v51 }
 0xb61   :  { %5586 = vmatprep.subr.bf16.mxu1 %v5851_v26 }
 0xb65   :  { %5571 = vmatmul.mubr.msk.bf16.vlgmr.msra.gmra.mxu0 %vm1526_vm2, %v3188_v56 }
 0xb66   :  { %5581 = vmatpush3.bf16.xpose.msra.mxu0 %v3836_v45  ;;  %5582 = vmatprep.mubr.msk.bf16.mxu0 %vm5852_vm0, %v5851_v26 }
 0xb67   :  { %5577 = vmatmul.mubr.msk.bf16.vlgmr.msra.gmra.mxu1 %vm1526_vm2, %v3191_v43  ;;  %5592 = vmatprep.subr.bf16.mxu0 %v5851_v26 }
 0xb68   :  { %5587 = vmatpush3.bf16.xpose.msra.mxu1 %v3883_v47  ;;  %5588 = vmatprep.mubr.msk.bf16.mxu1 %vm5852_vm0, %v5851_v26 }
 0xb69   :  { %5598 = vmatprep.subr.bf16.mxu1 %v5851_v26 }
 0xb6d   :  { %5583 = vmatmul.mubr.msk.bf16.vlgmr.msra.gmra.mxu0 %vm1526_vm2, %v3194_v50 }
 0xb6e   :  { %5594 = vmatprep.mubr.msk.bf16.mxu0 %vm5852_vm0, %v5851_v26 }
 0xb6f   :  { %5589 = vmatmul.mubr.msk.bf16.vlgmr.msra.gmra.mxu1 %vm1526_vm2, %v3197_v52 }
 0xb70   :  { %5600 = vmatprep.mubr.msk.bf16.mxu1 %vm5852_vm0, %v5851_v26 }
 0xc25   :  { %v3778_v53 = vpop.f32.mrf.mxu0 }
 0xc26   :  { %v3779_v57 = vadd.f32 %v5847_v54, %v3778_v53 }
 0xc27   :  { %v5572_v58 = vpop.f32.mrf.mxu0  ;;  %v3825_v61 = vpop.f32.mrf.mxu1 }
 0xc28   :  { %v3826_v62 = vadd.f32 %v5847_v54, %v3825_v61  ;;  %v3926_v63 = vsel %vm1526_vm2, %v3779_v57, -inf  ;;  %v3478_v58 = vshrl.u32 %v6894_v60, 16 }
 0xc29   :  { %3927 = vmax.xlane.f32.xlu0 %v3926_v63  ;;  %v3781_v1 = vpop.f32.mrf.mxu0  ;;  %v5578_v2 = vpop.f32.mrf.mxu1 }
 0xc2a   :  { %v3782_v4 = vadd.f32 %v5848_v3, %v3781_v1  ;;  %v3932_v16 = vsel %vm1526_vm2, %v3826_v62, -inf }
 0xc2b   :  { %v5573_v5 = vpop.f32.mrf.mxu0  ;;  %v3828_v8 = vpop.f32.mrf.mxu1 }
 0xc2c   :  { %v3829_v9 = vadd.f32 %v5848_v3, %v3828_v8  ;;  %v3929_v12 = vsel %vm1526_vm2, %v3782_v4, -inf }
 0xc2d   :  { %3930 = vmax.xlane.f32.xlu1 %v3929_v12  ;;  %v3872_v13 = vpop.f32.mrf.mxu0  ;;  %3933 = vmax.xlane.f32.xlu0 %v3932_v16  ;;  %v5579_v17 = vpop.f32.mrf.mxu1 }
 0xc2e   :  { %v3873_v14 = vadd.f32 %v5847_v54, %v3872_v13  ;;  %v3935_v10 = vsel %vm1526_vm2, %v3829_v9, -inf }
 0xc2f   :  { %v5584_v18 = vpop.f32.mrf.mxu0  ;;  %v3919_v11 = vpop.f32.mrf.mxu1 }
 0xc30   :  { %v3920_v19 = vadd.f32 %v5847_v54, %v3919_v11  ;;  %v3938_v40 = vsel %vm1526_vm2, %v3873_v14, -inf }
 0xc31   :  { %3939 = vmax.xlane.f32.xlu1 %v3938_v40  ;;  %v3875_v22 = vpop.f32.mrf.mxu0  ;;  %3936 = vmax.xlane.f32.xlu0 %v3935_v10  ;;  %v5590_v24 = vpop.f32.mrf.mxu1 }
 0xc32   :  { %v3876_v35 = vadd.f32 %v5848_v3, %v3875_v22  ;;  %v3944_v27 = vsel %vm1526_vm2, %v3920_v19, -inf }
 0xc33   :  { %v5585_v59 = vpop.f32.mrf.mxu0  ;;  %v3922_v15 = vpop.f32.mrf.mxu1 }
 0xc34   :  { %v3923_v21 = vadd.f32 %v5848_v3, %v3922_v15  ;;  %v3941_v23 = vsel %vm1526_vm2, %v3876_v35, -inf }
 0xc35   :  { %3942 = vmax.xlane.f32.xlu0 %v3941_v23  ;;  %3945 = vmax.xlane.f32.xlu1 %v3944_v27  ;;  %v5591_v28 = vpop.f32.mrf.mxu1 }
 0xc36   :  { %v3947_v30 = vsel %vm1526_vm2, %v3923_v21, -inf }
 0xc39   :  { %3948 = vmax.xlane.f32.xlu0 %v3947_v30 }
 0xc46   :  { %3468 = vrot.lane.b32.xlu1 %v6894_v60, %s5854_s24 }
 0xc4a   :  { %3472 = vrot.lane.b32.xlu1 %v6894_v60, %s5853_s23 }
 0xc4f   :  { %3470 = vrot.lane.b32.xlu0 %v6894_v60, %s5855_s0 }
 0xcb2   :  { %v3928_v32 = vpop.xlane.xlu0 %3927 }
 0xcb3   :  { %v3950_v33 = vsub.f32 %v3779_v57, %v3928_v32 }
 0xcb5   :  { %v3958_v55 = vmul.f32 1.442695, %v3950_v33 }
 0xcb6   :  { %v3931_v34 = vpop.xlane.xlu1 %3930  ;;  %v3934_v37 = vpop.xlane.xlu0 %3933 }
 0xcb7   :  { %5807 = vpow2.f32 %v3958_v55  ;;  %v3951_v56 = vsub.f32 %v3782_v4, %v3931_v34  ;;  %v3952_v36 = vsub.f32 %v3826_v62, %v3934_v37 }
 0xcb9   :  { %v3960_v38 = vmul.f32 1.442695, %v3951_v56  ;;  %v3962_v39 = vmul.f32 1.442695, %v3952_v36 }
 0xcba   :  { %v3940_v43 = vpop.xlane.xlu1 %3939  ;;  %v3937_v44 = vpop.xlane.xlu0 %3936 }
 0xcbb   :  { %5809 = vpow2.f32 %v3960_v38  ;;  %v3954_v45 = vsub.f32 %v3873_v14, %v3940_v43  ;;  %v3953_v46 = vsub.f32 %v3829_v9, %v3937_v44 }
 0xcbc   :  { %5811 = vpow2.f32 %v3962_v39 }
 0xcbd   :  { %v3966_v47 = vmul.f32 1.442695, %v3954_v45  ;;  %v3964_v48 = vmul.f32 1.442695, %v3953_v46 }
 0xcbe   :  { %v3943_v49 = vpop.xlane.xlu0 %3942  ;;  %v3946_v50 = vpop.xlane.xlu1 %3945 }
 0xcbf   :  { %5813 = vpow2.f32 %v3966_v47  ;;  %v3955_v51 = vsub.f32 %v3876_v35, %v3943_v49  ;;  %v3956_v52 = vsub.f32 %v3920_v19, %v3946_v50 }
 0xcc0   :  { %5815 = vpow2.f32 %v3964_v48 }
 0xcc1   :  { %v3968_v53 = vmul.f32 1.442695, %v3955_v51  ;;  %v3970_v2 = vmul.f32 1.442695, %v3956_v52 }
 0xcc2   :  { %v3469_v54 = vpop.permute.xlu1 %3468  ;;  %v3949_v57 = vpop.xlane.xlu0 %3948 }
 0xcc3   :  { %v3476_v61 = vpack.i.b16 %v3469_v54, %v6894_v60  ;;  %v3479_v62 = vshrl.u32 %v3469_v54, 16  ;;  %v3957_v63 = vsub.f32 %v3923_v21, %v3949_v57  ;;  %5817 = vpow2.f32 %v3968_v53 }
 0xcc4   :  { %v7003_v1 = vpop.eup %5807 }
 0xcc5   :  { %v3480_v3 = vpack.i.b16 %v3479_v62, %v3478_v58  ;;  %v3972_v4 = vmul.f32 1.442695, %v3957_v63  ;;  %v3974_v5 = vsel %vm1526_vm2, %v7003_v1, 0.0  ;;  %v3490_v12 = vcombine.high %v3476_v61, %v6453_v7 }
 0xcc6   :  { %v3473_v8 = vpop.permute.xlu1 %3472  ;;  %v3471_v9 = vpop.permute.xlu0 %3470  ;;  %3975 = vadd.xlane.f32.xlu1 %v3974_v5  ;;  %v3497_v18 = vrot.slane %v3476_v61, %v6456_v25 }
 0xcc7   :  { %5819 = vpow2.f32 %v3972_v4  ;;  %v3487_v60 = vshrl.u32 %v3473_v8, 16  ;;  %v3484_v13 = vpack.i.b16 %v3473_v8, %v3471_v9  ;;  %v3486_v17 = vshrl.u32 %v3471_v9, 16 }
 0xcc8   :  { %v7008_v16 = vpop.eup %5809  ;;  %5821 = vpow2.f32 %v3970_v2  ;;  %v3556_v11 = vcombine.high %v3480_v3, %v6453_v7  ;;  %v3504_v35 = vrot.slane %v3490_v12, %v6456_v25  ;;  %v3563_v30 = vrot.slane %v3480_v3, %v6456_v25 }
 0xcc9   :  { %v7010_v14 = vpop.eup %5811  ;;  %v3977_v19 = vsel %vm1526_vm2, %v7008_v16, 0.0  ;;  %v3488_v40 = vpack.i.b16 %v3487_v60, %v3486_v17  ;;  %v3505_v10 = vcombine.high %v3484_v13, %v6453_v7  ;;  %v3512_v22 = vrot.slane %v3484_v13, %v6456_v25 }
 0xcca   :  { %v3980_v24 = vsel %vm1526_vm2, %v7010_v14, 0.0  ;;  %3978 = vadd.xlane.f32.xlu0 %v3977_v19  ;;  %v3570_v32 = vrot.slane %v3556_v11, %v6456_v25 }
 0xccb   :  { %3981 = vadd.xlane.f32.xlu1 %v3980_v24  ;;  %v3519_v15 = vrot.slane %v3505_v10, %v6456_v25  ;;  %v3520_v21 = vcombine.low %v3497_v18, %v3512_v22  ;;  %v3521_v23 = vcombine.high %v3497_v18, %v3512_v22  ;;  %v3571_v27 = vcombine.high %v3488_v40, %v6453_v7 }
 0xccc   :  { %v7021_v59 = vpop.eup %5813  ;;  %v3578_v33 = vrot.slane %v3488_v40, %v6456_v25 }
 0xccd   :  { %v7025_v28 = vpop.eup %5815  ;;  %v3986_v55 = vsel %vm1526_vm2, %v7021_v59, 0.0  ;;  %v3528_v34 = vrot.slane %v3520_v21, %v6460_v31  ;;  %v3535_v37 = vrot.slane %v3521_v23, %v6460_v31  ;;  %v3536_v56 = vcombine.low %v3504_v35, %v3519_v15 }
 0xcce   :  { %v3537_v36 = vcombine.high %v3504_v35, %v3519_v15  ;;  %v3585_v38 = vrot.slane %v3571_v27, %v6456_v25  ;;  %v3586_v7 = vcombine.low %v3563_v30, %v3578_v33  ;;  %v3587_v39 = vcombine.high %v3563_v30, %v3578_v33 }
 0xccf   :  { %3987 = vadd.xlane.f32.xlu1 %v3986_v55  ;;  %v3983_v43 = vsel %vm1526_vm2, %v7025_v28, 0.0  ;;  %v3544_v44 = vrot.slane %v3536_v56, %v6460_v31  ;;  %v3622_v46 = vcombine.low %v3528_v34, %v3535_v37  ;;  %v5129_v47 = vcombine.high %v3528_v34, %v3535_v37 }
 0xcd0   :  { %v3551_v45 = vrot.slane %v3537_v36, %v6460_v31  ;;  %3984 = vadd.xlane.f32.xlu0 %v3983_v43  ;;  %v7039_v48 = vpop.eup %5817  ;;  %v3594_v49 = vrot.slane %v3586_v7, %v6460_v31  ;;  %v3601_v50 = vrot.slane %v3587_v39, %v6460_v31  ;;  %v3602_v51 = vcombine.low %v3570_v32, %v3585_v38 }
 0xcd1   :  { %v3603_v52 = vcombine.high %v3570_v32, %v3585_v38  ;;  %v3629_v53 = vrot.slane %v3622_v46, %v6456_v25  ;;  %v3637_v54 = vrot.slane %v5129_v47, %v6456_v25  ;;  %v3989_v8 = vsel %vm1526_vm2, %v7039_v48, 0.0 }
 0xcd2   :  { %v3638_v57 = vcombine.low %v3544_v44, %v3551_v45  ;;  %v5130_v58 = vcombine.high %v3544_v44, %v3551_v45  ;;  %v3610_v61 = vrot.slane %v3602_v51, %v6460_v31  ;;  %v3672_v63 = vcombine.low %v3594_v49, %v3601_v50 }
 0xcd3   :  { %v3617_v62 = vrot.slane %v3603_v52, %v6460_v31  ;;  %v5131_v2 = vcombine.high %v3594_v49, %v3601_v50  ;;  %v3654_v11 = vcombine.low %v3629_v53, %v3637_v54 }
 0xcd4   :  { %v7047_v3 = vpop.eup %5819  ;;  %v3645_v4 = vrot.slane %v3638_v57, %v6456_v25  ;;  %v3653_v5 = vrot.slane %v5130_v58, %v6456_v25  ;;  %v3679_v12 = vrot.slane %v3672_v63, %v6456_v25  ;;  %3990 = vadd.xlane.f32.xlu0 %v3989_v8 }
 0xcd5   :  { %v7053_v9 = vpop.eup %5821  ;;  %v3687_v60 = vrot.slane %v5131_v2, %v6456_v25  ;;  %v3688_v13 = vcombine.low %v3610_v61, %v3617_v62  ;;  %v5132_v17 = vcombine.high %v3610_v61, %v3617_v62  ;;  %v3995_v18 = vsel %vm1526_vm2, %v7047_v3, 0.0 }
 0xcd6   :  { %v3662_v19 = vcombine.low %v3645_v4, %v3653_v5  ;;  %3996 = vadd.xlane.f32.xlu1 %v3995_v18  ;;  %v3992_v24 = vsel %vm1526_vm2, %v7053_v9, 0.0  ;;  %v3661_v35 = vrot.slane %v3654_v11, %v6460_v31 }
 0xcd7   :  { %v3695_v40 = vrot.slane %v3688_v13, %v6456_v25  ;;  %v3703_v10 = vrot.slane %v5132_v17, %v6456_v25  ;;  %v3704_v22 = vcombine.low %v3679_v12, %v3687_v60 }
 0xcd8   :  { %v3669_v15 = vrot.slane %v3662_v19, %v6460_v31  ;;  %3993 = vadd.xlane.f32.xlu0 %v3992_v24 }
 0xcd9   :  { %v3712_v21 = vcombine.low %v3695_v40, %v3703_v10  ;;  %v3711_v30 = vrot.slane %v3704_v22, %v6460_v31 }
 0xcda   :  { %v3670_v23 = vcombine.low %v3661_v35, %v3669_v15  ;;  %v3671_v27 = vcombine.high %v3661_v35, %v3669_v15 }
 0xcdb   :  { %v3719_v32 = vrot.slane %v3712_v21, %v6460_v31 }
 0xcdc   :  { %v3726_v34 = vshrl.u32 %v3670_v23, 16  ;;  %v3734_v37 = vshrl.u32 %v3671_v27, 16 }
 0xcdd   :  { %v3720_v33 = vcombine.low %v3711_v30, %v3719_v32  ;;  %v3721_v55 = vcombine.high %v3711_v30, %v3719_v32 }
 0xcdf   :  { %v3724_v56 = vpack.i.b16 %v3720_v33, %v3670_v23  ;;  %v3727_v36 = vshrl.u32 %v3720_v33, 16  ;;  %v3732_v38 = vpack.i.b16 %v3721_v55, %v3671_v27  ;;  %v3735_v7 = vshrl.u32 %v3721_v55, 16 }
 0xce1   :  { %5593 = vmatpush3.bf16.msra.mxu0 %v3724_v56  ;;  %v3728_v39 = vpack.i.b16 %v3727_v36, %v3726_v34  ;;  %v3736_v43 = vpack.i.b16 %v3735_v7, %v3734_v37 }
 0xce2   :  { %5604 = vmatprep.subr.bf16.mxu0 %v5851_v26 }
 0xce3   :  { %5599 = vmatpush3.bf16.msra.mxu1 %v3728_v39 }
 0xce4   :  { %5610 = vmatprep.subr.bf16.mxu1 %v5851_v26 }
 0xd4f   :  { %v3976_v44 = vpop.xlane.xlu1 %3975 }
 0xd50   :  { %5823 = vrcp.f32 %v3976_v44 }
 0xd53   :  { %v3979_v45 = vpop.xlane.xlu0 %3978 }
 0xd54   :  { %v3982_v46 = vpop.xlane.xlu1 %3981  ;;  %5825 = vrcp.f32 %v3979_v45 }
 0xd55   :  { %5827 = vrcp.f32 %v3982_v46 }
 0xd58   :  { %v3988_v49 = vpop.xlane.xlu1 %3987 }
 0xd59   :  { %v3985_v47 = vpop.xlane.xlu0 %3984 }
 0xd5a   :  { %5829 = vrcp.f32 %v3985_v47 }
 0xd5b   :  { %5831 = vrcp.f32 %v3988_v49 }
 0xd5d   :  { %v3991_v50 = vpop.xlane.xlu0 %3990  ;;  %v5824_v51 = vpop.eup %5823 }
 0xd5e   :  { %5833 = vrcp.f32 %v3991_v50  ;;  %v4006_v57 = vmul.f32 %v5824_v51, %v7003_v1 }
 0xd5f   :  { %v3997_v52 = vpop.xlane.xlu1 %3996 }
 0xd60   :  { %5835 = vrcp.f32 %v3997_v52 }
 0xd61   :  { %v5826_v53 = vpop.eup %5825  ;;  %v3994_v54 = vpop.xlane.xlu0 %3993 }
 0xd62   :  { %v4007_v58 = vmul.f32 %v5826_v53, %v7008_v16  ;;  %5837 = vrcp.f32 %v3994_v54  ;;  %v5828_v62 = vpop.eup %5827 }
 0xd63   :  { %v4008_v2 = vmul.f32 %v5828_v62, %v7010_v14 }
 0xd64   :  { %v4014_v61 = vpack.c.bf16 %v4007_v58, %v4006_v57 }
 0xd66   :  { %5595 = vmatmul.mubr.msk.bf16.vlgmr.msra.gmra.mxu0 %vm1526_vm2, %v4014_v61 }
 0xd67   :  { %v5830_v63 = vpop.eup %5829  ;;  %5605 = vmatpush3.bf16.msra.mxu0 %v3732_v38  ;;  %5606 = vmatprep.mubr.msk.bf16.mxu0 %vm5852_vm0, %v5851_v26 }
 0xd68   :  { %v4009_v4 = vmul.f32 %v5830_v63, %v7025_v28  ;;  %5616 = vmatprep.subr.bf16.mxu0 %v5851_v26  ;;  %v5832_v5 = vpop.eup %5831 }
 0xd69   :  { %v4010_v16 = vmul.f32 %v5832_v5, %v7021_v59  ;;  %v5735_v59 = vld [vmem:[%s7278_s4 + $0x38] sm:$0xff]  }
 0xd6a   :  { %v4015_v1 = vpack.c.bf16 %v4009_v4, %v4008_v2 }
 0xd6b   :  { %v5834_v8 = vpop.eup %5833 }
 0xd6c   :  { %5601 = vmatmul.mubr.msk.bf16.vlgmr.msra.gmra.mxu1 %vm1526_vm2, %v4015_v1  ;;  %v4011_v12 = vmul.f32 %v5834_v8, %v7039_v48  ;;  %v5736_v48 = vld [vmem:[%s7278_s4 + $0x30] sm:$0xff]  }
 0xd6d   :  { %5611 = vmatpush3.bf16.msra.mxu1 %v3736_v43  ;;  %5612 = vmatprep.mubr.msk.bf16.mxu1 %vm5852_vm0, %v5851_v26  ;;  %v5836_v60 = vpop.eup %5835 }
 0xd6e   :  { %v4016_v13 = vpack.c.bf16 %v4011_v12, %v4010_v16  ;;  %v4013_v14 = vmul.f32 %v5836_v60, %v7047_v3 }
 0xd6f   :  { %v5838_v28 = vpop.eup %5837 }
 0xd70   :  { %5607 = vmatmul.mubr.msk.bf16.vlgmr.msra.gmra.mxu0 %vm1526_vm2, %v4016_v13  ;;  %v4012_v17 = vmul.f32 %v5838_v28, %v7053_v9 }
 0xd71   :  { %5624 = vmatprep.mubr.msk.bf16.mxu0 %vm5852_vm0, %v5851_v26  ;;  %5617 = vmatpush3.bf16.msra.mxu0 %v5735_v59 }
 0xd72   :  { %v4017_v18 = vpack.c.bf16 %v4013_v14, %v4012_v17  ;;  %5618 = vmatprep.subr.bf16.mxu0 %v5851_v26 }
 0xd74   :  { %5613 = vmatmul.mubr.msk.bf16.vlgmr.msra.gmra.mxu1 %vm1526_vm2, %v4017_v18 }
 0xd75   :  { %4732 = vmatprep.mubr.bf16.mxu1 %v5849_v0  ;;  %5619 = vmatpush3.bf16.msra.mxu0 %v5736_v48 }
 0xd76   :  { %5620 = vmatprep.subr.bf16.mxu0 %v5851_v26 }
 0xe26   :  { %v4055_v3 = vpop.f32.mrf.mxu0 }
 0xe28   :  { %v5596_v9 = vpop.f32.mrf.mxu0 }
 0xe2a   :  { %v4058_v11 = vpop.f32.mrf.mxu0 }
 0xe2c   :  { %v4099_v19 = vpop.f32.mrf.mxu1  ;;  %v5597_v40 = vpop.f32.mrf.mxu0 }
 0xe2d   :  { %v5737_v40 = vld [vmem:[%s7278_s4 + $0x28] sm:$0xff]  }
 0xe2e   :  { %v5602_v0 = vpop.f32.mrf.mxu1  ;;  %5621 = vmatpush3.bf16.msra.mxu0 %v5737_v40 }
 0xe2f   :  { %5622 = vmatprep.subr.bf16.mxu0 %v5851_v26 }
 0xe30   :  { %v4102_v10 = vpop.f32.mrf.mxu1  ;;  %v4143_v22 = vpop.f32.mrf.mxu0 }
 0xe31   :  { %v4194_v15 = vcombine.low %v4055_v3, %v4143_v22  ;;  %v4195_v21 = vcombine.high %v4055_v3, %v4143_v22 }
 0xe32   :  { %v5603_v24 = vpop.f32.mrf.mxu1  ;;  %v5608_v35 = vpop.f32.mrf.mxu0 }
 0xe33   :  { %v4202_v34 = vrot.slane %v4194_v15, %v6456_v25  ;;  %v4209_v37 = vrot.slane %v4195_v21, %v6456_v25 }
 0xe34   :  { %v4146_v23 = vpop.f32.mrf.mxu0  ;;  %v4187_v27 = vpop.f32.mrf.mxu1 }
 0xe35   :  { %v4210_v30 = vcombine.low %v4099_v19, %v4187_v27  ;;  %v4211_v32 = vcombine.high %v4099_v19, %v4187_v27  ;;  %v4262_v38 = vcombine.low %v4058_v11, %v4146_v23  ;;  %v4263_v7 = vcombine.high %v4058_v11, %v4146_v23 }
 0xe36   :  { %v5609_v33 = vpop.f32.mrf.mxu0  ;;  %v5614_v55 = vpop.f32.mrf.mxu1 }
 0xe37   :  { %v4218_v56 = vrot.slane %v4210_v30, %v6456_v25  ;;  %v4225_v36 = vrot.slane %v4211_v32, %v6456_v25  ;;  %v4270_v57 = vrot.slane %v4262_v38, %v6456_v25  ;;  %v4277_v58 = vrot.slane %v4263_v7, %v6456_v25 }
 0xe38   :  { %v4190_v39 = vpop.f32.mrf.mxu1 }
 0xe39   :  { %v4226_v43 = vcombine.low %v4202_v34, %v4218_v56  ;;  %v4227_v44 = vcombine.high %v4202_v34, %v4218_v56  ;;  %v4242_v45 = vcombine.low %v4209_v37, %v4225_v36  ;;  %v4243_v46 = vcombine.high %v4209_v37, %v4225_v36  ;;  %v5738_v34 = vld [vmem:[%s7278_s4 + $0x20] sm:$0xff]  }
 0xe3a   :  { %v4278_v47 = vcombine.low %v4102_v10, %v4190_v39  ;;  %v4279_v49 = vcombine.high %v4102_v10, %v4190_v39  ;;  %v5615_v50 = vpop.f32.mrf.mxu1  ;;  %5623 = vmatpush3.bf16.msra.mxu0 %v5738_v34  ;;  %v5754_v34 = vld [vmem:[%s7281_s8 + $0xb0] sm:$0xff]  }
 0xe3b   :  { %v4234_v51 = vrot.slane %v4226_v43, %v6460_v31  ;;  %v4241_v52 = vrot.slane %v4227_v44, %v6460_v31  ;;  %v4250_v53 = vrot.slane %v4242_v45, %v6460_v31  ;;  %v4257_v54 = vrot.slane %v4243_v46, %v6460_v31 }
 0xe3c   :  { %v4286_v61 = vrot.slane %v4278_v47, %v6456_v25  ;;  %v4293_v62 = vrot.slane %v4279_v49, %v6456_v25 }
 0xe3d   :  { %v4330_v63 = vcombine.low %v4234_v51, %v4241_v52  ;;  %v5141_v2 = vcombine.high %v4234_v51, %v4241_v52  ;;  %v4346_v4 = vcombine.low %v4250_v53, %v4257_v54  ;;  %v5142_v5 = vcombine.high %v4250_v53, %v4257_v54 }
 0xe3e   :  { %v4294_v1 = vcombine.low %v4270_v57, %v4286_v61  ;;  %v4295_v8 = vcombine.high %v4270_v57, %v4286_v61  ;;  %v4310_v16 = vcombine.low %v4277_v58, %v4293_v62  ;;  %v4311_v12 = vcombine.high %v4277_v58, %v4293_v62 }
 0xe3f   :  { %v4337_v60 = vrot.slane %v4330_v63, %v6456_v25  ;;  %v4345_v13 = vrot.slane %v5141_v2, %v6456_v25  ;;  %v4353_v14 = vrot.slane %v4346_v4, %v6456_v25  ;;  %v4361_v28 = vrot.slane %v5142_v5, %v6456_v25 }
 0xe40   :  { %v4302_v17 = vrot.slane %v4294_v1, %v6460_v31  ;;  %v4309_v18 = vrot.slane %v4295_v8, %v6460_v31  ;;  %v4318_v59 = vrot.slane %v4310_v16, %v6460_v31  ;;  %v4325_v48 = vrot.slane %v4311_v12, %v6460_v31 }
 0xe41   :  { %v4363_v3 = vcombine.high %v4337_v60, %v4345_v13  ;;  %v4379_v9 = vcombine.high %v4353_v14, %v4361_v28  ;;  %v4362_v11 = vcombine.low %v4337_v60, %v4345_v13  ;;  %v4378_v19 = vcombine.low %v4353_v14, %v4361_v28  ;;  %v5154_v14 = vld [vmem:[%s7279_s5 + $0x1] ss:$0 sm:$0xff] }
 0xe42   :  { %v4398_v0 = vcombine.low %v4302_v17, %v4309_v18  ;;  %v5143_v10 = vcombine.high %v4302_v17, %v4309_v18  ;;  %v4414_v22 = vcombine.low %v4318_v59, %v4325_v48  ;;  %v5144_v24 = vcombine.high %v4318_v59, %v4325_v48 }
 0xe43   :  { %v4370_v35 = vrot.slane %v4362_v11, %v6460_v31  ;;  %v4386_v15 = vrot.slane %v4378_v19, %v6460_v31  ;;  %v4377_v32 = vrot.slane %v4363_v3, %v6460_v31  ;;  %v4393_v33 = vrot.slane %v4379_v9, %v6460_v31 }
 0xe44   :  { %v4405_v21 = vrot.slane %v4398_v0, %v6456_v25  ;;  %v4413_v23 = vrot.slane %v5143_v10, %v6456_v25  ;;  %v4421_v27 = vrot.slane %v4414_v22, %v6456_v25  ;;  %v4429_v30 = vrot.slane %v5144_v24, %v6456_v25  ;;  %v5741_v24 = vld [vmem:[%s7280_s6 + $0x74] ss:$8 sps:$4 sm:$0xff]  }
 0xe45   :  { %v4394_v55 = vcombine.low %v4370_v35, %v4386_v15  ;;  %v4396_v43 = vcombine.low %v4377_v32, %v4393_v33  ;;  %v4395_v45 = vcombine.high %v4370_v35, %v4386_v15  ;;  %v4397_v52 = vcombine.high %v4377_v32, %v4393_v33  ;;  %4708 = vmatprep.subr.bf16.mxu1 %v5741_v24  ;;  %v5744_v35 = vld [vmem:[%s7280_s6 + $0x64] ss:$8 sps:$4 sm:$0xff]   ;;  %v5742_v15 = vld [vmem:[%s7280_s6 + $0x60] ss:$8 sps:$4 sm:$0xff]   ;;  %v5751_v32 = vld [vmem:[%s7281_s8 + $0xf8] sm:$0xff]  }
 0xe46   :  { %v4431_v37 = vcombine.high %v4405_v21, %v4413_v23  ;;  %v4447_v56 = vcombine.high %v4421_v27, %v4429_v30  ;;  %v4430_v36 = vcombine.low %v4405_v21, %v4413_v23  ;;  %v4446_v38 = vcombine.low %v4421_v27, %v4429_v30  ;;  %v5747_v21 = vld [vmem:[%s7280_s6 + $0x54] ss:$8 sps:$4 sm:$0xff]   ;;  %v5745_v23 = vld [vmem:[%s7280_s6 + $0x50] ss:$8 sps:$4 sm:$0xff]   ;;  %v5750_v27 = vld [vmem:[%s7280_s6 + $0x44] ss:$8 sps:$4 sm:$0xff]   ;;  %5462 = vmatprep.subr.bf16.mxu0 %v5751_v32 }
 0xe47   :  { %v5748_v30 = vld [vmem:[%s7280_s6 + $0x40] ss:$8 sps:$4 sm:$0xff]   ;;  %v5752_v33 = vld [vmem:[%s7281_s8 + $0xb8] sm:$0xff]  }
 0xe48   :  { %v4445_v7 = vrot.slane %v4431_v37, %v6460_v31  ;;  %v4461_v25 = vrot.slane %v4447_v56, %v6460_v31  ;;  %v4438_v26 = vrot.slane %v4430_v36, %v6460_v31  ;;  %v4454_v39 = vrot.slane %v4446_v38, %v6460_v31  ;;  %v5755_v37 = vld [vmem:[%s7281_s8 + $0xe8] sm:$0xff]   ;;  %v5757_v36 = vld [vmem:[%s7281_s8 + $0xe0] sm:$0xff]  }
 0xe49   :  { %v5756_v56 = vld [vmem:[%s7281_s8 + $0xa8] sm:$0xff]   ;;  %v5758_v38 = vld [vmem:[%s7281_s8 + $0xa0] sm:$0xff]  }
 0xe4a   :  { %v4464_v44 = vcombine.low %v4445_v7, %v4461_v25  ;;  %v4463_v46 = vcombine.high %v4438_v26, %v4454_v39  ;;  %v4462_v47 = vcombine.low %v4438_v26, %v4454_v39  ;;  %v4465_v51 = vcombine.high %v4445_v7, %v4461_v25  ;;  %v5759_v7 = vld [vmem:[%s7281_s8 + $0xd8] sm:$0xff]  }
 0xe4b   :  { %v5760_v25 = vld [vmem:[%s7281_s8 + $0x98] sm:$0xff]  }
 0xe4c   :  { %v5661_v49 = vpack.i.bf16 %v4464_v44, %v4396_v43  ;;  %v5656_v50 = vpack.i.bf16 %v4463_v46, %v4395_v45  ;;  %v5666_v53 = vpack.i.bf16 %v4465_v51, %v4397_v52 }
 0xe4e   :  { %5662 = vrot.lane.b32.xlu1 %v5661_v49, %s5858_s20  ;;  %5657 = vrot.lane.b32.xlu0 %v5656_v50, %s5859_s21 }
 0xe52   :  { %5667 = vrot.lane.b32.xlu1 %v5666_v53, %s5860_s22 }
 0xec0   :  { %v5663_v54 = vpop.permute.xlu1 %5662  ;;  %v5658_v57 = vpop.permute.xlu0 %5657 }
 0xec1   :  { %v5660_v58 = vunpack.i.h.bf16 %v5658_v57  ;;  %v5659_v31 = vunpack.i.l.bf16 %v5658_v57  ;;  %v5665_v61 = vunpack.i.h.bf16 %v5663_v54  ;;  %v5664_v62 = vunpack.i.l.bf16 %v5663_v54 }
 0xec3   :  { %v4490_v63 = vsel %vm1526_vm2, %v4394_v55, %v5659_v31  ;;  %v4491_v2 = vsel %vm1526_vm2, %v4462_v47, %v5660_v58  ;;  %v5753_v55 = vld [vmem:[%s7281_s8 + $0xf0] sm:$0xff]  }
 0xec4   :  { %v5668_v4 = vpop.permute.xlu1 %5667  ;;  %v4492_v8 = vsel %vm2281_vm3, %v4490_v63, %v5664_v62  ;;  %v4493_v16 = vsel %vm2281_vm3, %v4491_v2, %v5665_v61  ;;  %v5162_v62 = vld [vmem:[%s7282_s10 + $0x1] ss:$0 sm:$0xff] }
 0xec5   :  { %v5670_v5 = vunpack.i.h.bf16 %v5668_v4  ;;  %v5669_v1 = vunpack.i.l.bf16 %v5668_v4 }
 0xec7   :  { %v4494_v12 = vsel %vm2284_vm4, %v4492_v8, %v5669_v1  ;;  %v4495_v60 = vsel %vm2284_vm4, %v4493_v16, %v5670_v5  ;;  %v5163_v1 = vld [vmem:[%s7283_s11 + $0x1] ss:$0 sm:$0xff] }
 0xec8   :  { %v4496_v13 = vpack.c.bf16 %v4495_v60, %v4494_v12 }
 0xeca   :  { %5625 = vmatmul.mubr.msk.bf16.vlgmr.msra.gmra.mxu0 %vm624_vm1, %v4496_v13  ;;  %v5761_v13 = vld [vmem:[%s7281_s8 + $0xd0] sm:$0xff]  }
 0xecb   :  { %5463 = vmatpush3.bf16.msra.mxu0 %v5752_v33 }
 0xecc   :  { %5464 = vmatprep.subr.bf16.mxu0 %v5753_v55 }
 0xecf   :  { %5465 = vmatpush3.bf16.msra.mxu0 %v5754_v34 }
 0xed0   :  { %5466 = vmatprep.subr.bf16.mxu0 %v5755_v37 }
 0xed3   :  { %5467 = vmatpush3.bf16.msra.mxu0 %v5756_v56 }
 0xed4   :  { %5468 = vmatprep.subr.bf16.mxu0 %v5757_v36 }
 0xed7   :  { %5469 = vmatpush3.bf16.msra.mxu0 %v5758_v38 }
 0xed8   :  { %5470 = vmatprep.subr.bf16.mxu0 %v5759_v7 }
 0xedb   :  { %5471 = vmatpush3.bf16.msra.mxu0 %v5760_v25 }
 0xedc   :  { %5472 = vmatprep.subr.bf16.mxu0 %v5761_v13 }
 0xf8a   :  { %v4575_v28 = vpop.f32.mrf.mxu0 }
 0xf8b   :  { %v4576_v17 = vadd.f32 %v5154_v14, %v4575_v28  ;;  %v5763_v28 = vld [vmem:[%s7281_s8 + $0xc8] sm:$0xff]  }
 0xf8c   :  { %v5626_v18 = vpop.f32.mrf.mxu0 }
 0xf8d   :  { %v7150_v59 = vadd.f32 %v4576_v17, %v6861_v41  ;;  %v5764_v17 = vld [vmem:[%s7281_s8 + $0x88] sm:$0xff]   ;;  %v5765_v18 = vld [vmem:[%s7281_s8 + $0xc0] sm:$0xff]  }
 0xf8e   :  { %v4578_v48 = vpop.f32.mrf.mxu0 }
 0xf8f   :  { %v4579_v3 = vadd.f32 %v5154_v14, %v4578_v48  ;;  %v4588_v9 = vsel %vm624_vm1, %v7150_v59, 0.0  ;;  %v4596_v11 = vmul.f32 %v7150_v59, %v7150_v59  ;;  %v5762_v14 = vld [vmem:[%s7281_s8 + $0x90] sm:$0xff]   ;;  %v5172_v48 = vld [vmem:[%s7284_s7 + $0x2] sm:$0x3] }
 0xf90   :  { %4589 = vadd.xlane.f32.xlu0 %v4588_v9  ;;  %v5627_v19 = vpop.f32.mrf.mxu0  ;;  %5473 = vmatpush3.bf16.msra.mxu0 %v5762_v14  ;;  %v4654_v9 = vrot.slane %v5172_v48, %v2439_v29 }
 0xf91   :  { %v7157_v40 = vadd.f32 %v4579_v3, %v6863_v42  ;;  %v4598_v0 = vsel %vm624_vm1, %v4596_v11, 0.0  ;;  %v5739_v42 = vld [vmem:[%s7280_s6 + $0x70] ss:$8 sps:$4 sm:$0xff]   ;;  %5474 = vmatprep.subr.bf16.mxu0 %v5763_v28  ;;  %v4650_v11 = vrot.slane %v5172_v48, %v2435_v6 }
 0xf92   :  { %4709 = vmatpush1.bf16.msra.mxu1 %v5739_v42 }
 0xf93   :  { %v4591_v10 = vsel %vm624_vm1, %v7157_v40, 0.0  ;;  %v4597_v41 = vmul.f32 %v7157_v40, %v7157_v40  ;;  %4710 = vmatprep.subr.bf16.mxu1 %v5744_v35 }
 0xf94   :  { %4599 = vadd.xlane.f32.xlu0 %v4598_v0  ;;  %4592 = vadd.xlane.f32.xlu1 %v4591_v10 }
 0xf95   :  { %v4601_v22 = vsel %vm624_vm1, %v4597_v41, 0.0  ;;  %5475 = vmatpush3.bf16.msra.mxu0 %v5764_v17 }
 0xf96   :  { %4711 = vmatpush1.bf16.msra.mxu1 %v5742_v15  ;;  %5476 = vmatprep.subr.bf16.mxu0 %v5765_v18 }
 0xf97   :  { %4712 = vmatprep.subr.bf16.mxu1 %v5747_v21 }
 0xf98   :  { %4602 = vadd.xlane.f32.xlu0 %v4601_v22 }
 0xf9a   :  { %4713 = vmatpush1.bf16.msra.mxu1 %v5745_v23 }
 0xf9b   :  { %4714 = vmatprep.subr.bf16.mxu1 %v5750_v27 }
 0xf9e   :  { %4715 = vmatpush1.bf16.msra.mxu1 %v5748_v30 }
0x1019   :  { %v4590_v26 = vpop.xlane.xlu0 %4589 }
0x101a   :  { %v4594_v39 = vmul.f32 0.015625, %v4590_v26 }
0x101c   :  { %v4608_v45 = vmul.f32 %v4594_v39, %v4594_v39  ;;  %v4606_v58 = vsub.f32 %v7150_v59, %v4594_v39  ;;  %v5766_v59 = vld [vmem:[%s7281_s8 + $0x80] sm:$0xff]  }
0x101d   :  { %v4600_v43 = vpop.xlane.xlu0 %4599  ;;  %v4593_v44 = vpop.xlane.xlu1 %4592  ;;  %5477 = vmatpush3.bf16.msra.mxu0 %v5766_v59 }
0x101e   :  { %v4604_v46 = vmul.f32 0.015625, %v4600_v43  ;;  %v4595_v47 = vmul.f32 0.015625, %v4593_v44 }
0x1020   :  { %v4610_v49 = vsub.f32 %v4604_v46, %v4608_v45  ;;  %v4609_v52 = vmul.f32 %v4595_v47, %v4595_v47  ;;  %v4607_v63 = vsub.f32 %v7157_v40, %v4595_v47 }
0x1021   :  { %v4603_v50 = vpop.xlane.xlu0 %4602 }
0x1022   :  { %v4612_v51 = vadd.f32 1e-05, %v4610_v49  ;;  %v4605_v53 = vmul.f32 0.015625, %v4603_v50 }
0x1024   :  { %5839 = vrsqrt.f32 %v4612_v51  ;;  %v4611_v54 = vsub.f32 %v4605_v53, %v4609_v52 }
0x1026   :  { %v4613_v57 = vadd.f32 1e-05, %v4611_v54 }
0x1028   :  { %5841 = vrsqrt.f32 %v4613_v57 }
0x1031   :  { %v5840_v31 = vpop.eup %5839 }
0x1032   :  { %v4616_v61 = vmul.f32 %v5840_v31, %v4606_v58 }
0x1034   :  { %v4624_v5 = vmul.f32 %v5162_v62, %v4616_v61 }
0x1035   :  { %v5842_v2 = vpop.eup %5841 }
0x1036   :  { %v4617_v4 = vmul.f32 %v5842_v2, %v4607_v63  ;;  %v4632_v16 = vadd.f32 %v5163_v1, %v4624_v5  ;;  %v5234_v2 = vld [vmem:[%s7286_s12 + $0x1] ss:$0 sm:$0xff] }
0x1037   :  { %v5235_v5 = vld [vmem:[%s7287_s13 + $0x1] ss:$0 sm:$0xff] }
0x1038   :  { %v4625_v8 = vmul.f32 %v5162_v62, %v4617_v4 }
0x103a   :  { %v4633_v12 = vadd.f32 %v5163_v1, %v4625_v8 }
0x103c   :  { %v4634_v60 = vpack.c.bf16 %v4633_v12, %v4632_v16 }
0x103e   :  { %5181 = vmatmul.mubr.msk.bf16.vlgmr.msra.gmra.mxu1 %vm624_vm1, %v4634_v60 }
0x10fe   :  { %v4734_v3 = vpop.f32.mrf.mxu1 }
0x10ff   :  { %v4735_v41 = vadd.f32 %v4734_v3, %v4650_v11 }
0x1100   :  { %v4736_v19 = vpop.f32.mrf.mxu1 }
0x1101   :  { %v4737_v0 = vadd.f32 %v4736_v19, %v4654_v9  ;;  %v4743_v21 = vmax.f32 %v4735_v41, 0.0 }
0x1102   :  { %v4738_v40 = vpop.f32.mrf.mxu1 }
0x1103   :  { %v4739_v10 = vadd.f32 %v4738_v40, %v4650_v11  ;;  %v4744_v35 = vmax.f32 %v4737_v0, 0.0 }
0x1104   :  { %v4740_v22 = vpop.f32.mrf.mxu1 }
0x1105   :  { %v4741_v24 = vadd.f32 %v4740_v22, %v4654_v9  ;;  %v4745_v42 = vmax.f32 %v4739_v10, 0.0 }
0x1107   :  { %v4746_v15 = vmax.f32 %v4741_v24, 0.0  ;;  %v4747_v27 = vpack.c.bf16 %v4745_v42, %v4743_v21 }
0x1109   :  { %v4748_v23 = vpack.c.bf16 %v4746_v15, %v4744_v35 }
0x110b   :  { %4918 = vmatprep.mubr.bf16.mxu0 %v4748_v23 }
0x110c   :  { %4919 = vmatmul.mubr.bf16.vlgmr.msra.gmra.mxu0 %v4747_v27 }
0x11cc   :  { %v5478_v30 = vpop.f32.mrf.mxu0 }
0x11ce   :  { %v5479_v29 = vpop.f32.mrf.mxu0 }
0x11cf   :  { %v5480_v6 = vadd.f32 %v5479_v29, %v5478_v30 }
0x11d0   :  { %v5481_v32 = vpop.f32.mrf.mxu0 }
0x11d1   :  { %v4921_v33 = vadd.f32 %v5480_v6, %v5215_v20 }
0x11d2   :  { %v5482_v55 = vpop.f32.mrf.mxu0 }
0x11d3   :  { %v4927_v34 = vadd.f32 %v4921_v33, %v4632_v16  ;;  %v5483_v37 = vadd.f32 %v5482_v55, %v5481_v32 }
0x11d5   :  { %v4924_v56 = vadd.f32 %v5483_v37, %v5215_v20  ;;  %v4933_v36 = vsel %vm624_vm1, %v4927_v34, 0.0  ;;  %v4941_v38 = vmul.f32 %v4927_v34, %v4927_v34 }
0x11d6   :  { %4934 = vadd.xlane.f32.xlu1 %v4933_v36 }
0x11d7   :  { %v4928_v7 = vadd.f32 %v4924_v56, %v4633_v12  ;;  %v4943_v26 = vsel %vm624_vm1, %v4941_v38, 0.0 }
0x11d9   :  { %v4936_v25 = vsel %vm624_vm1, %v4928_v7, 0.0  ;;  %v4942_v39 = vmul.f32 %v4928_v7, %v4928_v7 }
0x11da   :  { %4937 = vadd.xlane.f32.xlu0 %v4936_v25  ;;  %4944 = vadd.xlane.f32.xlu1 %v4943_v26 }
0x11db   :  { %v4946_v43 = vsel %vm624_vm1, %v4942_v39, 0.0 }
0x11de   :  { %4947 = vadd.xlane.f32.xlu0 %v4946_v43 }
0x125f   :  { %v4935_v44 = vpop.xlane.xlu1 %4934 }
0x1260   :  { %v4939_v45 = vmul.f32 0.015625, %v4935_v44 }
0x1262   :  { %v4953_v49 = vmul.f32 %v4939_v45, %v4939_v45  ;;  %v4951_v62 = vsub.f32 %v4927_v34, %v4939_v45 }
0x1263   :  { %v4938_v46 = vpop.xlane.xlu0 %4937  ;;  %v4945_v47 = vpop.xlane.xlu1 %4944 }
0x1264   :  { %v4940_v50 = vmul.f32 0.015625, %v4938_v46  ;;  %v4949_v51 = vmul.f32 0.015625, %v4945_v47 }
0x1266   :  { %v4955_v52 = vsub.f32 %v4949_v51, %v4953_v49  ;;  %v4954_v54 = vmul.f32 %v4940_v50, %v4940_v50  ;;  %v4952_v1 = vsub.f32 %v4928_v7, %v4940_v50 }
0x1267   :  { %v4948_v53 = vpop.xlane.xlu0 %4947 }
0x1268   :  { %v4957_v57 = vadd.f32 1e-05, %v4955_v52  ;;  %v4950_v58 = vmul.f32 0.015625, %v4948_v53 }
0x126a   :  { %5843 = vrsqrt.f32 %v4957_v57  ;;  %v4956_v31 = vsub.f32 %v4950_v58, %v4954_v54 }
0x126c   :  { %v4958_v61 = vadd.f32 1e-05, %v4956_v31 }
0x126e   :  { %5845 = vrsqrt.f32 %v4958_v61 }
0x1277   :  { %v5844_v63 = vpop.eup %5843 }
0x1278   :  { %v4961_v4 = vmul.f32 %v5844_v63, %v4951_v62 }
0x127a   :  { %v4969_v8 = vmul.f32 %v5234_v2, %v4961_v4 }
0x127b   :  { %v5846_v16 = vpop.eup %5845 }
0x127c   :  { %v4977_v12 = vadd.f32 %v5235_v5, %v4969_v8  ;;  %v4962_v60 = vmul.f32 %v5846_v16, %v4952_v1 }
0x127e   :  { %4979 = vst.msk [vmem:[%s7288_s14] sm:$0xff] %vm624_vm1, %v4977_v12  ;;  %v4970_v13 = vmul.f32 %v5234_v2, %v4962_v60 }
0x1280   :  { %v4978_v14 = vadd.f32 %v5235_v5, %v4970_v13 }
0x1282   :  { %4980 = vst.msk [vmem:[%s7288_s14 + $0x8] sm:$0xff] %vm624_vm1, %v4978_v14 }

</bundles_post_ra>
